<compile_context>
chip_gen: v6e
topology: v6e:2x2x1
jax: 0.10.0
libtpu: 0.0.40
codegen_flags: <defaults>
</compile_context>

<pallas_src>
import functools

import jax
import jax.numpy as jnp
from jax import lax
from jax.experimental import pallas as pl
from jax.experimental.pallas import tpu as pltpu

WORDS_DIM = 300
OUT_CH = 6
KHS = (3, 4, 5)            # kernel heights of conv1/2/3 (padding = kh - 1)
KH_MAX = 5
PAD = KH_MAX - 1           # conv halo needed by the widest branch
HALO = 8                   # global zero prefix (sublane aligned, >= PAD)
C_OUT = len(KHS) * OUT_CH  # 18 fused output channels


def _round_up(x, m):
    return (x + m - 1) // m * m


def _net_kernel(x_ref, w_ref, b_ref, o_ref, xs_ref, acc_ref, *,
                seq_len, tb, stripe):
    """One grid step = tb batch elements.

    x_ref  : (tb, L, D) f32              raw input block
    w_ref  : (5, D, 18) f32              fused conv weights (taps right-aligned)
    b_ref  : (1, 18)    f32              fused biases
    o_ref  : (tb, 18)   f32              pooled output block
    xs_ref : (HALO + tb*stripe, D) f32   zero-gapped, batch-flattened staging
    acc_ref: (tb*stripe, 18) f32         fused conv accumulator

    Element b's data lives at staging rows [HALO + b*stripe, HALO + b*stripe
    + L); the (stripe - L) >= 4 trailing gap rows double as element b+1's
    leading conv halo.  Accumulator row b*stripe + q holds the fused conv
    output of element b at position q:
        acc[b*stripe + q] = sum_k xs[b*stripe + q + (HALO - PAD) + k] @ W[k]
    """
    rows_out = tb * stripe

    # --- 1. stage the block: one aligned (stripe, D) store per element ------
    xs_ref[0:HALO, :] = jnp.zeros((HALO, WORDS_DIM), jnp.float32)
    gap = jnp.zeros((stripe - seq_len, WORDS_DIM), jnp.float32)  # hoisted

    def stage(b, carry):
        start = pl.multiple_of(HALO + b * stripe, 8)
        xs_ref[pl.ds(start, stripe), :] = jnp.concatenate(
            [x_ref[b], gap], axis=0)
        return carry

    lax.fori_loop(0, tb, stage, 0)

    # --- 2. fused conv: 5 taps, one (rows_in, D) @ (D, 18) f32 matmul each --
    # The tap shift is applied to the narrow (., 18) dot result as a value
    # slice, so the wide staging operand is always a fully aligned read and
    # there is no explicit partial-product round trip through VMEM scratch.
    for k in range(KH_MAX):
        p = jnp.dot(xs_ref[...], w_ref[k],
                    preferred_element_type=jnp.float32)          # (rows_in, 18)
        shifted = p[HALO - PAD + k: HALO - PAD + k + rows_out]   # (rows_out, 18)
        if k == 0:
            acc_ref[...] = shifted
        else:
            acc_ref[...] += shifted

    # --- 3. masked per-element max pool, then bias + ReLU -------------------
    # Branch kh is valid for positions q < L + kh - 1; remaining accumulator
    # rows are exactly zero and are masked to -inf before the max.
    q_idx = lax.broadcasted_iota(jnp.int32, (stripe, C_OUT), 0)
    lane = lax.broadcasted_iota(jnp.int32, (stripe, C_OUT), 1)
    valid_len = (seq_len + 2) \
        + (lane >= OUT_CH).astype(jnp.int32) \
        + (lane >= 2 * OUT_CH).astype(jnp.int32)                 # L + kh - 1
    valid = q_idx < valid_len                                    # (stripe, 18)

    a = acc_ref[...].reshape(tb, stripe, C_OUT)   # layout-preserving: stripe%8==0
    a = jnp.where(valid[None, :, :], a, -jnp.inf)
    pooled = jnp.max(a, axis=1)                                  # (tb, 18)

    # bias + ReLU after the pool (exact: ReLU monotone, bias per-channel const)
    o_ref[...] = jnp.maximum(pooled + b_ref[...], 0.0)


def fuse_params(params):
    """Fuse the three conv branches once (outside the per-call hot path).

    Right-aligns each (kh, D, 6) weight inside a common 5-tap (5, D, 18) f32
    weight and concatenates biases to (1, 18)."""
    w_fused = jnp.zeros((KH_MAX, WORDS_DIM, C_OUT), jnp.float32)
    biases = []
    for gi, ((w, b), kh) in enumerate(zip(params, KHS)):
        wk = jnp.transpose(w[:, 0, :, :], (1, 2, 0)).astype(jnp.float32)
        w_fused = w_fused.at[KH_MAX - kh:, :,
                             gi * OUT_CH:(gi + 1) * OUT_CH].set(wk)
        biases.append(b.reshape(1, OUT_CH).astype(jnp.float32))
    return w_fused, jnp.concatenate(biases, axis=1)


def _pick_tile(n, seq_len):
    """Choose (tb, stripe).  tb is a multiple of 8 (or == n when n <= 8),
    sized from a conservative VMEM budget, and < n whenever n > 8 so the
    parallel batch axis has >= 2 grid steps (both v7x TensorCores get work)."""
    stripe = _round_up(seq_len + PAD, 8)
    # Per-element VMEM estimate: f32 staging + lane-padded acc/dot temp +
    # double-buffered input block.
    per_elem = stripe * (WORDS_DIM * 4 + 2 * 128 * 4) \
        + 2 * seq_len * WORDS_DIM * 4
    budget = 16 << 20                       # safe on v5e / v6e / v7x
    cap = max(8, min(256, budget // max(per_elem, 1)) // 8 * 8)
    if n <= 8:
        return n, stripe
    tb = min(cap, _round_up(pl.cdiv(n, 2), 8))
    return max(8, tb // 8 * 8), stripe


def net_forward_pallas(x, fused_params, *, tb=None):
    """x: (N, 1, L, 300) float32 NCHW as in PyTorch.  Returns (N, 18) f32."""
    w_fused, bias = fused_params
    n, c, seq_len, d = x.shape
    assert c == 1 and d == WORDS_DIM

    x2 = x[:, 0, :, :]                      # (N, L, D); metadata-only squeeze

    auto_tb, stripe = _pick_tile(n, seq_len)
    if tb is None:
        tb = auto_tb
    else:
        tb = max(1, min(tb, n))
        if n > tb:
            tb = _round_up(tb, 8)
    rows_out = tb * stripe
    rows_in = HALO + rows_out

    kernel = functools.partial(_net_kernel, seq_len=seq_len, tb=tb,
                               stripe=stripe)

    # Tail grid step when n % tb != 0 reads a clipped input block and writes a
    # clipped output block; garbage rows never mix into valid elements because
    # every element's taps read only its own stripe plus zeroed gap rows.
    return pl.pallas_call(
        kernel,
        out_shape=jax.ShapeDtypeStruct((n, C_OUT), jnp.float32),
        grid_spec=pltpu.PrefetchScalarGridSpec(
            num_scalar_prefetch=0,
            grid=(pl.cdiv(n, tb),),
            in_specs=[
                pl.BlockSpec((tb, seq_len, WORDS_DIM), lambda i: (i, 0, 0)),
                pl.BlockSpec((KH_MAX, WORDS_DIM, C_OUT), lambda i: (0, 0, 0)),
                pl.BlockSpec((1, C_OUT), lambda i: (0, 0)),
            ],
            out_specs=pl.BlockSpec((tb, C_OUT), lambda i: (i, 0)),
            scratch_shapes=[
                pltpu.VMEM((rows_in, WORDS_DIM), jnp.float32),   # staging
                pltpu.VMEM((rows_out, C_OUT), jnp.float32),      # accumulator
            ],
        ),
        compiler_params=pltpu.CompilerParams(
            dimension_semantics=("parallel",),
            vmem_limit_bytes=32 << 20),
    )(x2, w_fused, bias)


def net_forward_ref(x, params):
    """Pure-JAX f32 reference mirroring the PyTorch forward exactly."""
    outs = []
    for (w, b), kh in zip(params, KHS):
        pad = kh - 1
        y = lax.conv_general_dilated(
            x, w, window_strides=(1, 1), padding=[(pad, pad), (0, 0)],
            dimension_numbers=('NCHW', 'OIHW', 'NCHW'))
        y = y + b[None, :, None, None]
        y = jax.nn.relu(y)[..., 0]                 # squeeze(3) -> (N, 6, L_out)
        outs.append(jnp.max(y, axis=2))            # max_pool1d over full length
    return jnp.concatenate(outs, axis=1)           # (N, 18)


def init_params(key):
    params = []
    for kh in KHS:
        key, kw, kb = jax.random.split(key, 3)
        fan_in = 1 * kh * WORDS_DIM
        bound = 1.0 / (fan_in ** 0.5)
        w = jax.random.uniform(kw, (OUT_CH, 1, kh, WORDS_DIM),
                               minval=-bound, maxval=bound, dtype=jnp.float32)
        b = jax.random.uniform(kb, (OUT_CH,),
                               minval=-bound, maxval=bound, dtype=jnp.float32)
        params.append((w, b))
    return params


if __name__ == "__main__":
    key = jax.random.PRNGKey(0)
    key, kx = jax.random.split(key)

    batch, seq_len = 16, 9     # small test; auto tb=8 -> 2 grid steps
    x = jax.random.normal(kx, (batch, 1, seq_len, WORDS_DIM), dtype=jnp.float32)
    params = init_params(key)

    fused = fuse_params(params)                       # hoisted weight fusion
    fwd = jax.jit(net_forward_pallas, static_argnames=("tb",))

    out = jax.block_until_ready(fwd(x, fused))
    ref = net_forward_ref(x, params)

    assert out.shape == (batch, C_OUT)
    # f32 operands; Mosaic may still route the matmul through bf16 MXU passes
    # at default precision, so keep a relaxed tolerance.
    assert jnp.allclose(out, ref, atol=2e-2, rtol=2e-2), (out, ref)

    print("KERNEL_OK")
</pallas_src>

<mosaic_0001>
module attributes {stable_mosaic.version = 11 : i64} {
  func.func @_net_kernel(%arg0: i32, %arg1: memref<8x9x300xf32, #tpu.memory_space<vmem>>, %arg2: memref<5x300x18xf32, #tpu.memory_space<vmem>>, %arg3: memref<1x18xf32, #tpu.memory_space<vmem>>, %arg4: memref<8x18xf32, #tpu.memory_space<vmem>>, %arg5: memref<136x300xf32, #tpu.memory_space<vmem>>, %arg6: memref<128x18xf32, #tpu.memory_space<vmem>>) attributes {dimension_semantics = [#tpu.dimension_semantics<parallel>], iteration_bounds = array<i64: 2>, scalar_prefetch = 0 : i64, scratch_operands = 2 : i64, tpu.core_type = #tpu.core_type<tc>, window_params = [{transform_indices = @transform_0, window_bounds = array<i64: 8, 9, 300>}, {pipeline_mode = #tpu.pipeline_mode<synchronous>, transform_indices = @transform_1, window_bounds = array<i64: 5, 300, 18>}, {pipeline_mode = #tpu.pipeline_mode<synchronous>, transform_indices = @transform_2, window_bounds = array<i64: 1, 18>}, {transform_indices = @transform_3, window_bounds = array<i64: 8, 18>}]} {
    %cst = arith.constant 0.000000e+00 : f32
    %0 = vector.broadcast %cst : f32 to vector<8x300xf32>
    %c0 = arith.constant 0 : index
    %c0_0 = arith.constant 0 : index
    %1 = vector.load %arg5[%c0, %c0_0] : memref<136x300xf32, #tpu.memory_space<vmem>>, vector<8x300xf32>
    tpu.vector_store %arg5[%c0, %c0_0], %0 {strides = array<i32>} : memref<136x300xf32, #tpu.memory_space<vmem>>, vector<8x300xf32>,
    %cst_1 = arith.constant 0.000000e+00 : f32
    %2 = vector.broadcast %cst_1 : f32 to vector<7x300xf32>
    %c0_i32 = arith.constant 0 : i32
    %c8_i32 = arith.constant 8 : i32
    %3 = arith.addi %c0_i32, %c8_i32 : i32
    %c1_i32 = arith.constant 1 : i32
    scf.for %arg7 = %c0_i32 to %3 step %c1_i32  : i32 {
      %c16_i32 = arith.constant 16 : i32
      %68 = arith.muli %arg7, %c16_i32 : i32
      %c8_i32_56 = arith.constant 8 : i32
      %69 = arith.addi %c8_i32_56, %68 : i32
      %70 = tpu.assume_multiple %69, 8 : i32
      %71 = arith.index_cast %arg7 : i32 to index
      %c0_57 = arith.constant 0 : index
      %c0_58 = arith.constant 0 : index
      %72 = vector.load %arg1[%71, %c0_57, %c0_58] : memref<8x9x300xf32, #tpu.memory_space<vmem>>, vector<1x9x300xf32>
      %73 = vector.shape_cast %72 : vector<1x9x300xf32> to vector<9x300xf32>
      %74 = tpu.concatenate %73, %2 in 0 : vector<9x300xf32>, vector<7x300xf32> -> vector<16x300xf32>
      %75 = arith.index_cast %70 : i32 to index
      %c0_59 = arith.constant 0 : index
      %76 = vector.load %arg5[%75, %c0_59] : memref<136x300xf32, #tpu.memory_space<vmem>>, vector<16x300xf32>
      tpu.vector_store %arg5[%75, %c0_59], %74 {strides = array<i32>} : memref<136x300xf32, #tpu.memory_space<vmem>>, vector<16x300xf32>,
    }
    %c8_i32_2 = arith.constant 8 : i32
    %c0_3 = arith.constant 0 : index
    %c0_4 = arith.constant 0 : index
    %4 = vector.load %arg5[%c0_3, %c0_4] : memref<136x300xf32, #tpu.memory_space<vmem>>, vector<136x300xf32>
    %c0_5 = arith.constant 0 : index
    %c0_6 = arith.constant 0 : index
    %c0_7 = arith.constant 0 : index
    %5 = vector.load %arg2[%c0_5, %c0_6, %c0_7] : memref<5x300x18xf32, #tpu.memory_space<vmem>>, vector<1x300x18xf32>
    %6 = vector.shape_cast %5 : vector<1x300x18xf32> to vector<300x18xf32>
    %cst_8 = arith.constant dense<0.000000e+00> : vector<136x18xf32>
    %7 = tpu.matmul %4, %6, %cst_8 {dimension_numbers = #tpu.dot_dimension_numbers<[1], [0], [0], [1], [0, 0, 1, 1], [], []>} : vector<136x300xf32>, vector<300x18xf32>, vector<136x18xf32> -> vector<136x18xf32>
    %8 = vector.extract_strided_slice %7 {offsets = [4, 0], sizes = [128, 18], strides = [1, 1]} : vector<136x18xf32> to vector<128x18xf32>
    %c0_9 = arith.constant 0 : index
    %c0_10 = arith.constant 0 : index
    %9 = vector.load %arg6[%c0_9, %c0_10] : memref<128x18xf32, #tpu.memory_space<vmem>>, vector<128x18xf32>
    tpu.vector_store %arg6[%c0_9, %c0_10], %8 {strides = array<i32>} : memref<128x18xf32, #tpu.memory_space<vmem>>, vector<128x18xf32>,
    %c0_11 = arith.constant 0 : index
    %c0_12 = arith.constant 0 : index
    %10 = vector.load %arg5[%c0_11, %c0_12] : memref<136x300xf32, #tpu.memory_space<vmem>>, vector<136x300xf32>
    %c1 = arith.constant 1 : index
    %c0_13 = arith.constant 0 : index
    %c0_14 = arith.constant 0 : index
    %11 = vector.load %arg2[%c1, %c0_13, %c0_14] : memref<5x300x18xf32, #tpu.memory_space<vmem>>, vector<1x300x18xf32>
    %12 = vector.shape_cast %11 : vector<1x300x18xf32> to vector<300x18xf32>
    %cst_15 = arith.constant dense<0.000000e+00> : vector<136x18xf32>
    %13 = tpu.matmul %10, %12, %cst_15 {dimension_numbers = #tpu.dot_dimension_numbers<[1], [0], [0], [1], [0, 0, 1, 1], [], []>} : vector<136x300xf32>, vector<300x18xf32>, vector<136x18xf32> -> vector<136x18xf32>
    %14 = vector.extract_strided_slice %13 {offsets = [5, 0], sizes = [128, 18], strides = [1, 1]} : vector<136x18xf32> to vector<128x18xf32>
    %c0_16 = arith.constant 0 : index
    %c0_17 = arith.constant 0 : index
    %15 = vector.load %arg6[%c0_16, %c0_17] : memref<128x18xf32, #tpu.memory_space<vmem>>, vector<128x18xf32>
    %16 = arith.addf %15, %14 : vector<128x18xf32>
    %c0_18 = arith.constant 0 : index
    %c0_19 = arith.constant 0 : index
    %17 = vector.load %arg6[%c0_18, %c0_19] : memref<128x18xf32, #tpu.memory_space<vmem>>, vector<128x18xf32>
    tpu.vector_store %arg6[%c0_18, %c0_19], %16 {strides = array<i32>} : memref<128x18xf32, #tpu.memory_space<vmem>>, vector<128x18xf32>,
    %c0_20 = arith.constant 0 : index
    %c0_21 = arith.constant 0 : index
    %18 = vector.load %arg5[%c0_20, %c0_21] : memref<136x300xf32, #tpu.memory_space<vmem>>, vector<136x300xf32>
    %c2 = arith.constant 2 : index
    %c0_22 = arith.constant 0 : index
    %c0_23 = arith.constant 0 : index
    %19 = vector.load %arg2[%c2, %c0_22, %c0_23] : memref<5x300x18xf32, #tpu.memory_space<vmem>>, vector<1x300x18xf32>
    %20 = vector.shape_cast %19 : vector<1x300x18xf32> to vector<300x18xf32>
    %cst_24 = arith.constant dense<0.000000e+00> : vector<136x18xf32>
    %21 = tpu.matmul %18, %20, %cst_24 {dimension_numbers = #tpu.dot_dimension_numbers<[1], [0], [0], [1], [0, 0, 1, 1], [], []>} : vector<136x300xf32>, vector<300x18xf32>, vector<136x18xf32> -> vector<136x18xf32>
    %22 = vector.extract_strided_slice %21 {offsets = [6, 0], sizes = [128, 18], strides = [1, 1]} : vector<136x18xf32> to vector<128x18xf32>
    %c0_25 = arith.constant 0 : index
    %c0_26 = arith.constant 0 : index
    %23 = vector.load %arg6[%c0_25, %c0_26] : memref<128x18xf32, #tpu.memory_space<vmem>>, vector<128x18xf32>
    %24 = arith.addf %23, %22 : vector<128x18xf32>
    %c0_27 = arith.constant 0 : index
    %c0_28 = arith.constant 0 : index
    %25 = vector.load %arg6[%c0_27, %c0_28] : memref<128x18xf32, #tpu.memory_space<vmem>>, vector<128x18xf32>
    tpu.vector_store %arg6[%c0_27, %c0_28], %24 {strides = array<i32>} : memref<128x18xf32, #tpu.memory_space<vmem>>, vector<128x18xf32>,
    %c0_29 = arith.constant 0 : index
    %c0_30 = arith.constant 0 : index
    %26 = vector.load %arg5[%c0_29, %c0_30] : memref<136x300xf32, #tpu.memory_space<vmem>>, vector<136x300xf32>
    %c3 = arith.constant 3 : index
    %c0_31 = arith.constant 0 : index
    %c0_32 = arith.constant 0 : index
    %27 = vector.load %arg2[%c3, %c0_31, %c0_32] : memref<5x300x18xf32, #tpu.memory_space<vmem>>, vector<1x300x18xf32>
    %28 = vector.shape_cast %27 : vector<1x300x18xf32> to vector<300x18xf32>
    %cst_33 = arith.constant dense<0.000000e+00> : vector<136x18xf32>
    %29 = tpu.matmul %26, %28, %cst_33 {dimension_numbers = #tpu.dot_dimension_numbers<[1], [0], [0], [1], [0, 0, 1, 1], [], []>} : vector<136x300xf32>, vector<300x18xf32>, vector<136x18xf32> -> vector<136x18xf32>
    %30 = vector.extract_strided_slice %29 {offsets = [7, 0], sizes = [128, 18], strides = [1, 1]} : vector<136x18xf32> to vector<128x18xf32>
    %c0_34 = arith.constant 0 : index
    %c0_35 = arith.constant 0 : index
    %31 = vector.load %arg6[%c0_34, %c0_35] : memref<128x18xf32, #tpu.memory_space<vmem>>, vector<128x18xf32>
    %32 = arith.addf %31, %30 : vector<128x18xf32>
    %c0_36 = arith.constant 0 : index
    %c0_37 = arith.constant 0 : index
    %33 = vector.load %arg6[%c0_36, %c0_37] : memref<128x18xf32, #tpu.memory_space<vmem>>, vector<128x18xf32>
    tpu.vector_store %arg6[%c0_36, %c0_37], %32 {strides = array<i32>} : memref<128x18xf32, #tpu.memory_space<vmem>>, vector<128x18xf32>,
    %c0_38 = arith.constant 0 : index
    %c0_39 = arith.constant 0 : index
    %34 = vector.load %arg5[%c0_38, %c0_39] : memref<136x300xf32, #tpu.memory_space<vmem>>, vector<136x300xf32>
    %c4 = arith.constant 4 : index
    %c0_40 = arith.constant 0 : index
    %c0_41 = arith.constant 0 : index
    %35 = vector.load %arg2[%c4, %c0_40, %c0_41] : memref<5x300x18xf32, #tpu.memory_space<vmem>>, vector<1x300x18xf32>
    %36 = vector.shape_cast %35 : vector<1x300x18xf32> to vector<300x18xf32>
    %cst_42 = arith.constant dense<0.000000e+00> : vector<136x18xf32>
    %37 = tpu.matmul %34, %36, %cst_42 {dimension_numbers = #tpu.dot_dimension_numbers<[1], [0], [0], [1], [0, 0, 1, 1], [], []>} : vector<136x300xf32>, vector<300x18xf32>, vector<136x18xf32> -> vector<136x18xf32>
    %38 = vector.extract_strided_slice %37 {offsets = [8, 0], sizes = [128, 18], strides = [1, 1]} : vector<136x18xf32> to vector<128x18xf32>
    %c0_43 = arith.constant 0 : index
    %c0_44 = arith.constant 0 : index
    %39 = vector.load %arg6[%c0_43, %c0_44] : memref<128x18xf32, #tpu.memory_space<vmem>>, vector<128x18xf32>
    %40 = arith.addf %39, %38 : vector<128x18xf32>
    %c0_45 = arith.constant 0 : index
    %c0_46 = arith.constant 0 : index
    %41 = vector.load %arg6[%c0_45, %c0_46] : memref<128x18xf32, #tpu.memory_space<vmem>>, vector<128x18xf32>
    tpu.vector_store %arg6[%c0_45, %c0_46], %40 {strides = array<i32>} : memref<128x18xf32, #tpu.memory_space<vmem>>, vector<128x18xf32>,
    %42 = tpu.iota {dimensions = array<i32: 0>} : vector<16x18xi32>
    %43 = tpu.iota {dimensions = array<i32: 1>} : vector<16x18xi32>
    %c6_i32 = arith.constant 6 : i32
    %44 = vector.broadcast %c6_i32 : i32 to vector<16x18xi32>
    %45 = arith.cmpi sge, %43, %44 : vector<16x18xi32>
    %46 = arith.extui %45 : vector<16x18xi1> to vector<16x18xi32>
    %c11_i32 = arith.constant 11 : i32
    %47 = vector.broadcast %c11_i32 : i32 to vector<16x18xi32>
    %48 = arith.addi %47, %46 : vector<16x18xi32>
    %c12_i32 = arith.constant 12 : i32
    %49 = vector.broadcast %c12_i32 : i32 to vector<16x18xi32>
    %50 = arith.cmpi sge, %43, %49 : vector<16x18xi32>
    %51 = arith.extui %50 : vector<16x18xi1> to vector<16x18xi32>
    %52 = arith.addi %48, %51 : vector<16x18xi32>
    %53 = arith.cmpi slt, %42, %52 : vector<16x18xi32>
    %c0_47 = arith.constant 0 : index
    %c0_48 = arith.constant 0 : index
    %54 = vector.load %arg6[%c0_47, %c0_48] : memref<128x18xf32, #tpu.memory_space<vmem>>, vector<128x18xf32>
    %55 = vector.shape_cast %54 : vector<128x18xf32> to vector<8x16x18xf32>
    %56 = vector.shape_cast %53 : vector<16x18xi1> to vector<1x16x18xi1>
    %cst_49 = arith.constant 0xFF800000 : f32
    %57 = vector.shape_cast %56 : vector<1x16x18xi1> to vector<1x16x18xi1>
    %58 = vector.broadcast %57 : vector<1x16x18xi1> to vector<8x16x18xi1>
    %59 = vector.broadcast %cst_49 : f32 to vector<8x16x18xf32>
    %60 = arith.select %58, %55, %59 : vector<8x16x18xi1>, vector<8x16x18xf32>
    %cst_50 = arith.constant dense<0xFF800000> : vector<8x18xf32>
    %61 = vector.multi_reduction <maximumf>, %60, %cst_50 [1] : vector<8x16x18xf32> to vector<8x18xf32>
    %c0_51 = arith.constant 0 : index
    %c0_52 = arith.constant 0 : index
    %62 = vector.load %arg3[%c0_51, %c0_52] : memref<1x18xf32, #tpu.memory_space<vmem>>, vector<1x18xf32>
    %63 = vector.broadcast %62 : vector<1x18xf32> to vector<8x18xf32>
    %64 = arith.addf %61, %63 : vector<8x18xf32>
    %cst_53 = arith.constant 0.000000e+00 : f32
    %65 = vector.broadcast %cst_53 : f32 to vector<8x18xf32>
    %66 = arith.maximumf %64, %65 : vector<8x18xf32>
    %c0_54 = arith.constant 0 : index
    %c0_55 = arith.constant 0 : index
    %67 = vector.load %arg4[%c0_54, %c0_55] : memref<8x18xf32, #tpu.memory_space<vmem>>, vector<8x18xf32>
    tpu.vector_store %arg4[%c0_54, %c0_55], %66 {strides = array<i32>} : memref<8x18xf32, #tpu.memory_space<vmem>>, vector<8x18xf32>,
    return
  }
  func.func @transform_0(%arg0: i32) -> (i32, i32, i32) {
    %c0_i32 = arith.constant 0 : i32
    %c0_i32_0 = arith.constant 0 : i32
    %c0_i32_1 = arith.constant 0 : i32
    return %arg0, %c0_i32, %c0_i32_0 : i32, i32, i32
  }
  func.func @transform_1(%arg0: i32) -> (i32, i32, i32) {
    %c0_i32 = arith.constant 0 : i32
    %c0_i32_0 = arith.constant 0 : i32
    %c0_i32_1 = arith.constant 0 : i32
    %c0_i32_2 = arith.constant 0 : i32
    return %c0_i32, %c0_i32_0, %c0_i32_1 : i32, i32, i32
  }
  func.func @transform_2(%arg0: i32) -> (i32, i32) {
    %c0_i32 = arith.constant 0 : i32
    %c0_i32_0 = arith.constant 0 : i32
    %c0_i32_1 = arith.constant 0 : i32
    return %c0_i32, %c0_i32_0 : i32, i32
  }
  func.func @transform_3(%arg0: i32) -> (i32, i32) {
    %c0_i32 = arith.constant 0 : i32
    %c0_i32_0 = arith.constant 0 : i32
    return %arg0, %c0_i32 : i32, i32
  }
}

</mosaic_0001>

<bundles_post_ra>
// kernel: net_forward_pallas.1
= control target key start
LH: loop header
LB: loop body
LE: loop exit
PB: predicated region body
PF: predicated region fallthrough
CT: control target
= control target key end

     0   :  { %8 = vsyncpa [#allocation5], 0  ;;  %s5979_s0 = inlined_call_operand.vmem [shape: f32[16,9,300], index: 0, kind: input, shape index: {}]   ;;  %s5980_s1 = inlined_call_operand.vmem [shape: f32[5,300,18], index: 1, kind: input, shape index: {}]   ;;  %s5981_s2 = inlined_call_operand.vmem [shape: f32[1,18], index: 2, kind: input, shape index: {}]   ;;  %s5982_s3 = inlined_call_operand.hbm [shape: f32[16,18], index: 3, kind: output, shape index: {}]  }
   0x1   :  { %10 = vsyncpa [#allocation5 + $0x1], 0  ;;  %s3944_s12 = smov 0   ;;  %s3946_s13 = smov 0  }
   0x2   :  { %s3948_s14 = smov 0   ;;  %s3950_s15 = smov 0  }
   0x3 LB: > { %s3965_s16 = sadd.s32 4294967295, %s3914_s15   ;;  %s3098_s17 = sadd.s32 4294967294, %s3914_s15   ;;  %s3914_s15 = sphi %s3950_s15, %s6014_s15   ;;  %s3910_s14 = sphi %s3948_s14, %s6013_s14   ;;  %s3906_s13 = sphi %s3946_s13, %s6012_s13   ;;  %s3902_s12 = sphi %s3944_s12, %s6011_s12  }
   0x4   : > { %s3969_s18 = sadd.s32 1, %s3914_s15   ;;  %s91_s19 = sadd.s32 1, %s3910_s14 }
   0x5   : > { %s88_s20 = ssub.s32 %s3914_s15, %s3969_s18  ;;  %p101_p0 = scmp.ne.s32.totalorder %s3910_s14, %s3906_s13 }
   0x6   : > { %p89_p1 = scmp.eq.s32.totalorder %s88_s20, 0  ;;  %p102_p2 = scmp.eq.s32.totalorder %s3965_s16, 1 }
   0x7   : > { %p107_p3 = scmp.ne.s32.totalorder %s3906_s13, %s3902_s12  ;;  %p108_p4 = scmp.eq.s32.totalorder %s3098_s17, 1 }
   0x8   : > { %s3980_s21 = scalar_select %p89_p1, %s3910_s14, %s91_s19  }
   0x9   : > { %p3982_p5 = por %p102_p2, %p101_p0  ;;  %p3986_p6 = por %p108_p4, %p107_p3 }
   0xa   : > { %p3101_p7 = scmp.ge.s32.totalorder %s3914_s15, 1  ;;  %p142_p8 = scmp.lt.s32.totalorder %s3914_s15, 3 }
   0xc   : > { %p143_p9 = pnand %p3101_p7, %p142_p8 }
   0xe   : > { %146 = sbr.rel (%p143_p9) target bundleno = 678 (0x2a6), region = 32 }
  0x13   : > { %s164_s24 = sand.u32 1, %s3906_s13   ;;  %s3103_s25 = sshll.u32 %s3965_s16, 3  ;;  %vm176_vm0 = vcmask 359424   ;;  %v3920_v0 = vmov 0.0  }
  0x14   : > { %s3996_s26 = sshll.u32 %s164_s24, 3  ;;  %p168_p10 = scmp.lt.s32.totalorder %s3103_s25, 15  ;;  %174 = vst [vmem:[#allocation2] sm:$0xff] %v3920_v0  ;;  %175 = vst [vmem:[#allocation2 + $0x8] sm:$0xff] %v3920_v0 }
  0x15   : > { %177 = vst.msk [vmem:[#allocation2 + $0x10] sm:$0xff] %vm176_vm0, %v3920_v0  ;;  %s166_s4 = scalar_lea.vmem [#allocation4], %s3996_s26  ;;  %s4008_s5 = smov 0  }
  0x16   : > { %s6016_s25 = smov (!%p168_p10, %s3103_s25), 15 }
  0x17   : > { %s3799_s27 = smul.u32 48, %s6016_s25 }
  0x19   : > { %s4005_s30 = scalar_lea.vmem %s5979_s0, %s3799_s27 }
  0x1a LB: >> { %s3105_s6 = sshll.u32 %s3918_s5, 4  ;;  %s3355_s7 = smul.u32 48, %s3918_s5  ;;  %vm195_vm1 = vcmask 1040384   ;;  %s3918_s5 = sphi %s4008_s5, %s183_s5  }
  0x1b   : >> { %s185_s8 = sadd.s32 8, %s3105_s6  ;;  %s183_s5 = sadd.s32 1, %s3918_s5  }
  0x1c   : >> { %s188_s9 = scalar_lea.vmem %s4005_s30, %s3355_s7  ;;  %s199_s10 = sshra.s32 %s185_s8, 3 }
  0x1d   : >> { %v189_v1 = vld [vmem:[%s188_s9] sm:$0xff]  ;;  %s3356_s11 = smul.u32 24, %s199_s10  ;;  %v190_v2 = vld [vmem:[%s188_s9 + $0x8] sm:$0xff]  ;;  %v191_v3 = vld [vmem:[%s188_s9 + $0x10] sm:$0xff]  ;;  %p180_p11 = scmp.ge.s32.totalorder %s183_s5, 8  }
  0x1e   : >> { %v192_v4 = vld [vmem:[%s188_s9 + $0x18] sm:$0x1]  ;;  %v193_v5 = vld [vmem:[%s188_s9 + $0x20] sm:$0x1]  ;;  %v194_v6 = vld [vmem:[%s188_s9 + $0x28] sm:$0x1]  ;;  %354 = vmatprep.subr.mxu0 (%p180_p11), %v3920_v0  ;;  %3472 = vmatprep.subr.mxu1 (%p180_p11), %v3920_v0 }
  0x1f   : >> { %v196_v7 = vsel %vm195_vm1, %v192_v4, 0.0  ;;  %v197_v8 = vsel %vm195_vm1, %v193_v5, 0.0  ;;  %v198_v9 = vsel %vm195_vm1, %v194_v6, 0.0  ;;  %s203_s17 = scalar_lea.vmem [#allocation2], %s3356_s11  ;;  %182 = sbr.rel (!%p180_p11) target bundleno = 26 (0x1a), region = 80  ;;  %v276_v10 = vld [vmem:[%s5980_s1 + $0x78] sm:$0xff] (%p180_p11) }
  0x20   : >> { %204 = vst [vmem:[%s203_s17] sm:$0xff] %v189_v1  ;;  %205 = vst [vmem:[%s203_s17 + $0x8] sm:$0xff] %v190_v2  ;;  %v298_v11 = vld [vmem:[%s5980_s1 + $0x128] sm:$0xf] (%p180_p11)  ;;  %vm350_vm2 = vcmask (%p180_p11), 1043456   ;;  %v275_v12 = vld [vmem:[%s5980_s1 + $0x70] sm:$0xff] (%p180_p11)  ;;  %355 = vmatpush1.msra.mxu0 (%p180_p11), %v276_v10  ;;  %vm3921_vm3 = vmmov (%p180_p11), 0  }
  0x21   : >> { %206 = vst.msk [vmem:[%s203_s17 + $0x10] sm:$0xff] %vm176_vm0, %v191_v3  ;;  %207 = vst [vmem:[%s203_s17 + $0x18] sm:$0xff] %v196_v7  ;;  %3473 = vmatpush3.msk.msra.mxu1 (%p180_p11), %vm350_vm2, %v298_v11  ;;  %v297_v13 = vld [vmem:[%s5980_s1 + $0x120] sm:$0xff] (%p180_p11)  ;;  %356 = vmatprep.subr.mxu0 (%p180_p11), %v3920_v0  ;;  %v274_v14 = vld [vmem:[%s5980_s1 + $0x68] sm:$0xff] (%p180_p11)  ;;  %vm654_vm4 = vcmask (%p180_p11), 146436   ;;  %vm656_vm5 = vcmask (%p180_p11), 146432  }
  0x22   : >> { %208 = vst [vmem:[%s203_s17 + $0x20] sm:$0xff] %v197_v8  ;;  %209 = vst.msk [vmem:[%s203_s17 + $0x28] sm:$0xff] %vm176_vm0, %v198_v9  ;;  %3474 = vmatprep.subr.mxu1 (%p180_p11), %v3920_v0  ;;  %v296_v15 = vld [vmem:[%s5980_s1 + $0x118] sm:$0xff] (%p180_p11)  ;;  %357 = vmatpush1.msra.mxu0 (%p180_p11), %v275_v12  ;;  %v273_v16 = vld [vmem:[%s5980_s1 + $0x60] sm:$0xff] (%p180_p11)  ;;  %vm672_vm6 = vcmask (%p180_p11), 142336   ;;  %vm1151_vm7 = vcmask (%p180_p11), 1042432  }
  0x23   : > { %3475 = vmatpush3.msra.mxu1 (%p180_p11), %v297_v13  ;;  %358 = vmatprep.subr.mxu0 (%p180_p11), %v3920_v0  ;;  %v295_v17 = vld [vmem:[%s5980_s1 + $0x110] sm:$0xff] (%p180_p11)  ;;  %v272_v18 = vld [vmem:[%s5980_s1 + $0x58] sm:$0xff] (%p180_p11)  ;;  %v294_v19 = vld [vmem:[%s5980_s1 + $0x108] sm:$0xff] (%p180_p11)  ;;  %vm1710_vm8 = vcmask (%p180_p11), 1041408   ;;  %vm2994_vm13 = vcmask (%p180_p11), 1041409   ;;  %vm2997_vm14 = vcmask (%p180_p11), 1042434  }
  0x24   : > { %3476 = vmatprep.subr.mxu1 %v3920_v0  ;;  %359 = vmatpush1.msra.mxu0 %v274_v14  ;;  %v271_v20 = vld [vmem:[%s5980_s1 + $0x50] sm:$0xff]  ;;  %v293_v21 = vld [vmem:[%s5980_s1 + $0x100] sm:$0xff]  ;;  %v270_v23 = vld [vmem:[%s5980_s1 + $0x48] sm:$0xff]  ;;  %vm3000_vm15 = vcmask 1043459   ;;  %s3352_s5 = sshll.u32 %s3965_s16, 7  ;;  %s3030_s6 = sshll.u32 %s166_s4, 4  ;;  %s3031_s6 = int_to_ptr.vmem [resolvable:$true] %s3030_s6 }
  0x25   : > { %3477 = vmatpush3.msra.mxu1 %v296_v15  ;;  %360 = vmatprep.subr.mxu0 %v3920_v0  ;;  %v269_v24 = vld [vmem:[%s5980_s1 + $0x40] sm:$0xff]  ;;  %v3141_v25 = vld [vmem:[%s5980_s1 + $0x1a8] sm:$0xff]  ;;  %v268_v27 = vld [vmem:[%s5980_s1 + $0x38] sm:$0xff]  ;;  %s5939_s9 = scalar_lea.hbm %s5982_s3, %s3352_s5  ;;  %s3017_s16 = scalar_lea.sflag [#allocation5], %s164_s24 }
  0x26   : > { %3478 = vmatprep.subr.mxu1 %v3920_v0  ;;  %361 = vmatpush1.msra.mxu0 %v273_v16  ;;  %v267_v28 = vld [vmem:[%s5980_s1 + $0x30] sm:$0xff]  ;;  %v3140_v29 = vld [vmem:[%s5980_s1 + $0x1a0] sm:$0xff]  ;;  %v266_v31 = vld [vmem:[%s5980_s1 + $0x28] sm:$0xff]  ;;  %s3850_s10 = scalar_lea.vmem %s3031_s6, 128  ;;  %s3923_s11 = smov [#allocation4]  }
  0x27   : > { %3479 = vmatpush3.msra.mxu1 %v295_v17  ;;  %362 = vmatprep.subr.mxu0 %v3920_v0  ;;  %v3139_v32 = vld [vmem:[%s5980_s1 + $0x198] sm:$0xff]  ;;  %v265_v33 = vld [vmem:[%s5980_s1 + $0x20] sm:$0xff]  ;;  %v3138_v34 = vld [vmem:[%s5980_s1 + $0x190] sm:$0xff]  ;;  %p3851_p12 = scmp.ne.s32.totalorder %s3031_s6, %s3850_s10  ;;  %s3854_s17 = sshll.u32 %s3923_s11, 4  ;;  %s3855_s17 = int_to_ptr.vmem [resolvable:$false] %s3854_s17 }
  0x28   : > { %3480 = vmatprep.subr.mxu1 %v3920_v0  ;;  %363 = vmatpush1.msra.mxu0 %v272_v18  ;;  %v264_v36 = vld [vmem:[%s5980_s1 + $0x18] sm:$0xff]  ;;  %v3137_v37 = vld [vmem:[%s5980_s1 + $0x188] sm:$0xff]  ;;  %v263_v38 = vld [vmem:[%s5980_s1 + $0x10] sm:$0xff]  ;;  %s3856_s19 = scalar_lea.vmem %s3855_s17, 256  ;;  %p3857_p1 = scmp.lt.s32.totalorder %s3031_s6, %s3855_s17 }
  0x29   : > { %3481 = vmatpush3.msra.mxu1 %v294_v19  ;;  %364 = vmatprep.subr.mxu0 %v3920_v0  ;;  %v4068_v22 = vld [vmem:[#allocation2 + $0x10] sm:$0xff]  ;;  %v4087_v26 = vld [vmem:[#allocation2 + $0x28] sm:$0xff]  ;;  %v4104_v30 = vld [vmem:[#allocation2 + $0x40] sm:$0xff]  ;;  %p3852_p13 = pnand %p3851_p12, %p3982_p5  ;;  %p3858_p2 = scmp.lt.s32.totalorder %s3856_s19, %s3850_s10 }
  0x2a   : > { %3482 = vmatprep.subr.mxu1 %v3920_v0  ;;  %365 = vmatpush1.msra.mxu0 %v271_v20  ;;  %v4126_v35 = vld [vmem:[#allocation2 + $0x58] sm:$0xff]  ;;  %v3136_v39 = vld [vmem:[%s5980_s1 + $0x180] sm:$0xff]  ;;  %v4148_v40 = vld [vmem:[#allocation2 + $0x70] sm:$0xff] }
  0x2b   : > { %3483 = vmatpush3.msra.mxu1 %v293_v21  ;;  %3484 = vmatprep.mubr.msk.f32.mxu1 %vm3921_vm3, %v3920_v0  ;;  %v262_v41 = vld [vmem:[%s5980_s1 + $0x8] sm:$0xff]  ;;  %v3135_v42 = vld [vmem:[%s5980_s1 + $0x178] sm:$0xff]  ;;  %v261_v43 = vld [vmem:[%s5980_s1] sm:$0xff]  ;;  %p3853_p0 = pneg %p3852_p13  ;;  %p3859_p3 = por %p3858_p2, %p3857_p1 }
  0x2c   : > { %366 = vmatprep.subr.mxu0 %v3920_v0  ;;  %3485 = vmatmul.mubr.msk.f32.vlgmr.msra.gmra.mxu1 %vm176_vm0, %v4068_v22  ;;  %v3134_v44 = vld [vmem:[%s5980_s1 + $0x170] sm:$0xff]  ;;  %v4170_v45 = vld [vmem:[#allocation2 + $0x88] sm:$0xff]  ;;  %v292_v46 = vld [vmem:[%s5980_s1 + $0xf8] sm:$0xff] }
  0x2d   : > { %367 = vmatpush1.msra.mxu0 %v270_v23  ;;  %3487 = vmatprep.mubr.msk.f32.mxu1 %vm3921_vm3, %v3920_v0  ;;  %v3133_v47 = vld [vmem:[%s5980_s1 + $0x168] sm:$0xff]  ;;  %v291_v48 = vld [vmem:[%s5980_s1 + $0xf0] sm:$0xff]  ;;  %v3132_v49 = vld [vmem:[%s5980_s1 + $0x160] sm:$0xff]  ;;  %p3860_p4 = pnand %p3859_p3, %p3853_p0 }
  0x2e   : > { %368 = vmatprep.subr.mxu0 %v3920_v0  ;;  %818 = vmatprep.subr.mxu1 %v3920_v0  ;;  %v4192_v50 = vld [vmem:[#allocation2 + $0xa0] sm:$0xff]  ;;  %v290_v51 = vld [vmem:[%s5980_s1 + $0xe8] sm:$0xff]  ;;  %v3131_v52 = vld [vmem:[%s5980_s1 + $0x158] sm:$0xff] }
  0x2f   : > { %369 = vmatpush1.msra.mxu0 %v269_v24  ;;  %819 = vmatpush1.msra.mxu1 %v3141_v25  ;;  %v289_v53 = vld [vmem:[%s5980_s1 + $0xe0] sm:$0xff]  ;;  %v3130_v54 = vld [vmem:[%s5980_s1 + $0x150] sm:$0xff]  ;;  %v4214_v55 = vld [vmem:[#allocation2 + $0xb8] sm:$0xff] }
  0x30   : > { %370 = vmatprep.subr.mxu0 %v3920_v0  ;;  %3488 = vmatmul.mubr.msk.f32.gmra.mxu1 %vm176_vm0, %v4087_v26  ;;  %v288_v56 = vld [vmem:[%s5980_s1 + $0xd8] sm:$0xff]  ;;  %v3129_v57 = vld [vmem:[%s5980_s1 + $0x148] sm:$0xff]  ;;  %v287_v58 = vld [vmem:[%s5980_s1 + $0xd0] sm:$0xff] }
  0x31   : > { %371 = vmatpush1.msra.mxu0 %v268_v27  ;;  %820 = vmatprep.subr.mxu1 %v3920_v0  ;;  %v3128_v59 = vld [vmem:[%s5980_s1 + $0x140] sm:$0xff]  ;;  %v4236_v60 = vld [vmem:[#allocation2 + $0xd0] sm:$0xff]  ;;  %v286_v61 = vld [vmem:[%s5980_s1 + $0xc8] sm:$0xff] }
  0x32   : > { %372 = vmatprep.subr.mxu0 %v3920_v0  ;;  %3490 = vmatprep.mubr.msk.f32.mxu1 %vm3921_vm3, %v3920_v0  ;;  %v3127_v62 = vld [vmem:[%s5980_s1 + $0x138] sm:$0xff]  ;;  %v285_v63 = vld [vmem:[%s5980_s1 + $0xc0] sm:$0xff]  ;;  %v3126_v1 = vld [vmem:[%s5980_s1 + $0x130] sm:$0xff] }
  0x33   : > { %373 = vmatpush1.msra.mxu0 %v267_v28  ;;  %821 = vmatpush1.msra.mxu1 %v3140_v29  ;;  %v4258_v2 = vld [vmem:[#allocation2 + $0xe8] sm:$0xff]  ;;  %v284_v3 = vld [vmem:[%s5980_s1 + $0xb8] sm:$0xff]  ;;  %v283_v5 = vld [vmem:[%s5980_s1 + $0xb0] sm:$0xff] }
  0x34   : > { %374 = vmatprep.subr.mxu0 %v3920_v0  ;;  %3491 = vmatmul.mubr.msk.f32.gmra.mxu1 %vm176_vm0, %v4104_v30  ;;  %v3157_v4 = vld [vmem:[%s5980_s1 + $0x228] sm:$0xff]  ;;  %v3156_v6 = vld [vmem:[%s5980_s1 + $0x220] sm:$0xff]  ;;  %v3155_v9 = vld [vmem:[%s5980_s1 + $0x218] sm:$0xff] }
  0x35   : > { %822 = vmatprep.subr.mxu1 %v3920_v0  ;;  %375 = vmatpush1.msra.mxu0 %v266_v31  ;;  %v4280_v7 = vld [vmem:[#allocation2 + $0x100] sm:$0xff]  ;;  %v282_v8 = vld [vmem:[%s5980_s1 + $0xa8] sm:$0xff]  ;;  %v3154_v11 = vld [vmem:[%s5980_s1 + $0x210] sm:$0xff] }
  0x36   : > { %823 = vmatpush1.msra.mxu1 %v3139_v32  ;;  %376 = vmatprep.subr.mxu0 %v3920_v0  ;;  %v281_v10 = vld [vmem:[%s5980_s1 + $0xa0] sm:$0xff]  ;;  %v4302_v12 = vld [vmem:[#allocation2 + $0x118] sm:$0xff]  ;;  %v3153_v14 = vld [vmem:[%s5980_s1 + $0x208] sm:$0xff] }
  0x37   : > { %824 = vmatprep.subr.mxu1 %v3920_v0  ;;  %377 = vmatpush1.msra.mxu0 %v265_v33  ;;  %v280_v13 = vld [vmem:[%s5980_s1 + $0x98] sm:$0xff]  ;;  %v279_v15 = vld [vmem:[%s5980_s1 + $0x90] sm:$0xff]  ;;  %v3152_v16 = vld [vmem:[%s5980_s1 + $0x200] sm:$0xff] }
  0x38   : > { %3493 = vmatprep.mubr.msk.f32.mxu1 %vm3921_vm3, %v3920_v0  ;;  %825 = vmatpush1.msra.mxu1 %v3138_v34  ;;  %v4324_v17 = vld [vmem:[#allocation2 + $0x130] sm:$0xff]  ;;  %v278_v18 = vld [vmem:[%s5980_s1 + $0x88] sm:$0xff]  ;;  %v3151_v19 = vld [vmem:[%s5980_s1 + $0x1f8] sm:$0xff] }
  0x39   : > { %378 = vmatprep.subr.mxu0 %v3920_v0  ;;  %3494 = vmatmul.mubr.msk.f32.gmra.mxu1 %vm176_vm0, %v4126_v35  ;;  %v277_v20 = vld [vmem:[%s5980_s1 + $0x80] sm:$0xff]  ;;  %v4341_v21 = vld [vmem:[#allocation2 + $0x8] sm:$0xff]  ;;  %v3150_v23 = vld [vmem:[%s5980_s1 + $0x1f0] sm:$0xff] }
  0x3a   : > { %826 = vmatprep.subr.mxu1 %v3920_v0  ;;  %379 = vmatpush1.msra.mxu0 %v264_v36  ;;  %v4348_v24 = vld [vmem:[#allocation2] sm:$0xff]  ;;  %v4350_v25 = vld [vmem:[#allocation2 + $0x148] sm:$0xff]  ;;  %v3163_v28 = vld [vmem:[%s5980_s1 + $0x258] sm:$0xf] }
  0x3b   : > { %827 = vmatpush1.msra.mxu1 %v3137_v37  ;;  %380 = vmatprep.subr.mxu0 %v3920_v0  ;;  %v3149_v27 = vld [vmem:[%s5980_s1 + $0x1e8] sm:$0xff]  ;;  %v4364_v29 = vld [vmem:[#allocation2 + $0x20] sm:$0xff]  ;;  %v4372_v32 = vld [vmem:[#allocation2 + $0x18] sm:$0xff] }
  0x3c   : > { %828 = vmatprep.subr.mxu1 %v3920_v0  ;;  %381 = vmatpush1.msra.mxu0 %v263_v38  ;;  %v3148_v31 = vld [vmem:[%s5980_s1 + $0x1e0] sm:$0xff]  ;;  %v4378_v34 = vld [vmem:[#allocation2 + $0x38] sm:$0xff]  ;;  %v3146_v37 = vld [vmem:[%s5980_s1 + $0x1d0] sm:$0xff] }
  0x3d   : > { %3496 = vmatprep.mubr.msk.f32.mxu1 %vm3921_vm3, %v3920_v0  ;;  %829 = vmatpush1.msra.mxu1 %v3136_v39  ;;  %v4374_v33 = vld [vmem:[#allocation2 + $0x160] sm:$0xff]  ;;  %v3147_v36 = vld [vmem:[%s5980_s1 + $0x1d8] sm:$0xff]  ;;  %v4393_v38 = vld [vmem:[#allocation2 + $0x30] sm:$0xff] }
  0x3e   : > { %382 = vmatprep.subr.mxu0 %v3920_v0  ;;  %3497 = vmatmul.mubr.msk.f32.gmra.mxu1 %vm176_vm0, %v4148_v40  ;;  %v4397_v39 = vld [vmem:[#allocation2 + $0x178] sm:$0xff] }
  0x3f   : > { %830 = vmatprep.subr.mxu1 %v3920_v0  ;;  %383 = vmatpush1.msra.mxu0 %v262_v41  ;;  %v3145_v41 = vld [vmem:[%s5980_s1 + $0x1c8] sm:$0xff] }
  0x40   : > { %831 = vmatpush1.msra.mxu1 %v3135_v42  ;;  %384 = vmatprep.subr.mxu0 %v3920_v0  ;;  %v4403_v42 = vld [vmem:[#allocation2 + $0x50] sm:$0xff] }
  0x41   : > { %832 = vmatprep.subr.mxu1 %v3920_v0  ;;  %385 = vmatpush1.msra.mxu0 %v261_v43  ;;  %v3144_v43 = vld [vmem:[%s5980_s1 + $0x1c0] sm:$0xff] }
  0x42   : > { %3499 = vmatprep.mubr.msk.f32.mxu1 %vm3921_vm3, %v3920_v0  ;;  %833 = vmatpush1.msra.mxu1 %v3134_v44  ;;  %v4413_v44 = vld [vmem:[#allocation2 + $0x48] sm:$0xff] }
  0x43   : > { %386 = vmatprep.subr.mxu0 %v3920_v0  ;;  %3500 = vmatmul.mubr.msk.f32.gmra.mxu1 %vm176_vm0, %v4170_v45 }
  0x44   : > { %834 = vmatprep.subr.mxu1 %v3920_v0  ;;  %387 = vmatpush2.msra.mxu0 %v292_v46  ;;  %v4416_v46 = vld [vmem:[#allocation2 + $0x190] sm:$0xff] }
  0x45   : > { %835 = vmatpush1.msra.mxu1 %v3133_v47  ;;  %388 = vmatprep.subr.mxu0 %v3920_v0  ;;  %v3143_v47 = vld [vmem:[%s5980_s1 + $0x1b8] sm:$0xff] }
  0x46   : > { %836 = vmatprep.subr.mxu1 %v3920_v0  ;;  %389 = vmatpush2.msra.mxu0 %v291_v48  ;;  %v3162_v48 = vld [vmem:[%s5980_s1 + $0x250] sm:$0xff] }
  0x47   : > { %3502 = vmatprep.mubr.msk.f32.mxu1 %vm3921_vm3, %v3920_v0  ;;  %837 = vmatpush1.msra.mxu1 %v3132_v49  ;;  %v4428_v49 = vld [vmem:[#allocation2 + $0x68] sm:$0xff] }
  0x48   : > { %390 = vmatprep.subr.mxu0 %v3920_v0  ;;  %3503 = vmatmul.mubr.msk.f32.gmra.mxu1 %vm176_vm0, %v4192_v50 }
  0x49   : > { %838 = vmatprep.subr.mxu1 %v3920_v0  ;;  %391 = vmatpush2.msra.mxu0 %v290_v51  ;;  %v3142_v51 = vld [vmem:[%s5980_s1 + $0x1b0] sm:$0xff] }
  0x4a   : > { %839 = vmatpush1.msra.mxu1 %v3131_v52  ;;  %392 = vmatprep.subr.mxu0 %v3920_v0  ;;  %v4436_v52 = vld [vmem:[#allocation2 + $0x60] sm:$0xff] }
  0x4b   : > { %840 = vmatprep.subr.mxu1 %v3920_v0  ;;  %393 = vmatpush2.msra.mxu0 %v289_v53  ;;  %v4440_v53 = vld [vmem:[#allocation2 + $0x80] sm:$0xff] }
  0x4c   : > { %3505 = vmatprep.mubr.msk.f32.mxu1 %vm3921_vm3, %v3920_v0  ;;  %841 = vmatpush1.msra.mxu1 %v3130_v54  ;;  %v3197_v54 = vld [vmem:[%s5980_s1 + $0x2d8] sm:$0xff] }
  0x4d   : > { %394 = vmatprep.subr.mxu0 %v3920_v0  ;;  %3506 = vmatmul.mubr.msk.f32.gmra.mxu1 %vm176_vm0, %v4214_v55 }
  0x4e   : > { %842 = vmatprep.subr.mxu1 %v3920_v0  ;;  %395 = vmatpush2.msra.mxu0 %v288_v56  ;;  %v3161_v56 = vld [vmem:[%s5980_s1 + $0x248] sm:$0xff] }
  0x4f   : > { %843 = vmatpush1.msra.mxu1 %v3129_v57  ;;  %396 = vmatprep.subr.mxu0 %v3920_v0  ;;  %v4453_v57 = vld [vmem:[#allocation2 + $0x78] sm:$0xff] }
  0x50   : > { %844 = vmatprep.subr.mxu1 %v3920_v0  ;;  %397 = vmatpush2.msra.mxu0 %v287_v58  ;;  %v4456_v58 = vld [vmem:[#allocation2 + $0x98] sm:$0xff] }
  0x51   : > { %3508 = vmatprep.mubr.msk.f32.mxu1 %vm3921_vm3, %v3920_v0  ;;  %845 = vmatpush1.msra.mxu1 %v3128_v59  ;;  %v3196_v59 = vld [vmem:[%s5980_s1 + $0x2d0] sm:$0xff] }
  0x52   : > { %398 = vmatprep.subr.mxu0 %v3920_v0  ;;  %3509 = vmatmul.mubr.msk.f32.gmra.mxu1 %vm176_vm0, %v4236_v60 }
  0x53   : > { %846 = vmatprep.subr.mxu1 %v3920_v0  ;;  %399 = vmatpush2.msra.mxu0 %v286_v61  ;;  %v4466_v61 = vld [vmem:[#allocation2 + $0x90] sm:$0xff] }
  0x54   : > { %847 = vmatpush1.msra.mxu1 %v3127_v62  ;;  %400 = vmatprep.subr.mxu0 %v3920_v0  ;;  %v3195_v62 = vld [vmem:[%s5980_s1 + $0x2c8] sm:$0xff] }
  0x55   : > { %848 = vmatprep.subr.mxu1 %v3920_v0  ;;  %401 = vmatpush2.msra.mxu0 %v285_v63  ;;  %v4472_v63 = vld [vmem:[#allocation2 + $0xb0] sm:$0xff] }
  0x56   : > { %3511 = vmatprep.mubr.msk.f32.mxu1 %vm3921_vm3, %v3920_v0  ;;  %849 = vmatpush1.msra.mxu1 %v3126_v1  ;;  %v3194_v1 = vld [vmem:[%s5980_s1 + $0x2c0] sm:$0xff] }
  0x57   : > { %402 = vmatprep.subr.mxu0 %v3920_v0  ;;  %3512 = vmatmul.mubr.msk.f32.gmra.mxu1 %vm176_vm0, %v4258_v2 }
  0x58   : > { %850 = vmatprep.subr.mxu1 %v3920_v0  ;;  %403 = vmatpush2.msra.mxu0 %v284_v3  ;;  %v3160_v3 = vld [vmem:[%s5980_s1 + $0x240] sm:$0xff] }
  0x59   : > { %851 = vmatpush2.msra.mxu1 %v3157_v4  ;;  %404 = vmatprep.subr.mxu0 %v3920_v0  ;;  %v4485_v4 = vld [vmem:[#allocation2 + $0xa8] sm:$0xff] }
  0x5a   : > { %852 = vmatprep.subr.mxu1 %v3920_v0  ;;  %405 = vmatpush2.msra.mxu0 %v283_v5  ;;  %v4489_v5 = vld [vmem:[#allocation2 + $0xc8] sm:$0xff] }
  0x5b   : > { %3514 = vmatprep.mubr.msk.f32.mxu1 %vm3921_vm3, %v3920_v0  ;;  %853 = vmatpush2.msra.mxu1 %v3156_v6  ;;  %v3193_v6 = vld [vmem:[%s5980_s1 + $0x2b8] sm:$0xff] }
  0x5c   : > { %406 = vmatprep.subr.mxu0 %v3920_v0  ;;  %3515 = vmatmul.mubr.msk.f32.gmra.mxu1 %vm176_vm0, %v4280_v7 }
  0x5d   : > { %854 = vmatprep.subr.mxu1 %v3920_v0  ;;  %407 = vmatpush2.msra.mxu0 %v282_v8  ;;  %v3192_v8 = vld [vmem:[%s5980_s1 + $0x2b0] sm:$0xff] }
  0x5e   : > { %855 = vmatpush2.msra.mxu1 %v3155_v9  ;;  %408 = vmatprep.subr.mxu0 %v3920_v0  ;;  %v4501_v9 = vld [vmem:[#allocation2 + $0xc0] sm:$0xff] }
  0x5f   : > { %856 = vmatprep.subr.mxu1 %v3920_v0  ;;  %409 = vmatpush2.msra.mxu0 %v281_v10  ;;  %v3191_v10 = vld [vmem:[%s5980_s1 + $0x2a8] sm:$0xff] }
  0x60   : > { %3517 = vmatprep.mubr.msk.f32.mxu1 %vm3921_vm3, %v3920_v0  ;;  %857 = vmatpush2.msra.mxu1 %v3154_v11  ;;  %v4508_v11 = vld [vmem:[#allocation2 + $0xe0] sm:$0xff] }
  0x61   : > { %410 = vmatprep.subr.mxu0 %v3920_v0  ;;  %3518 = vmatmul.mubr.msk.f32.gmra.mxu1 %vm176_vm0, %v4302_v12 }
  0x62   : > { %858 = vmatprep.subr.mxu1 %v3920_v0  ;;  %411 = vmatpush2.msra.mxu0 %v280_v13  ;;  %v3190_v13 = vld [vmem:[%s5980_s1 + $0x2a0] sm:$0xff] }
  0x63   : > { %859 = vmatpush2.msra.mxu1 %v3153_v14  ;;  %412 = vmatprep.subr.mxu0 %v3920_v0  ;;  %v4517_v14 = vld [vmem:[#allocation2 + $0xd8] sm:$0xff] }
  0x64   : > { %860 = vmatprep.subr.mxu1 %v3920_v0  ;;  %413 = vmatpush2.msra.mxu0 %v279_v15  ;;  %v3189_v15 = vld [vmem:[%s5980_s1 + $0x298] sm:$0xff] }
  0x65   : > { %3520 = vmatprep.mubr.msk.f32.mxu1 %vm3921_vm3, %v3920_v0  ;;  %861 = vmatpush2.msra.mxu1 %v3152_v16  ;;  %v4525_v16 = vld [vmem:[#allocation2 + $0xf8] sm:$0xff] }
  0x66   : > { %414 = vmatprep.subr.mxu0 %v3920_v0  ;;  %3521 = vmatmul.mubr.msk.f32.gmra.mxu1 %vm176_vm0, %v4324_v17 }
  0x67   : > { %862 = vmatprep.subr.mxu1 %v3920_v0  ;;  %415 = vmatpush2.msra.mxu0 %v278_v18  ;;  %v3188_v18 = vld [vmem:[%s5980_s1 + $0x290] sm:$0xff] }
  0x68   : > { %863 = vmatpush2.msra.mxu1 %v3151_v19  ;;  %416 = vmatprep.subr.mxu0 %v3920_v0  ;;  %v4533_v19 = vld [vmem:[#allocation2 + $0xf0] sm:$0xff] }
  0x69   : > { %864 = vmatprep.subr.mxu1 %v3920_v0  ;;  %417 = vmatpush2.msra.mxu0 %v277_v20  ;;  %v3187_v20 = vld [vmem:[%s5980_s1 + $0x288] sm:$0xff] }
  0x6a   : > { %418 = vmatprep.mubr.f32.mxu0 %v4341_v21  ;;  %3523 = vmatprep.mubr.msk.f32.mxu1 %vm3921_vm3, %v3920_v0 }
  0x6b   : > { %865 = vmatpush2.msra.mxu1 %v3150_v23  ;;  %419 = vmatmul.mubr.f32.vlgmr.msra.gmra.mxu0 %v4348_v24  ;;  %v4541_v23 = vld [vmem:[#allocation2 + $0x110] sm:$0xff] }
  0x6c   : > { %3524 = vmatmul.mubr.msk.f32.gmra.mxu1 %vm176_vm0, %v4350_v25  ;;  %866 = vmatprep.subr.mxu1 %v3920_v0 }
  0x6d   : > { %3535 = vmatprep.subr.mxu0 %v3920_v0  ;;  %867 = vmatpush2.msra.mxu1 %v3149_v27  ;;  %v3186_v27 = vld [vmem:[%s5980_s1 + $0x280] sm:$0xff] }
  0x6e   : > { %3536 = vmatpush3.msk.msra.mxu0 %vm350_vm2, %v3163_v28  ;;  %868 = vmatprep.subr.mxu1 %v3920_v0  ;;  %v4549_v28 = vld [vmem:[#allocation2 + $0x108] sm:$0xff] }
  0x6f   : > { %423 = vmatprep.mubr.f32.mxu0 %v4364_v29  ;;  %3526 = vmatprep.mubr.msk.f32.mxu1 %vm3921_vm3, %v3920_v0 }
  0x70   : > { %869 = vmatpush2.msra.mxu1 %v3148_v31  ;;  %424 = vmatmul.mubr.f32.gmra.mxu0 %v4372_v32  ;;  %v3185_v31 = vld [vmem:[%s5980_s1 + $0x278] sm:$0xff] }
  0x71   : > { %3527 = vmatmul.mubr.msk.f32.gmra.mxu1 %vm176_vm0, %v4374_v33  ;;  %870 = vmatprep.subr.mxu1 %v3920_v0 }
  0x72   : > { %428 = vmatprep.mubr.f32.mxu0 %v4378_v34  ;;  %871 = vmatpush2.msra.mxu1 %v3147_v36  ;;  %v4557_v36 = vld [vmem:[#allocation2 + $0x128] sm:$0xff] }
  0x73   : > { %3529 = vmatprep.mubr.msk.f32.mxu1 %vm3921_vm3, %v3920_v0  ;;  %872 = vmatprep.subr.mxu1 %v3920_v0 }
  0x74   : > { %3537 = vmatprep.subr.mxu0 %v3920_v0  ;;  %873 = vmatpush2.msra.mxu1 %v3146_v37  ;;  %v3159_v37 = vld [vmem:[%s5980_s1 + $0x238] sm:$0xff] }
  0x75   : > { %429 = vmatmul.mubr.f32.gmra.mxu0 %v4393_v38  ;;  %3530 = vmatmul.mubr.msk.f32.gmra.mxu1 %vm176_vm0, %v4397_v39 }
  0x76   : > { %874 = vmatprep.subr.mxu1 %v3920_v0  ;;  %433 = vmatprep.mubr.f32.mxu0 %v4403_v42 }
  0x77   : > { %875 = vmatpush2.msra.mxu1 %v3145_v41  ;;  %3532 = vmatprep.mubr.msk.f32.mxu1 %vm3921_vm3, %v3920_v0  ;;  %v3184_v41 = vld [vmem:[%s5980_s1 + $0x270] sm:$0xff] }
  0x78   : > { %876 = vmatprep.subr.mxu1 %v3920_v0  ;;  %3538 = vmatpush3.msra.mxu0 %v3162_v48  ;;  %v3183_v48 = vld [vmem:[%s5980_s1 + $0x268] sm:$0xff] }
  0x79   : > { %877 = vmatpush2.msra.mxu1 %v3144_v43  ;;  %434 = vmatmul.mubr.f32.gmra.mxu0 %v4413_v44  ;;  %v4569_v43 = vld [vmem:[#allocation2 + $0x120] sm:$0xff] }
  0x7a   : > { %3533 = vmatmul.mubr.msk.f32.gmra.mxu1 %vm176_vm0, %v4416_v46  ;;  %878 = vmatprep.subr.mxu1 %v3920_v0 }
  0x7b   : > { %879 = vmatpush2.msra.mxu1 %v3143_v47  ;;  %438 = vmatprep.mubr.f32.mxu0 %v4428_v49  ;;  %v4573_v47 = vld [vmem:[#allocation2 + $0x140] sm:$0xff] }
  0x7c   : > { %880 = vmatprep.subr.mxu1 %v3920_v0  ;;  %882 = vmatprep.mubr.f32.mxu1 %v4341_v21 }
  0x7d   : > { %881 = vmatpush2.msra.mxu1 %v3142_v51  ;;  %439 = vmatmul.mubr.f32.gmra.mxu0 %v4436_v52  ;;  %v3182_v51 = vld [vmem:[%s5980_s1 + $0x260] sm:$0xff] }
  0x7e   : > { %883 = vmatmul.mubr.f32.vlgmr.msra.gmra.mxu1 %v4348_v24  ;;  %443 = vmatprep.mubr.f32.mxu0 %v4440_v53 }
  0x7f   : > { %887 = vmatprep.mubr.f32.mxu1 %v4364_v29  ;;  %1377 = vmatprep.subr.mxu1 %v3920_v0 }
  0x80   : > { %3539 = vmatprep.subr.mxu0 %v3920_v0  ;;  %1378 = vmatpush1.msra.mxu1 %v3197_v54  ;;  %v4585_v54 = vld [vmem:[#allocation2 + $0x138] sm:$0xff] }
  0x81   : > { %3540 = vmatpush3.msra.mxu0 %v3161_v56  ;;  %1379 = vmatprep.subr.mxu1 %v3920_v0  ;;  %v3213_v56 = vld [vmem:[%s5980_s1 + $0x358] sm:$0xff] }
  0x82   : > { %444 = vmatmul.mubr.f32.gmra.mxu0 %v4453_v57  ;;  %888 = vmatmul.mubr.f32.gmra.mxu1 %v4372_v32 }
  0x83   : > { %448 = vmatprep.mubr.f32.mxu0 %v4456_v58  ;;  %892 = vmatprep.mubr.f32.mxu1 %v4378_v34 }
  0x84   : > { %1380 = vmatpush1.msra.mxu1 %v3196_v59  ;;  %3541 = vmatprep.subr.mxu0 %v3920_v0  ;;  %v4592_v59 = vld [vmem:[#allocation2 + $0x158] sm:$0xff] }
  0x85   : > { %1381 = vmatprep.subr.mxu1 %v3920_v0  ;;  %3542 = vmatpush3.msra.mxu0 %v3160_v3  ;;  %v3211_v3 = vld [vmem:[%s5980_s1 + $0x348] sm:$0xff] }
  0x86   : > { %449 = vmatmul.mubr.f32.gmra.mxu0 %v4466_v61  ;;  %893 = vmatmul.mubr.f32.gmra.mxu1 %v4393_v38 }
  0x87   : > { %1382 = vmatpush1.msra.mxu1 %v3195_v62  ;;  %453 = vmatprep.mubr.f32.mxu0 %v4472_v63  ;;  %v3212_v62 = vld [vmem:[%s5980_s1 + $0x350] sm:$0xff] }
  0x88   : > { %1383 = vmatprep.subr.mxu1 %v3920_v0  ;;  %897 = vmatprep.mubr.f32.mxu1 %v4403_v42 }
  0x89   : > { %1384 = vmatpush1.msra.mxu1 %v3194_v1  ;;  %3543 = vmatprep.subr.mxu0 %v3920_v0  ;;  %v4601_v1 = vld [vmem:[#allocation2 + $0x150] sm:$0xff] }
  0x8a   : > { %454 = vmatmul.mubr.f32.gmra.mxu0 %v4485_v4  ;;  %898 = vmatmul.mubr.f32.gmra.mxu1 %v4413_v44 }
  0x8b   : > { %1385 = vmatprep.subr.mxu1 %v3920_v0  ;;  %458 = vmatprep.mubr.f32.mxu0 %v4489_v5 }
  0x8c   : > { %1386 = vmatpush1.msra.mxu1 %v3193_v6  ;;  %902 = vmatprep.mubr.f32.mxu1 %v4428_v49  ;;  %v3158_v6 = vld [vmem:[%s5980_s1 + $0x230] sm:$0xff] }
  0x8d   : > { %1387 = vmatprep.subr.mxu1 %v3920_v0  ;;  %3544 = vmatpush3.msra.mxu0 %v3159_v37  ;;  %v3206_v37 = vld [vmem:[%s5980_s1 + $0x320] sm:$0xff] }
  0x8e   : > { %1388 = vmatpush1.msra.mxu1 %v3192_v8  ;;  %459 = vmatmul.mubr.f32.gmra.mxu0 %v4501_v9  ;;  %v4613_v8 = vld [vmem:[#allocation2 + $0x170] sm:$0xff] }
  0x8f   : > { %903 = vmatmul.mubr.f32.gmra.mxu1 %v4436_v52  ;;  %1389 = vmatprep.subr.mxu1 %v3920_v0 }
  0x90   : > { %1390 = vmatpush1.msra.mxu1 %v3191_v10  ;;  %463 = vmatprep.mubr.f32.mxu0 %v4508_v11  ;;  %v3210_v10 = vld [vmem:[%s5980_s1 + $0x340] sm:$0xff] }
  0x91   : > { %1391 = vmatprep.subr.mxu1 %v3920_v0  ;;  %907 = vmatprep.mubr.f32.mxu1 %v4440_v53 }
  0x92   : > { %1392 = vmatpush1.msra.mxu1 %v3190_v13  ;;  %464 = vmatmul.mubr.f32.gmra.mxu0 %v4517_v14  ;;  %v4620_v13 = vld [vmem:[#allocation2 + $0x168] sm:$0xff] }
  0x93   : > { %908 = vmatmul.mubr.f32.gmra.mxu1 %v4453_v57  ;;  %1393 = vmatprep.subr.mxu1 %v3920_v0 }
  0x94   : > { %1394 = vmatpush1.msra.mxu1 %v3189_v15  ;;  %468 = vmatprep.mubr.f32.mxu0 %v4525_v16  ;;  %v4624_v15 = vld [vmem:[#allocation2 + $0x188] sm:$0xff] }
  0x95   : > { %1395 = vmatprep.subr.mxu1 %v3920_v0  ;;  %912 = vmatprep.mubr.f32.mxu1 %v4456_v58 }
  0x96   : > { %1396 = vmatpush1.msra.mxu1 %v3188_v18  ;;  %469 = vmatmul.mubr.f32.gmra.mxu0 %v4533_v19  ;;  %v3209_v18 = vld [vmem:[%s5980_s1 + $0x338] sm:$0xff] }
  0x97   : > { %913 = vmatmul.mubr.f32.gmra.mxu1 %v4466_v61  ;;  %1397 = vmatprep.subr.mxu1 %v3920_v0 }
  0x98   : > { %1398 = vmatpush1.msra.mxu1 %v3187_v20  ;;  %473 = vmatprep.mubr.f32.mxu0 %v4541_v23  ;;  %v3208_v20 = vld [vmem:[%s5980_s1 + $0x330] sm:$0xff] }
  0x99   : > { %1399 = vmatprep.subr.mxu1 %v3920_v0  ;;  %917 = vmatprep.mubr.f32.mxu1 %v4472_v63 }
  0x9a   : > { %1400 = vmatpush1.msra.mxu1 %v3186_v27  ;;  %474 = vmatmul.mubr.f32.gmra.mxu0 %v4549_v28  ;;  %v4637_v27 = vld [vmem:[#allocation2 + $0x180] sm:$0xff] }
  0x9b   : > { %918 = vmatmul.mubr.f32.gmra.mxu1 %v4485_v4  ;;  %1401 = vmatprep.subr.mxu1 %v3920_v0 }
  0x9c   : > { %1402 = vmatpush1.msra.mxu1 %v3185_v31  ;;  %478 = vmatprep.mubr.f32.mxu0 %v4557_v36  ;;  %v3207_v31 = vld [vmem:[%s5980_s1 + $0x328] sm:$0xff] }
  0x9d   : > { %1403 = vmatprep.subr.mxu1 %v3920_v0  ;;  %922 = vmatprep.mubr.f32.mxu1 %v4489_v5 }
  0x9e   : > { %1404 = vmatpush1.msra.mxu1 %v3184_v41  ;;  %479 = vmatmul.mubr.f32.gmra.mxu0 %v4569_v43  ;;  %v3205_v41 = vld [vmem:[%s5980_s1 + $0x318] sm:$0xff] }
  0x9f   : > { %923 = vmatmul.mubr.f32.gmra.mxu1 %v4501_v9  ;;  %1405 = vmatprep.subr.mxu1 %v3920_v0 }
  0xa0   : > { %483 = vmatprep.mubr.f32.mxu0 %v4573_v47  ;;  %1406 = vmatpush1.msra.mxu1 %v3183_v48  ;;  %v3219_v48 = vld [vmem:[%s5980_s1 + $0x388] sm:$0xf] }
  0xa1   : > { %927 = vmatprep.mubr.f32.mxu1 %v4508_v11  ;;  %1407 = vmatprep.subr.mxu1 %v3920_v0 }
  0xa2   : > { %3545 = vmatprep.subr.mxu0 %v3920_v0  ;;  %1408 = vmatpush1.msra.mxu1 %v3182_v51  ;;  %v3204_v51 = vld [vmem:[%s5980_s1 + $0x310] sm:$0xff] }
  0xa3   : > { %484 = vmatmul.mubr.f32.gmra.mxu0 %v4585_v54  ;;  %928 = vmatmul.mubr.f32.gmra.mxu1 %v4517_v14 }
  0xa4   : > { %1409 = vmatprep.subr.mxu1 %v3920_v0  ;;  %488 = vmatprep.mubr.f32.mxu0 %v4592_v59 }
  0xa5   : > { %1410 = vmatpush2.msra.mxu1 %v3213_v56  ;;  %932 = vmatprep.mubr.f32.mxu1 %v4525_v16  ;;  %v3202_v56 = vld [vmem:[%s5980_s1 + $0x300] sm:$0xff] }
  0xa6   : > { %1411 = vmatprep.subr.mxu1 %v3920_v0  ;;  %3546 = vmatpush3.msra.mxu0 %v3158_v6  ;;  %v3198_v6 = vld [vmem:[%s5980_s1 + $0x2e0] sm:$0xff] }
  0xa7   : > { %1412 = vmatpush2.msra.mxu1 %v3212_v62  ;;  %489 = vmatmul.mubr.f32.gmra.mxu0 %v4601_v1  ;;  %v3201_v62 = vld [vmem:[%s5980_s1 + $0x2f8] sm:$0xff] }
  0xa8   : > { %933 = vmatmul.mubr.f32.gmra.mxu1 %v4533_v19  ;;  %1413 = vmatprep.subr.mxu1 %v3920_v0 }
  0xa9   : > { %1414 = vmatpush2.msra.mxu1 %v3211_v3  ;;  %493 = vmatprep.mubr.f32.mxu0 %v4613_v8  ;;  %v3218_v3 = vld [vmem:[%s5980_s1 + $0x380] sm:$0xff] }
  0xaa   : > { %1415 = vmatprep.subr.mxu1 %v3920_v0  ;;  %937 = vmatprep.mubr.f32.mxu1 %v4541_v23 }
  0xab   : > { %1416 = vmatpush2.msra.mxu1 %v3210_v10  ;;  %494 = vmatmul.mubr.f32.gmra.mxu0 %v4620_v13  ;;  %v3217_v10 = vld [vmem:[%s5980_s1 + $0x378] sm:$0xff] }
  0xac   : > { %938 = vmatmul.mubr.f32.gmra.mxu1 %v4549_v28  ;;  %1417 = vmatprep.subr.mxu1 %v3920_v0 }
  0xad   : > { %498 = vmatprep.mubr.f32.mxu0 %v4624_v15  ;;  %1418 = vmatpush2.msra.mxu1 %v3209_v18 }
  0xae   : > { %942 = vmatprep.mubr.f32.mxu1 %v4557_v36  ;;  %1419 = vmatprep.subr.mxu1 %v3920_v0 }
  0xaf   : > { %3598 = vmatprep.subr.mxu0 %v3920_v0  ;;  %1420 = vmatpush2.msra.mxu1 %v3208_v20  ;;  %v4953_v20 = vld [vmem:[#allocation2 + $0x40] sm:$0xff] }
  0xb0   : > { %499 = vmatmul.mubr.f32.gmra.mxu0 %v4637_v27  ;;  %943 = vmatmul.mubr.f32.gmra.mxu1 %v4569_v43 }
  0xb1   : > { %1421 = vmatprep.subr.mxu1 %v3920_v0  ;;  %947 = vmatprep.mubr.f32.mxu1 %v4573_v47 }
  0xb2   : > { %1422 = vmatpush2.msra.mxu1 %v3207_v31  ;;  %3547 = vmatprep.mubr.msk.f32.mxu0 %vm3921_vm3, %v3920_v0 }
  0xb3   : > { %1423 = vmatprep.subr.mxu1 %v3920_v0 }
  0xb4   : > { %1424 = vmatpush2.msra.mxu1 %v3206_v37  ;;  %3548 = vmatmul.mubr.msk.f32.vlgmr.msra.gmra.mxu0 %vm176_vm0, %v4068_v22  ;;  %v3203_v22 = vld [vmem:[%s5980_s1 + $0x308] sm:$0xff]  ;;  %v4971_v37 = vld [vmem:[#allocation2 + $0x58] sm:$0xff] }
  0xb5   : > { %948 = vmatmul.mubr.f32.gmra.mxu1 %v4585_v54  ;;  %1425 = vmatprep.subr.mxu1 %v3920_v0 }
  0xb6   : > { %1426 = vmatpush2.msra.mxu1 %v3205_v41  ;;  %3599 = vmatpush3.msk.msra.mxu0 %vm350_vm2, %v3219_v48  ;;  %v3274_v48 = vld [vmem:[%s5980_s1 + $0x4b0] sm:$0xff] }
  0xb7   : > { %1427 = vmatprep.subr.mxu1 %v3920_v0  ;;  %952 = vmatprep.mubr.f32.mxu1 %v4592_v59 }
  0xb8   : > { %3550 = vmatprep.mubr.msk.f32.mxu0 %vm3921_vm3, %v3920_v0  ;;  %1428 = vmatpush2.msra.mxu1 %v3204_v51 }
  0xb9   : > { %953 = vmatmul.mubr.f32.gmra.mxu1 %v4601_v1  ;;  %3551 = vmatmul.mubr.msk.f32.gmra.mxu0 %vm176_vm0, %v4087_v26  ;;  %v3200_v26 = vld [vmem:[%s5980_s1 + $0x2f0] sm:$0xff] }
  0xba   : > { %1429 = vmatprep.subr.mxu1 %v3920_v0  ;;  %957 = vmatprep.mubr.f32.mxu1 %v4613_v8 }
  0xbb   : > { %1430 = vmatpush2.msra.mxu1 %v3203_v22  ;;  %3553 = vmatprep.mubr.msk.f32.mxu0 %vm3921_vm3, %v3920_v0  ;;  %v4992_v22 = vld [vmem:[#allocation2 + $0x8] sm:$0xff] }
  0xbc   : > { %1431 = vmatprep.subr.mxu1 %v3920_v0  ;;  %3600 = vmatprep.subr.mxu0 %v3920_v0 }
  0xbd   : > { %1432 = vmatpush2.msra.mxu1 %v3202_v56  ;;  %3554 = vmatmul.mubr.msk.f32.gmra.mxu0 %vm176_vm0, %v4104_v30  ;;  %v3199_v30 = vld [vmem:[%s5980_s1 + $0x2e8] sm:$0xff]  ;;  %v4994_v56 = vld [vmem:[#allocation2 + $0x70] sm:$0xff] }
  0xbe   : > { %958 = vmatmul.mubr.f32.gmra.mxu1 %v4620_v13  ;;  %1433 = vmatprep.subr.mxu1 %v3920_v0 }
  0xbf   : > { %1434 = vmatpush2.msra.mxu1 %v3201_v62  ;;  %962 = vmatprep.mubr.f32.mxu1 %v4624_v15  ;;  %v4996_v62 = vld [vmem:[#allocation2] sm:$0xff] }
  0xc0   : > { %1435 = vmatprep.subr.mxu1 %v3920_v0  ;;  %3556 = vmatprep.mubr.msk.f32.mxu0 %vm3921_vm3, %v3920_v0 }
  0xc1   : > { %1436 = vmatpush2.msra.mxu1 %v3200_v26  ;;  %3557 = vmatmul.mubr.msk.f32.gmra.mxu0 %vm176_vm0, %v4126_v35  ;;  %v3253_v35 = vld [vmem:[%s5980_s1 + $0x408] sm:$0xff] }
  0xc2   : > { %963 = vmatmul.mubr.f32.gmra.mxu1 %v4637_v27  ;;  %1437 = vmatprep.subr.mxu1 %v3920_v0 }
  0xc3   : > { %1438 = vmatpush2.msra.mxu1 %v3199_v30  ;;  %3601 = vmatpush3.msra.mxu0 %v3218_v3  ;;  %v3309_v30 = vld [vmem:[%s5980_s1 + $0x538] sm:$0xff]  ;;  %v3273_v3 = vld [vmem:[%s5980_s1 + $0x4a8] sm:$0xff] }
  0xc4   : > { %1439 = vmatprep.subr.mxu1 %v3920_v0  ;;  %3559 = vmatprep.mubr.msk.f32.mxu0 %vm3921_vm3, %v3920_v0 }
  0xc5   : > { %1440 = vmatpush2.msra.mxu1 %v3198_v6  ;;  %1441 = vmatprep.mubr.f32.mxu1 %v4341_v21  ;;  %v3251_v21 = vld [vmem:[%s5980_s1 + $0x3f8] sm:$0xff] }
  0xc6   : > { %3560 = vmatmul.mubr.msk.f32.gmra.mxu0 %vm176_vm0, %v4148_v40  ;;  %1442 = vmatmul.mubr.f32.vlgmr.msra.gmra.mxu1 %v4348_v24  ;;  %v3252_v40 = vld [vmem:[%s5980_s1 + $0x400] sm:$0xff]  ;;  %v3216_v24 = vld [vmem:[%s5980_s1 + $0x370] sm:$0xff] }
  0xc7   : > { %3562 = vmatprep.mubr.msk.f32.mxu0 %vm3921_vm3, %v3920_v0  ;;  %1446 = vmatprep.mubr.f32.mxu1 %v4364_v29  ;;  %v3248_v29 = vld [vmem:[%s5980_s1 + $0x3e0] sm:$0xff] }
  0xc8   : > { %1936 = vmatprep.subr.mxu1 %v3920_v0  ;;  %3602 = vmatprep.subr.mxu0 %v3920_v0 }
  0xc9   : > { %1937 = vmatpush1.msra.mxu1 %v3253_v35  ;;  %3603 = vmatpush3.msra.mxu0 %v3217_v10  ;;  %v5018_v35 = vld [vmem:[#allocation2 + $0x88] sm:$0xff]  ;;  %v5020_v10 = vld [vmem:[#allocation2 + $0x18] sm:$0xff] }
  0xca   : > { %3563 = vmatmul.mubr.msk.f32.gmra.mxu0 %vm176_vm0, %v4170_v45  ;;  %1447 = vmatmul.mubr.f32.gmra.mxu1 %v4372_v32  ;;  %v3250_v45 = vld [vmem:[%s5980_s1 + $0x3f0] sm:$0xff] }
  0xcb   : > { %1938 = vmatprep.subr.mxu1 %v3920_v0  ;;  %3565 = vmatprep.mubr.msk.f32.mxu0 %vm3921_vm3, %v3920_v0  ;;  %v3246_v32 = vld [vmem:[%s5980_s1 + $0x3d0] sm:$0xff] }
  0xcc   : > { %1451 = vmatprep.mubr.f32.mxu1 %v4378_v34  ;;  %1939 = vmatpush1.msra.mxu1 %v3252_v40  ;;  %v3244_v34 = vld [vmem:[%s5980_s1 + $0x3c0] sm:$0xff] }
  0xcd   : > { %1940 = vmatprep.subr.mxu1 %v3920_v0  ;;  %3604 = vmatprep.subr.mxu0 %v3920_v0 }
  0xce   : > { %3566 = vmatmul.mubr.msk.f32.gmra.mxu0 %vm176_vm0, %v4192_v50  ;;  %1452 = vmatmul.mubr.f32.gmra.mxu1 %v4393_v38  ;;  %v3249_v50 = vld [vmem:[%s5980_s1 + $0x3e8] sm:$0xff]  ;;  %v3242_v38 = vld [vmem:[%s5980_s1 + $0x3b0] sm:$0xff] }
  0xcf   : > { %1941 = vmatpush1.msra.mxu1 %v3251_v21  ;;  %3568 = vmatprep.mubr.msk.f32.mxu0 %vm3921_vm3, %v3920_v0  ;;  %v5024_v21 = vld [vmem:[#allocation2 + $0x38] sm:$0xff] }
  0xd0   : > { %1942 = vmatprep.subr.mxu1 %v3920_v0  ;;  %1456 = vmatprep.mubr.f32.mxu1 %v4403_v42  ;;  %v3215_v42 = vld [vmem:[%s5980_s1 + $0x368] sm:$0xff] }
  0xd1   : > { %1943 = vmatpush1.msra.mxu1 %v3250_v45  ;;  %3605 = vmatpush3.msra.mxu0 %v3216_v24  ;;  %v3308_v45 = vld [vmem:[%s5980_s1 + $0x530] sm:$0xff]  ;;  %v5035_v24 = vld [vmem:[#allocation2 + $0xa0] sm:$0xff] }
  0xd2   : > { %3569 = vmatmul.mubr.msk.f32.gmra.mxu0 %vm176_vm0, %v4214_v55  ;;  %1457 = vmatmul.mubr.f32.gmra.mxu1 %v4413_v44  ;;  %v3247_v55 = vld [vmem:[%s5980_s1 + $0x3d8] sm:$0xff]  ;;  %v3240_v44 = vld [vmem:[%s5980_s1 + $0x3a0] sm:$0xff] }
  0xd3   : > { %1944 = vmatprep.subr.mxu1 %v3920_v0  ;;  %3571 = vmatprep.mubr.msk.f32.mxu0 %vm3921_vm3, %v3920_v0 }
  0xd4   : > { %1945 = vmatpush1.msra.mxu1 %v3249_v50  ;;  %1461 = vmatprep.mubr.f32.mxu1 %v4428_v49  ;;  %v3238_v49 = vld [vmem:[%s5980_s1 + $0x390] sm:$0xff] }
  0xd5   : > { %1946 = vmatprep.subr.mxu1 %v3920_v0  ;;  %3606 = vmatprep.subr.mxu0 %v3920_v0  ;;  %v5037_v50 = vld [vmem:[#allocation2 + $0x30] sm:$0xff] }
  0xd6   : > { %1947 = vmatpush1.msra.mxu1 %v3248_v29  ;;  %3572 = vmatmul.mubr.msk.f32.gmra.mxu0 %vm176_vm0, %v4236_v60  ;;  %v3245_v60 = vld [vmem:[%s5980_s1 + $0x3c8] sm:$0xff] }
  0xd7   : > { %1462 = vmatmul.mubr.f32.gmra.mxu1 %v4436_v52  ;;  %1948 = vmatprep.subr.mxu1 %v3920_v0  ;;  %v3268_v52 = vld [vmem:[%s5980_s1 + $0x480] sm:$0xff] }
  0xd8   : > { %1949 = vmatpush1.msra.mxu1 %v3247_v55  ;;  %3574 = vmatprep.mubr.msk.f32.mxu0 %vm3921_vm3, %v3920_v0  ;;  %v3307_v55 = vld [vmem:[%s5980_s1 + $0x528] sm:$0xff] }
  0xd9   : > { %1950 = vmatprep.subr.mxu1 %v3920_v0  ;;  %1466 = vmatprep.mubr.f32.mxu1 %v4440_v53 }
  0xda   : > { %1951 = vmatpush1.msra.mxu1 %v3246_v32  ;;  %3575 = vmatmul.mubr.msk.f32.gmra.mxu0 %vm176_vm0, %v4258_v2  ;;  %v3243_v2 = vld [vmem:[%s5980_s1 + $0x3b8] sm:$0xff]  ;;  %v5046_v32 = vld [vmem:[#allocation2 + $0x50] sm:$0xff] }
  0xdb   : > { %1467 = vmatmul.mubr.f32.gmra.mxu1 %v4453_v57  ;;  %1952 = vmatprep.subr.mxu1 %v3920_v0  ;;  %v3214_v57 = vld [vmem:[%s5980_s1 + $0x360] sm:$0xff] }
  0xdc   : > { %1953 = vmatpush1.msra.mxu1 %v3245_v60  ;;  %3577 = vmatprep.mubr.msk.f32.mxu0 %vm3921_vm3, %v3920_v0 }
  0xdd   : > { %1954 = vmatprep.subr.mxu1 %v3920_v0  ;;  %1471 = vmatprep.mubr.f32.mxu1 %v4456_v58 }
  0xde   : > { %1955 = vmatpush1.msra.mxu1 %v3244_v34  ;;  %3578 = vmatmul.mubr.msk.f32.gmra.mxu0 %vm176_vm0, %v4280_v7  ;;  %v3241_v7 = vld [vmem:[%s5980_s1 + $0x3a8] sm:$0xff]  ;;  %v3306_v34 = vld [vmem:[%s5980_s1 + $0x520] sm:$0xff] }
  0xdf   : > { %1472 = vmatmul.mubr.f32.gmra.mxu1 %v4466_v61  ;;  %1956 = vmatprep.subr.mxu1 %v3920_v0  ;;  %v3266_v61 = vld [vmem:[%s5980_s1 + $0x470] sm:$0xff] }
  0xe0   : > { %1957 = vmatpush1.msra.mxu1 %v3243_v2  ;;  %3580 = vmatprep.mubr.msk.f32.mxu0 %vm3921_vm3, %v3920_v0  ;;  %v3272_v2 = vld [vmem:[%s5980_s1 + $0x4a0] sm:$0xff] }
  0xe1   : > { %1958 = vmatprep.subr.mxu1 %v3920_v0  ;;  %1476 = vmatprep.mubr.f32.mxu1 %v4472_v63 }
  0xe2   : > { %1959 = vmatpush1.msra.mxu1 %v3242_v38  ;;  %3581 = vmatmul.mubr.msk.f32.gmra.mxu0 %vm176_vm0, %v4302_v12  ;;  %v3239_v12 = vld [vmem:[%s5980_s1 + $0x398] sm:$0xff] }
  0xe3   : > { %1477 = vmatmul.mubr.f32.gmra.mxu1 %v4485_v4  ;;  %1960 = vmatprep.subr.mxu1 %v3920_v0  ;;  %v5060_v38 = vld [vmem:[#allocation2 + $0xb8] sm:$0xff] }
  0xe4   : > { %1961 = vmatpush1.msra.mxu1 %v3241_v7  ;;  %3583 = vmatprep.mubr.msk.f32.mxu0 %vm3921_vm3, %v3920_v0  ;;  %v5062_v7 = vld [vmem:[#allocation2 + $0x48] sm:$0xff] }
  0xe5   : > { %1962 = vmatprep.subr.mxu1 %v3920_v0  ;;  %1481 = vmatprep.mubr.f32.mxu1 %v4489_v5  ;;  %v3264_v5 = vld [vmem:[%s5980_s1 + $0x460] sm:$0xff] }
  0xe6   : > { %3607 = vmatpush3.msra.mxu0 %v3215_v42  ;;  %1963 = vmatpush1.msra.mxu1 %v3240_v44  ;;  %v3305_v44 = vld [vmem:[%s5980_s1 + $0x518] sm:$0xff] }
  0xe7   : > { %3584 = vmatmul.mubr.msk.f32.gmra.mxu0 %vm176_vm0, %v4324_v17  ;;  %1482 = vmatmul.mubr.f32.gmra.mxu1 %v4501_v9  ;;  %v3269_v17 = vld [vmem:[%s5980_s1 + $0x488] sm:$0xff] }
  0xe8   : > { %1964 = vmatprep.subr.mxu1 %v3920_v0  ;;  %3586 = vmatprep.mubr.msk.f32.mxu0 %vm3921_vm3, %v3920_v0 }
  0xe9   : > { %1965 = vmatpush1.msra.mxu1 %v3239_v12  ;;  %1486 = vmatprep.mubr.f32.mxu1 %v4508_v11  ;;  %v5071_v12 = vld [vmem:[#allocation2 + $0x68] sm:$0xff] }
  0xea   : > { %1966 = vmatprep.subr.mxu1 %v3920_v0  ;;  %3608 = vmatprep.subr.mxu0 %v3920_v0 }
  0xeb   : > { %1967 = vmatpush1.msra.mxu1 %v3238_v49  ;;  %3587 = vmatmul.mubr.msk.f32.gmra.mxu0 %vm176_vm0, %v4350_v25  ;;  %v3267_v25 = vld [vmem:[%s5980_s1 + $0x478] sm:$0xff] }
  0xec   : > { %1487 = vmatmul.mubr.f32.gmra.mxu1 %v4517_v14  ;;  %1968 = vmatprep.subr.mxu1 %v3920_v0  ;;  %v4862_v53 = vpop.f32.mrf.mxu1  ;;  %v3262_v14 = vld [vmem:[%s5980_s1 + $0x450] sm:$0xff] }
  0xed   : > { %1969 = vmatpush2.msra.mxu1 %v3269_v17  ;;  %3589 = vmatprep.mubr.msk.f32.mxu0 %vm3921_vm3, %v3920_v0  ;;  %v3304_v17 = vld [vmem:[%s5980_s1 + $0x510] sm:$0xff] }
  0xee   : > { %1970 = vmatprep.subr.mxu1 %v3920_v0  ;;  %1491 = vmatprep.mubr.f32.mxu1 %v4525_v16  ;;  %v3486_v58 = vpop.f32.mrf.mxu1  ;;  %v4912_v16 = vld [vmem:[#allocation2 + $0x10] sm:$0xff] }
  0xef   : > { %1971 = vmatpush2.msra.mxu1 %v3268_v52  ;;  %3590 = vmatmul.mubr.msk.f32.gmra.mxu0 %vm176_vm0, %v4374_v33  ;;  %v3265_v33 = vld [vmem:[%s5980_s1 + $0x468] sm:$0xff]  ;;  %v5082_v52 = vld [vmem:[#allocation2 + $0xd0] sm:$0xff] }
  0xf0   : > { %1492 = vmatmul.mubr.f32.gmra.mxu1 %v4533_v19  ;;  %1972 = vmatprep.subr.mxu1 %v3920_v0  ;;  %v4879_v63 = vpop.f32.mrf.mxu1 }
  0xf1   : > { %1973 = vmatpush2.msra.mxu1 %v3267_v25  ;;  %3609 = vmatpush3.msra.mxu0 %v3214_v57  ;;  %v5085_v25 = vld [vmem:[#allocation2 + $0x60] sm:$0xff]  ;;  %v3303_v57 = vld [vmem:[%s5980_s1 + $0x508] sm:$0xff] }
  0xf2   : > { %1974 = vmatprep.subr.mxu1 %v3920_v0  ;;  %3592 = vmatprep.mubr.msk.f32.mxu0 %vm3921_vm3, %v3920_v0  ;;  %v3489_v4 = vpop.f32.mrf.mxu1 }
  0xf3   : > { %1496 = vmatprep.mubr.f32.mxu1 %v4541_v23  ;;  %1975 = vmatpush2.msra.mxu1 %v3266_v61  ;;  %v3275_v23 = vld [vmem:[%s5980_s1 + $0x4b8] sm:$0xf]  ;;  %v5096_v61 = vld [vmem:[#allocation2 + $0x80] sm:$0xff]  ;;  %v5103_v4 = vld [vmem:[#allocation2 + $0xe8] sm:$0xff] }
  0xf4   : > { %3593 = vmatmul.mubr.msk.f32.gmra.mxu0 %vm176_vm0, %v4397_v39  ;;  %1497 = vmatmul.mubr.f32.gmra.mxu1 %v4549_v28  ;;  %v4897_v9 = vpop.f32.mrf.mxu1  ;;  %v3263_v39 = vld [vmem:[%s5980_s1 + $0x458] sm:$0xff] }
  0xf5   : > { %1976 = vmatprep.subr.mxu1 %v3920_v0  ;;  %3595 = vmatprep.mubr.msk.f32.mxu0 %vm3921_vm3, %v3920_v0 }
  0xf6   : > { %1977 = vmatpush2.msra.mxu1 %v3265_v33  ;;  %1501 = vmatprep.mubr.f32.mxu1 %v4557_v36  ;;  %v3492_v11 = vpop.f32.mrf.mxu1  ;;  %v3260_v36 = vld [vmem:[%s5980_s1 + $0x440] sm:$0xff] }
  0xf7   : > { %1978 = vmatprep.subr.mxu1 %v3920_v0  ;;  %3661 = vmatprep.subr.mxu0 %v3920_v0  ;;  %v3302_v33 = vld [vmem:[%s5980_s1 + $0x500] sm:$0xff]  ;;  %v3301_v11 = vld [vmem:[%s5980_s1 + $0x4f8] sm:$0xff] }
  0xf8   : > { %1979 = vmatpush2.msra.mxu1 %v3264_v5  ;;  %3596 = vmatmul.mubr.msk.f32.gmra.mxu0 %vm176_vm0, %v4416_v46  ;;  %v3261_v46 = vld [vmem:[%s5980_s1 + $0x448] sm:$0xff] }
  0xf9   : > { %1502 = vmatmul.mubr.f32.gmra.mxu1 %v4569_v43  ;;  %1980 = vmatprep.subr.mxu1 %v3920_v0  ;;  %v4915_v19 = vpop.f32.mrf.mxu1  ;;  %v4934_v43 = vld [vmem:[#allocation2 + $0x28] sm:$0xff] }
  0xfa   : > { %1981 = vmatpush2.msra.mxu1 %v3263_v39  ;;  %1506 = vmatprep.mubr.f32.mxu1 %v4573_v47  ;;  %v5107_v39 = vld [vmem:[#allocation2 + $0x78] sm:$0xff] }
  0xfb   : > { %1982 = vmatprep.subr.mxu1 %v3920_v0  ;;  %3610 = vmatprep.mubr.msk.f32.mxu0 %vm3921_vm3, %v3920_v0  ;;  %v3495_v28 = vpop.f32.mrf.mxu1 }
  0xfc   : > { %1983 = vmatpush2.msra.mxu1 %v3262_v14  ;;  %3611 = vmatmul.mubr.msk.f32.vlgmr.msra.gmra.mxu0 %vm176_vm0, %v4912_v16  ;;  %v5116_v14 = vld [vmem:[#allocation2 + $0x98] sm:$0xff]  ;;  %v5125_v28 = vld [vmem:[#allocation2 + $0x100] sm:$0xff] }
  0xfd   : > { %1507 = vmatmul.mubr.f32.gmra.mxu1 %v4585_v54  ;;  %1984 = vmatprep.subr.mxu1 %v3920_v0  ;;  %v3259_v54 = vld [vmem:[%s5980_s1 + $0x438] sm:$0xff] }
  0xfe   : > { %1985 = vmatpush2.msra.mxu1 %v3261_v46  ;;  %3662 = vmatpush3.msk.msra.mxu0 %vm350_vm2, %v3275_v23  ;;  %v4938_v47 = vpop.f32.mrf.mxu1  ;;  %v3300_v23 = vld [vmem:[%s5980_s1 + $0x4f0] sm:$0xff] }
  0xff   : > { %1986 = vmatprep.subr.mxu1 %v3920_v0  ;;  %1511 = vmatprep.mubr.f32.mxu1 %v4592_v59  ;;  %v3258_v59 = vld [vmem:[%s5980_s1 + $0x430] sm:$0xff] }
 0x100   : > { %3613 = vmatprep.mubr.msk.f32.mxu0 %vm3921_vm3, %v3920_v0  ;;  %1987 = vmatpush2.msra.mxu1 %v3260_v36  ;;  %v3498_v18 = vpop.f32.mrf.mxu1  ;;  %v5129_v36 = vld [vmem:[#allocation2 + $0x90] sm:$0xff] }
 0x101   : > { %1512 = vmatmul.mubr.f32.gmra.mxu1 %v4601_v1  ;;  %3614 = vmatmul.mubr.msk.f32.gmra.mxu0 %vm176_vm0, %v4934_v43  ;;  %v3257_v1 = vld [vmem:[%s5980_s1 + $0x428] sm:$0xff] }
 0x102   : > { %1988 = vmatprep.subr.mxu1 %v3920_v0  ;;  %1516 = vmatprep.mubr.f32.mxu1 %v4613_v8  ;;  %v3256_v8 = vld [vmem:[%s5980_s1 + $0x420] sm:$0xff]  ;;  %v3299_v18 = vld [vmem:[%s5980_s1 + $0x4e8] sm:$0xff] }
 0x103   : > { %1989 = vmatpush2.msra.mxu1 %v3259_v54  ;;  %3616 = vmatprep.mubr.msk.f32.mxu0 %vm3921_vm3, %v3920_v0  ;;  %v4962_v31 = vpop.f32.mrf.mxu1 }
 0x104   : > { %1990 = vmatprep.subr.mxu1 %v3920_v0  ;;  %3663 = vmatprep.subr.mxu0 %v3920_v0 }
 0x105   : > { %1991 = vmatpush2.msra.mxu1 %v3258_v59  ;;  %3617 = vmatmul.mubr.msk.f32.gmra.mxu0 %vm176_vm0, %v4953_v20  ;;  %v3501_v41 = vpop.f32.mrf.mxu1  ;;  %v5138_v59 = vld [vmem:[#allocation2 + $0xb0] sm:$0xff] }
 0x106   : > { %1517 = vmatmul.mubr.f32.gmra.mxu1 %v4620_v13  ;;  %1992 = vmatprep.subr.mxu1 %v3920_v0  ;;  %v3255_v13 = vld [vmem:[%s5980_s1 + $0x418] sm:$0xff] }
 0x107   : > { %1993 = vmatpush2.msra.mxu1 %v3257_v1  ;;  %1521 = vmatprep.mubr.f32.mxu1 %v4624_v15  ;;  %v3254_v15 = vld [vmem:[%s5980_s1 + $0x410] sm:$0xff]  ;;  %v3298_v1 = vld [vmem:[%s5980_s1 + $0x4e0] sm:$0xff] }
 0x108   : > { %1994 = vmatprep.subr.mxu1 %v3920_v0  ;;  %3619 = vmatprep.mubr.msk.f32.mxu0 %vm3921_vm3, %v3920_v0  ;;  %v4985_v51 = vpop.f32.mrf.mxu1 }
 0x109   : > { %1995 = vmatpush2.msra.mxu1 %v3256_v8  ;;  %3620 = vmatmul.mubr.msk.f32.gmra.mxu0 %vm176_vm0, %v4971_v37  ;;  %v5145_v8 = vld [vmem:[#allocation2 + $0x118] sm:$0xff] }
 0x10a   : > { %1522 = vmatmul.mubr.f32.gmra.mxu1 %v4637_v27  ;;  %1996 = vmatprep.subr.mxu1 %v3920_v0  ;;  %v3504_v26 = vpop.f32.mrf.mxu1  ;;  %v5001_v27 = vld [vmem:[#allocation2 + $0x20] sm:$0xff] }
 0x10b   : > { %1997 = vmatpush2.msra.mxu1 %v3255_v13  ;;  %3664 = vmatpush3.msra.mxu0 %v3274_v48  ;;  %v5151_v13 = vld [vmem:[#allocation2 + $0xa8] sm:$0xff]  ;;  %v3297_v48 = vld [vmem:[%s5980_s1 + $0x4d8] sm:$0xff] }
 0x10c   : > { %1998 = vmatprep.subr.mxu1 %v3920_v0  ;;  %3622 = vmatprep.mubr.msk.f32.mxu0 %vm3921_vm3, %v3920_v0  ;;  %v5160_v26 = vld [vmem:[#allocation2 + $0xc8] sm:$0xff] }
 0x10d   : > { %1999 = vmatpush2.msra.mxu1 %v3254_v15  ;;  %2000 = vmatprep.mubr.f32.mxu1 %v4992_v22  ;;  %v5013_v6 = vpop.f32.mrf.mxu1 }
 0x10e   : > { %3623 = vmatmul.mubr.msk.f32.gmra.mxu0 %vm176_vm0, %v4994_v56  ;;  %2001 = vmatmul.mubr.f32.vlgmr.msra.gmra.mxu1 %v4996_v62 }
 0x10f   : > { %3625 = vmatprep.mubr.msk.f32.mxu0 %vm3921_vm3, %v3920_v0  ;;  %2005 = vmatprep.mubr.f32.mxu1 %v5001_v27  ;;  %v3507_v40 = vpop.f32.mrf.mxu1 }
 0x110   : > { %2495 = vmatprep.subr.mxu1 %v3920_v0  ;;  %3665 = vmatprep.subr.mxu0 %v3920_v0  ;;  %v5172_v40 = vld [vmem:[#allocation2 + $0x130] sm:$0xff] }
 0x111   : > { %2496 = vmatpush1.msra.mxu1 %v3309_v30  ;;  %3666 = vmatpush3.msra.mxu0 %v3273_v3  ;;  %v3271_v30 = vld [vmem:[%s5980_s1 + $0x498] sm:$0xff]  ;;  %v3296_v3 = vld [vmem:[%s5980_s1 + $0x4d0] sm:$0xff] }
 0x112   : > { %3626 = vmatmul.mubr.msk.f32.gmra.mxu0 %vm176_vm0, %v5018_v35  ;;  %2006 = vmatmul.mubr.f32.gmra.mxu1 %v5020_v10  ;;  %v5039_v29 = vpop.f32.mrf.mxu1 }
 0x113   : > { %2497 = vmatprep.subr.mxu1 %v3920_v0  ;;  %3628 = vmatprep.mubr.msk.f32.mxu0 %vm3921_vm3, %v3920_v0 }
 0x114   : > { %2010 = vmatprep.mubr.f32.mxu1 %v5024_v21  ;;  %2498 = vmatpush1.msra.mxu1 %v3308_v45  ;;  %v3510_v60 = vpop.f32.mrf.mxu1  ;;  %v5174_v45 = vld [vmem:[#allocation2 + $0xc0] sm:$0xff] }
 0x115   : > { %2499 = vmatprep.subr.mxu1 %v3920_v0  ;;  %3667 = vmatprep.subr.mxu0 %v3920_v0 }
 0x116   : > { %3629 = vmatmul.mubr.msk.f32.gmra.mxu0 %vm176_vm0, %v5035_v24  ;;  %2011 = vmatmul.mubr.f32.gmra.mxu1 %v5037_v50 }
 0x117   : > { %2500 = vmatpush1.msra.mxu1 %v3307_v55  ;;  %3631 = vmatprep.mubr.msk.f32.mxu0 %vm3921_vm3, %v3920_v0  ;;  %v5066_v42 = vpop.f32.mrf.mxu1 }
 0x118   : > { %2501 = vmatprep.subr.mxu1 %v3920_v0  ;;  %2015 = vmatprep.mubr.f32.mxu1 %v5046_v32 }
 0x119   : > { %2502 = vmatpush1.msra.mxu1 %v3306_v34  ;;  %3668 = vmatpush3.msra.mxu0 %v3272_v2  ;;  %v3513_v49 = vpop.f32.mrf.mxu1  ;;  %v3295_v2 = vld [vmem:[%s5980_s1 + $0x4c8] sm:$0xff] }
 0x11a   : > { %3632 = vmatmul.mubr.msk.f32.gmra.mxu0 %vm176_vm0, %v5060_v38  ;;  %2016 = vmatmul.mubr.f32.gmra.mxu1 %v5062_v7 }
 0x11b   : > { %2503 = vmatprep.subr.mxu1 %v3920_v0  ;;  %3634 = vmatprep.mubr.msk.f32.mxu0 %vm3921_vm3, %v3920_v0 }
 0x11c   : > { %2504 = vmatpush1.msra.mxu1 %v3305_v44  ;;  %2020 = vmatprep.mubr.f32.mxu1 %v5071_v12  ;;  %v5091_v58 = vpop.f32.mrf.mxu1  ;;  %v5184_v44 = vld [vmem:[#allocation2 + $0xe0] sm:$0xff] }
 0x11d   : > { %2505 = vmatprep.subr.mxu1 %v3920_v0  ;;  %3669 = vmatprep.subr.mxu0 %v3920_v0 }
 0x11e   : > { %2506 = vmatpush1.msra.mxu1 %v3304_v17  ;;  %3635 = vmatmul.mubr.msk.f32.gmra.mxu0 %vm176_vm0, %v5082_v52  ;;  %v3516_v5 = vpop.f32.mrf.mxu1 }
 0x11f   : > { %2021 = vmatmul.mubr.f32.gmra.mxu1 %v5085_v25  ;;  %2507 = vmatprep.subr.mxu1 %v3920_v0 }
 0x120   : > { %2508 = vmatpush1.msra.mxu1 %v3303_v57  ;;  %3637 = vmatprep.mubr.msk.f32.mxu0 %vm3921_vm3, %v3920_v0  ;;  %v5195_v57 = vld [vmem:[#allocation2 + $0x148] sm:$0xff] }
 0x121   : > { %2509 = vmatprep.subr.mxu1 %v3920_v0  ;;  %2025 = vmatprep.mubr.f32.mxu1 %v5096_v61  ;;  %v5118_v46 = vpop.f32.mrf.mxu1 }
 0x122   : > { %2510 = vmatpush1.msra.mxu1 %v3302_v33  ;;  %3638 = vmatmul.mubr.msk.f32.gmra.mxu0 %vm176_vm0, %v5103_v4  ;;  %v5198_v33 = vld [vmem:[#allocation2 + $0xd8] sm:$0xff] }
 0x123   : > { %2026 = vmatmul.mubr.f32.gmra.mxu1 %v5107_v39  ;;  %2511 = vmatprep.subr.mxu1 %v3920_v0  ;;  %v3519_v54 = vpop.f32.mrf.mxu1 }
 0x124   : > { %2512 = vmatpush1.msra.mxu1 %v3301_v11  ;;  %3640 = vmatprep.mubr.msk.f32.mxu0 %vm3921_vm3, %v3920_v0 }
 0x125   : > { %2513 = vmatprep.subr.mxu1 %v3920_v0  ;;  %2030 = vmatprep.mubr.f32.mxu1 %v5116_v14 }
 0x126   : > { %2514 = vmatpush1.msra.mxu1 %v3300_v23  ;;  %3641 = vmatmul.mubr.msk.f32.gmra.mxu0 %vm176_vm0, %v5125_v28  ;;  %v5147_v41 = vpop.f32.mrf.mxu1  ;;  %v3325_v23 = vld [vmem:[%s5980_s1 + $0x5b8] sm:$0xff] }
 0x127   : > { %2031 = vmatmul.mubr.f32.gmra.mxu1 %v5129_v36  ;;  %2515 = vmatprep.subr.mxu1 %v3920_v0 }
 0x128   : > { %2516 = vmatpush1.msra.mxu1 %v3299_v18  ;;  %3643 = vmatprep.mubr.msk.f32.mxu0 %vm3921_vm3, %v3920_v0  ;;  %v3522_v15 = vpop.f32.mrf.mxu1  ;;  %v5210_v18 = vld [vmem:[#allocation2 + $0xf8] sm:$0xff] }
 0x129   : > { %2517 = vmatprep.subr.mxu1 %v3920_v0  ;;  %2035 = vmatprep.mubr.f32.mxu1 %v5138_v59  ;;  %v3324_v15 = vld [vmem:[%s5980_s1 + $0x5b0] sm:$0xff] }
 0x12a   : > { %2518 = vmatpush1.msra.mxu1 %v3298_v1  ;;  %3644 = vmatmul.mubr.msk.f32.gmra.mxu0 %vm176_vm0, %v5145_v8 }
 0x12b   : > { %2036 = vmatmul.mubr.f32.gmra.mxu1 %v5151_v13  ;;  %2519 = vmatprep.subr.mxu1 %v3920_v0  ;;  %v420_v55 = vpop.f32.mrf.mxu0 }
 0x12c   : > { %2520 = vmatpush1.msra.mxu1 %v3297_v48  ;;  %3646 = vmatprep.mubr.msk.f32.mxu0 %vm3921_vm3, %v3920_v0  ;;  %v5176_v60 = vpop.f32.mrf.mxu1  ;;  %v571_v34 = vadd.f32 %v4862_v53, %v420_v55  ;;  %v3294_v53 = vld [vmem:[%s5980_s1 + $0x4c0] sm:$0xff]  ;;  %v3323_v55 = vld [vmem:[%s5980_s1 + $0x5a8] sm:$0xff] }
 0x12d   : > { %2521 = vmatprep.subr.mxu1 %v3920_v0  ;;  %2040 = vmatprep.mubr.f32.mxu1 %v5160_v26  ;;  %v422_v49 = vpop.f32.mrf.mxu0 }
 0x12e   : > { %3670 = vmatpush3.msra.mxu0 %v3271_v30  ;;  %2522 = vmatpush1.msra.mxu1 %v3296_v3  ;;  %v3525_v17 = vpop.f32.mrf.mxu1  ;;  %655 = vst.msk [vmem:[#allocation3 - $0x4] sm:$0xf0] %vm654_vm4, %v571_v34  ;;  %v5217_v30 = vld [vmem:[#allocation2 + $0x160] sm:$0xff]  ;;  %v3270_v34 = vld [vmem:[%s5980_s1 + $0x490] sm:$0xff] }
 0x12f   : > { %3647 = vmatmul.mubr.msk.f32.gmra.mxu0 %vm176_vm0, %v5172_v40  ;;  %2041 = vmatmul.mubr.f32.gmra.mxu1 %v5174_v45 }
 0x130   : > { %2523 = vmatprep.subr.mxu1 %v3920_v0  ;;  %3649 = vmatprep.mubr.msk.f32.mxu0 %vm3921_vm3, %v3920_v0  ;;  %v425_v5 = vpop.f32.mrf.mxu0 }
 0x131   : > { %2524 = vmatpush1.msra.mxu1 %v3295_v2  ;;  %2045 = vmatprep.mubr.f32.mxu1 %v5184_v44  ;;  %v5200_v11 = vpop.f32.mrf.mxu1  ;;  %v576_v54 = vadd.f32 %v4879_v63, %v425_v5  ;;  %v5222_v63 = vld [vmem:[#allocation2 + $0xf0] sm:$0xff]  ;;  %v3322_v5 = vld [vmem:[%s5980_s1 + $0x5a0] sm:$0xff] }
 0x132   : > { %2525 = vmatprep.subr.mxu1 %v3920_v0  ;;  %3671 = vmatprep.subr.mxu0 %v3920_v0  ;;  %v427_v1 = vpop.f32.mrf.mxu0 }
 0x133   : > { %2526 = vmatpush1.msra.mxu1 %v3294_v53  ;;  %3650 = vmatmul.mubr.msk.f32.gmra.mxu0 %vm176_vm0, %v5195_v57  ;;  %v3528_v48 = vpop.f32.mrf.mxu1  ;;  %657 = vst.msk [vmem:[#allocation3 + $0x4] sm:$0xff] %vm656_vm5, %v576_v54  ;;  %v5239_v53 = vld [vmem:[#allocation2 + $0x110] sm:$0xff]  ;;  %v5247_v54 = vld [vmem:[#allocation2 + $0x108] sm:$0xff] }
 0x134   : > { %2046 = vmatmul.mubr.f32.gmra.mxu1 %v5198_v33  ;;  %2527 = vmatprep.subr.mxu1 %v3920_v0  ;;  %5993 = vst [vmem:[#allocation7_spill] sm:$0xff] %v5247_v54 }
 0x135   : > { %2528 = vmatpush2.msra.mxu1 %v3325_v23  ;;  %3652 = vmatprep.mubr.msk.f32.mxu0 %vm3921_vm3, %v3920_v0  ;;  %v430_v3 = vpop.f32.mrf.mxu0  ;;  %v5233_v49 = vpop.f32.mrf.mxu1  ;;  %v5245_v23 = vld [vmem:[#allocation2 + $0x178] sm:$0xff] }
 0x136   : > { %2529 = vmatprep.subr.mxu1 %v3920_v0  ;;  %2050 = vmatprep.mubr.f32.mxu1 %v5210_v18  ;;  %v581_v2 = vadd.f32 %v4897_v9, %v430_v3  ;;  %v3321_v3 = vld [vmem:[%s5980_s1 + $0x598] sm:$0xff] }
 0x137   : > { %2530 = vmatpush2.msra.mxu1 %v3324_v15  ;;  %3653 = vmatmul.mubr.msk.f32.gmra.mxu0 %vm176_vm0, %v5217_v30  ;;  %v432_v17 = vpop.f32.mrf.mxu0  ;;  %v3531_v9 = vpop.f32.mrf.mxu1 }
 0x138   : > { %2051 = vmatmul.mubr.f32.gmra.mxu1 %v5222_v63  ;;  %2531 = vmatprep.subr.mxu1 %v3920_v0  ;;  %658 = vst.msk [vmem:[#allocation3 + $0xc] sm:$0xff] %vm656_vm5, %v581_v2  ;;  %v3320_v2 = vld [vmem:[%s5980_s1 + $0x590] sm:$0xff] }
 0x139   : > { %2532 = vmatpush2.msra.mxu1 %v3323_v55  ;;  %3672 = vmatpush3.msra.mxu0 %v3270_v34  ;;  %v435_v1 = vpop.f32.mrf.mxu0  ;;  %v5259_v55 = vld [vmem:[#allocation2 + $0x128] sm:$0xff]  ;;  %v5271_v17 = vld [vmem:[#allocation2 + $0x190] sm:$0xff] }
 0x13a   : > { %2533 = vmatprep.subr.mxu1 %v3920_v0  ;;  %3655 = vmatprep.mubr.msk.f32.mxu0 %vm3921_vm3, %v3920_v0  ;;  %v586_v48 = vadd.f32 %v4915_v19, %v435_v1  ;;  %v5253_v15 = vpop.f32.mrf.mxu1  ;;  %5994 = vst [vmem:[#allocation8_spill] sm:$0xff] %v5259_v55  ;;  %5995 = vst [vmem:[#allocation9_spill] sm:$0xff] %v5271_v17 }
 0x13b   : > { %2055 = vmatprep.mubr.f32.mxu1 %v5239_v53  ;;  %2534 = vmatpush2.msra.mxu1 %v3322_v5  ;;  %v437_v34 = vpop.f32.mrf.mxu0  ;;  %v5274_v5 = vld [vmem:[#allocation2 + $0x120] sm:$0xff] }
 0x13c   : > { %3656 = vmatmul.mubr.msk.f32.gmra.mxu0 %vm176_vm0, %v5245_v23  ;;  %2056 = vmatmul.mubr.f32.gmra.mxu1 %v5247_v54  ;;  %659 = vst.msk [vmem:[#allocation3 + $0x14] sm:$0xff] %vm656_vm5, %v586_v48  ;;  %v3534_v19 = vpop.f32.mrf.mxu1  ;;  %5996 = vst [vmem:[#allocation10_spill] sm:$0xff] %v5274_v5  ;;  %v3319_v48 = vld [vmem:[%s5980_s1 + $0x588] sm:$0xff]  ;;  %v5282_v34 = vld [vmem:[#allocation2 + $0x140] sm:$0xff] }
 0x13d   : > { %2535 = vmatprep.subr.mxu1 %v3920_v0  ;;  %3658 = vmatprep.mubr.msk.f32.mxu0 %vm3921_vm3, %v3920_v0  ;;  %v440_v9 = vpop.f32.mrf.mxu0  ;;  %5997 = vst [vmem:[#allocation11_spill] sm:$0xff] %v5282_v34  ;;  %v3318_v54 = vld [vmem:[%s5980_s1 + $0x580] sm:$0xff] }
 0x13e   : > { %2536 = vmatpush2.msra.mxu1 %v3321_v3  ;;  %2060 = vmatprep.mubr.f32.mxu1 %v5259_v55  ;;  %v5276_v1 = vpop.f32.mrf.mxu1  ;;  %v591_v19 = vadd.f32 %v4938_v47, %v440_v9  ;;  %v5295_v47 = vld [vmem:[#allocation2 + $0x138] sm:$0xff] }
 0x13f   : > { %2537 = vmatprep.subr.mxu1 %v3920_v0  ;;  %3724 = vmatprep.subr.mxu0 %v3920_v0  ;;  %v442_v3 = vpop.f32.mrf.mxu0 }
 0x140   : > { %2538 = vmatpush2.msra.mxu1 %v3320_v2  ;;  %3659 = vmatmul.mubr.msk.f32.gmra.mxu0 %vm176_vm0, %v5271_v17  ;;  %v886_v55 = vpop.f32.mrf.mxu1  ;;  %660 = vst.msk [vmem:[#allocation3 + $0x1c] sm:$0xff] %vm656_vm5, %v591_v19  ;;  %v5313_v3 = vld [vmem:[#allocation2 + $0x158] sm:$0xff]  ;;  %v3316_v17 = vld [vmem:[%s5980_s1 + $0x570] sm:$0xff] }
 0x141   : > { %2061 = vmatmul.mubr.f32.gmra.mxu1 %v5274_v5  ;;  %2539 = vmatprep.subr.mxu1 %v3920_v0  ;;  %v3317_v55 = vld [vmem:[%s5980_s1 + $0x578] sm:$0xff] }
 0x142   : > { %2540 = vmatpush2.msra.mxu1 %v3319_v48  ;;  %2065 = vmatprep.mubr.f32.mxu1 %v5282_v34  ;;  %v445_v2 = vpop.f32.mrf.mxu0  ;;  %v5297_v9 = vpop.f32.mrf.mxu1  ;;  %v5308_v48 = vld [vmem:[%s5980_s1 + $0x5e8] sm:$0xf] }
 0x143   : > { %2541 = vmatprep.subr.mxu1 %v3920_v0  ;;  %3673 = vmatprep.mubr.msk.f32.mxu0 %vm3921_vm3, %v3920_v0  ;;  %v596_v19 = vadd.f32 %v4962_v31, %v445_v2  ;;  %v5323_v31 = vld [vmem:[#allocation2 + $0x150] sm:$0xff]  ;;  %v3315_v2 = vld [vmem:[%s5980_s1 + $0x568] sm:$0xff] }
 0x144   : > { %2542 = vmatpush2.msra.mxu1 %v3318_v54  ;;  %3674 = vmatmul.mubr.msk.f32.vlgmr.msra.gmra.mxu0 %vm176_vm0, %v4912_v16  ;;  %v447_v34 = vpop.f32.mrf.mxu0  ;;  %v891_v5 = vpop.f32.mrf.mxu1  ;;  %5998 = vst [vmem:[#allocation12_spill] sm:$0xff] %v5323_v31 }
 0x145   : > { %2066 = vmatmul.mubr.f32.gmra.mxu1 %v5295_v47  ;;  %2543 = vmatprep.subr.mxu1 %v3920_v0  ;;  %661 = vst.msk [vmem:[#allocation3 + $0x24] sm:$0xff] %vm656_vm5, %v596_v19  ;;  %v5329_v5 = vld [vmem:[#allocation2 + $0x170] sm:$0xff] }
 0x146   : > { %2544 = vmatpush2.msra.mxu1 %v3317_v55  ;;  %3725 = vmatpush3.msk.msra.mxu0 %vm350_vm2, %v5308_v48  ;;  %v450_v16 = vpop.f32.mrf.mxu0  ;;  %v5325_v54 = vpop.f32.mrf.mxu1  ;;  %5999 = vst [vmem:[#allocation13_spill] sm:$0xff] %v5329_v5 }
 0x147   : > { %2545 = vmatprep.subr.mxu1 %v3920_v0  ;;  %2070 = vmatprep.mubr.f32.mxu1 %v5313_v3  ;;  %v601_v34 = vadd.f32 %v4985_v51, %v450_v16  ;;  %v3314_v51 = vld [vmem:[%s5980_s1 + $0x560] sm:$0xff] }
 0x148   : > { %3676 = vmatprep.mubr.msk.f32.mxu0 %vm3921_vm3, %v3920_v0  ;;  %2546 = vmatpush2.msra.mxu1 %v3316_v17  ;;  %v452_v55 = vpop.f32.mrf.mxu0  ;;  %v896_v19 = vpop.f32.mrf.mxu1 }
 0x149   : > { %2071 = vmatmul.mubr.f32.gmra.mxu1 %v5323_v31  ;;  %3677 = vmatmul.mubr.msk.f32.gmra.mxu0 %vm176_vm0, %v4934_v43  ;;  %662 = vst.msk [vmem:[#allocation3 + $0x2c] sm:$0xff] %vm656_vm5, %v601_v34  ;;  %v5350_v55 = vld [vmem:[#allocation2 + $0x168] sm:$0xff]  ;;  %v3313_v34 = vld [vmem:[%s5980_s1 + $0x558] sm:$0xff] }
 0x14a   : > { %2547 = vmatprep.subr.mxu1 %v3920_v0  ;;  %2075 = vmatprep.mubr.f32.mxu1 %v5329_v5  ;;  %v455_v17 = vpop.f32.mrf.mxu0  ;;  %v5346_v16 = vpop.f32.mrf.mxu1  ;;  %v5357_v19 = vld [vmem:[#allocation2 + $0x188] sm:$0xff] }
 0x14b   : > { %2548 = vmatpush2.msra.mxu1 %v3315_v2  ;;  %3679 = vmatprep.mubr.msk.f32.mxu0 %vm3921_vm3, %v3920_v0  ;;  %v606_v43 = vadd.f32 %v5013_v6, %v455_v17  ;;  %v3312_v6 = vld [vmem:[%s5980_s1 + $0x550] sm:$0xff]  ;;  %v3330_v17 = vld [vmem:[%s5980_s1 + $0x5e0] sm:$0xff] }
 0x14c   : > { %2549 = vmatprep.subr.mxu1 %v3920_v0  ;;  %3726 = vmatprep.subr.mxu0 %v3920_v0  ;;  %v457_v5 = vpop.f32.mrf.mxu0  ;;  %v901_v31 = vpop.f32.mrf.mxu1 }
 0x14d   : > { %2550 = vmatpush2.msra.mxu1 %v3314_v51  ;;  %3680 = vmatmul.mubr.msk.f32.gmra.mxu0 %vm176_vm0, %v4953_v20  ;;  %663 = vst.msk [vmem:[#allocation3 + $0x34] sm:$0xff] %vm656_vm5, %v606_v43  ;;  %v5369_v5 = vld [vmem:[#allocation2 + $0x180] sm:$0xff]  ;;  %v3311_v20 = vld [vmem:[%s5980_s1 + $0x548] sm:$0xff] }
 0x14e   : > { %2076 = vmatmul.mubr.f32.gmra.mxu1 %v5350_v55  ;;  %2551 = vmatprep.subr.mxu1 %v3920_v0  ;;  %v460_v2 = vpop.f32.mrf.mxu0 }
 0x14f   : > { %2552 = vmatpush2.msra.mxu1 %v3313_v34  ;;  %2080 = vmatprep.mubr.f32.mxu1 %v5357_v19  ;;  %v611_v31 = vadd.f32 %v5039_v29, %v460_v2  ;;  %v5372_v51 = vpop.f32.mrf.mxu1  ;;  %v3310_v34 = vld [vmem:[%s5980_s1 + $0x540] sm:$0xff] }
 0x150   : > { %2553 = vmatprep.subr.mxu1 %v3920_v0  ;;  %3682 = vmatprep.mubr.msk.f32.mxu0 %vm3921_vm3, %v3920_v0  ;;  %v462_v43 = vpop.f32.mrf.mxu0 }
 0x151   : > { %2554 = vmatpush2.msra.mxu1 %v3312_v6  ;;  %3683 = vmatmul.mubr.msk.f32.gmra.mxu0 %vm176_vm0, %v4971_v37  ;;  %664 = vst.msk [vmem:[#allocation3 + $0x3c] sm:$0xff] %vm656_vm5, %v611_v31  ;;  %v906_v29 = vpop.f32.mrf.mxu1 }
 0x152   : > { %2081 = vmatmul.mubr.f32.gmra.mxu1 %v5369_v5  ;;  %2555 = vmatprep.subr.mxu1 %v3920_v0  ;;  %v465_v2 = vpop.f32.mrf.mxu0 }
 0x153   : > { %2556 = vmatpush2.msra.mxu1 %v3311_v20  ;;  %3727 = vmatpush3.msra.mxu0 %v3330_v17  ;;  %v616_v43 = vadd.f32 %v5066_v42, %v465_v2  ;;  %v5392_v6 = vpop.f32.mrf.mxu1  ;;  %v3329_v42 = vld [vmem:[%s5980_s1 + $0x5d8] sm:$0xff] }
 0x154   : > { %2557 = vmatprep.subr.mxu1 %v3920_v0  ;;  %3685 = vmatprep.mubr.msk.f32.mxu0 %vm3921_vm3, %v3920_v0  ;;  %v467_v37 = vpop.f32.mrf.mxu0 }
 0x155   : > { %2558 = vmatpush2.msra.mxu1 %v3310_v34  ;;  %2559 = vmatprep.mubr.f32.mxu1 %v4992_v22  ;;  %665 = vst.msk [vmem:[#allocation3 + $0x44] sm:$0xff] %vm656_vm5, %v616_v43  ;;  %v911_v31 = vpop.f32.mrf.mxu1 }
 0x156   : > { %3686 = vmatmul.mubr.msk.f32.gmra.mxu0 %vm176_vm0, %v4994_v56  ;;  %2560 = vmatmul.mubr.f32.vlgmr.msra.gmra.mxu1 %v4996_v62  ;;  %v470_v20 = vpop.f32.mrf.mxu0 }
 0x157   : > { %3688 = vmatprep.mubr.msk.f32.mxu0 %vm3921_vm3, %v3920_v0  ;;  %2563 = vmatprep.mubr.f32.mxu1 %v5001_v27  ;;  %v621_v22 = vadd.f32 %v5091_v58, %v470_v20  ;;  %v5409_v29 = vpop.f32.mrf.mxu1  ;;  %v3328_v58 = vld [vmem:[%s5980_s1 + $0x5d0] sm:$0xff] }
 0x158   : > { %3787 = vmatprep.subr.mxu1 %v3920_v0  ;;  %3728 = vmatprep.subr.mxu0 %v3920_v0  ;;  %v472_v56 = vpop.f32.mrf.mxu0 }
 0x159   : > { %3793 = vmatpush3.msk.msra.mxu1 %vm350_vm2, %v5308_v48  ;;  %3729 = vmatpush3.msra.mxu0 %v3329_v42  ;;  %666 = vst.msk [vmem:[#allocation3 + $0x4c] sm:$0xff] %vm656_vm5, %v621_v22  ;;  %v916_v62 = vpop.f32.mrf.mxu1  ;;  %vm3009_vm2 = vcmask 1046534  }
 0x15a   : > { %3689 = vmatmul.mubr.msk.f32.gmra.mxu0 %vm176_vm0, %v5018_v35  ;;  %2564 = vmatmul.mubr.f32.gmra.mxu1 %v5020_v10  ;;  %v475_v27 = vpop.f32.mrf.mxu0  ;;  %v3327_v10 = vld [vmem:[%s5980_s1 + $0x5c8] sm:$0xff] }
 0x15b   : > { %3691 = vmatprep.mubr.msk.f32.mxu0 %vm3921_vm3, %v3920_v0  ;;  %2568 = vmatprep.mubr.f32.mxu1 %v5024_v21  ;;  %v626_v48 = vadd.f32 %v5118_v46, %v475_v27  ;;  %v5426_v34 = vpop.f32.mrf.mxu1 }
 0x15c   : > { %v477_v2 = vpop.f32.mrf.mxu0  ;;  %3730 = vmatprep.subr.mxu0 %v3920_v0  ;;  %3788 = vmatprep.subr.mxu1 %v3920_v0 }
 0x15d   : > { %667 = vst.msk [vmem:[#allocation3 + $0x54] sm:$0xff] %vm656_vm5, %v626_v48  ;;  %v921_v35 = vpop.f32.mrf.mxu1  ;;  %3731 = vmatpush3.msra.mxu0 %v3328_v58  ;;  %3794 = vmatpush3.msra.mxu1 %v3330_v17  ;;  %v1118_v2 = vld [vmem:[#allocation3] sm:$0xff] }
 0x15e   : > { %3692 = vmatmul.mubr.msk.f32.gmra.mxu0 %vm176_vm0, %v5035_v24  ;;  %2569 = vmatmul.mubr.f32.gmra.mxu1 %v5037_v50  ;;  %v480_v21 = vpop.f32.mrf.mxu0 }
 0x15f   : > { %3694 = vmatprep.mubr.msk.f32.mxu0 %vm3921_vm3, %v3920_v0  ;;  %2573 = vmatprep.mubr.f32.mxu1 %v5046_v32  ;;  %v5440_v46 = vpop.f32.mrf.mxu1  ;;  %v631_v43 = vadd.f32 %v5147_v41, %v480_v21  ;;  %v3326_v32 = vld [vmem:[%s5980_s1 + $0x5c0] sm:$0xff] }
 0x160   : > { %3789 = vmatprep.subr.mxu1 %v3920_v0  ;;  %3732 = vmatprep.subr.mxu0 %v3920_v0  ;;  %v482_v24 = vpop.f32.mrf.mxu0 }
 0x161   : > { %v926_v50 = vpop.f32.mrf.mxu1  ;;  %3795 = vmatpush3.msra.mxu1 %v3329_v42  ;;  %3733 = vmatpush3.msra.mxu0 %v3327_v10  ;;  %668 = vst.msk [vmem:[#allocation3 + $0x5c] sm:$0xff] %vm656_vm5, %v631_v43 }
 0x162   : > { %3695 = vmatmul.mubr.msk.f32.gmra.mxu0 %vm176_vm0, %v5060_v38  ;;  %2574 = vmatmul.mubr.f32.gmra.mxu1 %v5062_v7  ;;  %v1119_v50 = vld [vmem:[#allocation3 + $0x8] sm:$0xff] }
 0x163   : > { %3697 = vmatprep.mubr.msk.f32.mxu0 %vm3921_vm3, %v3920_v0  ;;  %2578 = vmatprep.mubr.f32.mxu1 %v5071_v12  ;;  %v485_v41 = vpop.f32.mrf.mxu0  ;;  %v5456_v37 = vpop.f32.mrf.mxu1 }
 0x164   : > { %v636_v17 = vadd.f32 %v5176_v60, %v485_v41  ;;  %3790 = vmatprep.subr.mxu1 %v3920_v0  ;;  %3734 = vmatprep.subr.mxu0 %v3920_v0 }
 0x165   : > { %v487_v38 = vpop.f32.mrf.mxu0  ;;  %3796 = vmatpush3.msra.mxu1 %v3328_v58  ;;  %3735 = vmatpush3.msra.mxu0 %v3326_v32  ;;  %v931_v7 = vpop.f32.mrf.mxu1 }
 0x166   : > { %3698 = vmatmul.mubr.msk.f32.gmra.mxu0 %vm176_vm0, %v5082_v52  ;;  %2579 = vmatmul.mubr.f32.gmra.mxu1 %v5085_v25  ;;  %669 = vst.msk [vmem:[#allocation3 + $0x64] sm:$0xff] %vm656_vm5, %v636_v17 }
 0x167   : > { %3700 = vmatprep.mubr.msk.f32.mxu0 %vm3921_vm3, %v3920_v0  ;;  %2583 = vmatprep.mubr.f32.mxu1 %v5096_v61  ;;  %v490_v12 = vpop.f32.mrf.mxu0 }
 0x168   : > { %v641_v60 = vadd.f32 %v5200_v11, %v490_v12  ;;  %v5468_v31 = vpop.f32.mrf.mxu1  ;;  %3791 = vmatprep.subr.mxu1 %v3920_v0 }
 0x169   : > { %v492_v42 = vpop.f32.mrf.mxu0  ;;  %3797 = vmatpush3.msra.mxu1 %v3327_v10 }
 0x16a   : > { %3701 = vmatmul.mubr.msk.f32.gmra.mxu0 %vm176_vm0, %v5103_v4  ;;  %2584 = vmatmul.mubr.f32.gmra.mxu1 %v5107_v39  ;;  %670 = vst.msk [vmem:[#allocation3 + $0x6c] sm:$0xff] %vm656_vm5, %v641_v60  ;;  %v936_v52 = vpop.f32.mrf.mxu1  ;;  %v6002_v60 = vld [vmem:[#allocation9_spill] sm:$0xff]  ;;  %v6003_v42 = vld [vmem:[#allocation10_spill] sm:$0xff] }
 0x16b   : > { %3703 = vmatprep.mubr.msk.f32.mxu0 %vm3921_vm3, %v3920_v0  ;;  %2588 = vmatprep.mubr.f32.mxu1 %v5116_v14  ;;  %v495_v25 = vpop.f32.mrf.mxu0  ;;  %v1120_v52 = vld [vmem:[#allocation3 + $0x10] sm:$0xff] }
 0x16c   : > { %v5478_v61 = vpop.f32.mrf.mxu1  ;;  %3792 = vmatprep.subr.mxu1 %v3920_v0  ;;  %v646_v11 = vadd.f32 %v5233_v49, %v495_v25 }
 0x16d   : > { %3798 = vmatpush3.msra.mxu1 %v3326_v32  ;;  %v497_v4 = vpop.f32.mrf.mxu0 }
 0x16e   : > { %3704 = vmatmul.mubr.msk.f32.gmra.mxu0 %vm176_vm0, %v5125_v28  ;;  %2589 = vmatmul.mubr.f32.gmra.mxu1 %v5129_v36  ;;  %v941_v39 = vpop.f32.mrf.mxu1  ;;  %671 = vst.msk [vmem:[#allocation3 + $0x74] sm:$0xff] %vm656_vm5, %v646_v11  ;;  %v6004_v4 = vld [vmem:[#allocation11_spill] sm:$0xff] }
 0x16f   : > { %3706 = vmatprep.mubr.msk.f32.mxu0 %vm3921_vm3, %v3920_v0  ;;  %2593 = vmatprep.mubr.f32.mxu1 %v5138_v59 }
 0x170   : > { %v500_v14 = vpop.f32.mrf.mxu0  ;;  %v5490_v49 = vpop.f32.mrf.mxu1 }
 0x171   : > { %v651_v20 = vadd.f32 %v5253_v15, %v500_v14  ;;  %v2353_v14 = vld [vmem:[#allocation2 + $0x10] sm:$0xff] }
 0x172   : > { %3707 = vmatmul.mubr.msk.f32.gmra.mxu0 %vm176_vm0, %v5145_v8  ;;  %2594 = vmatmul.mubr.f32.gmra.mxu1 %v5151_v13  ;;  %v502_v28 = vpop.f32.mrf.mxu0  ;;  %v946_v36 = vpop.f32.mrf.mxu1 }
 0x173   : > { %3709 = vmatprep.mubr.msk.f32.mxu0 %vm3921_vm3, %v3920_v0  ;;  %2598 = vmatprep.mubr.f32.mxu1 %v5160_v26  ;;  %673 = vst.msk [vmem:[#allocation3 + $0x7c] sm:$0xf] %vm672_vm6, %v651_v20 }
 0x174   : > { %v1034_v59 = vpop.f32.mrf.mxu0 }
 0x175   : > { %v5498_v22 = vpop.f32.mrf.mxu1  ;;  %v1035_v56 = vadd.f32 %v1034_v59, %v5276_v1 }
 0x176   : > { %3710 = vmatmul.mubr.msk.f32.gmra.mxu0 %vm176_vm0, %v5172_v40  ;;  %2599 = vmatmul.mubr.f32.gmra.mxu1 %v5174_v45  ;;  %v3549_v15 = vpop.f32.mrf.mxu0 }
 0x177   : > { %3712 = vmatprep.mubr.msk.f32.mxu0 %vm3921_vm3, %v3920_v0  ;;  %2603 = vmatprep.mubr.f32.mxu1 %v5184_v44  ;;  %v951_v13 = vpop.f32.mrf.mxu1  ;;  %v1152_v58 = vrot.slane %v1035_v56, 5  ;;  %v1121_v56 = vld [vmem:[#allocation3 + $0x18] sm:$0xff] }
 0x179   : > { %v5507_v26 = vpop.f32.mrf.mxu1  ;;  %v1039_v62 = vpop.f32.mrf.mxu0 }
 0x17a   : > { %3713 = vmatmul.mubr.msk.f32.gmra.mxu0 %vm176_vm0, %v5195_v57  ;;  %2604 = vmatmul.mubr.f32.gmra.mxu1 %v5198_v33  ;;  %v1040_v27 = vadd.f32 %v1039_v62, %v5297_v9  ;;  %v2356_v62 = vld [vmem:[#allocation2 + $0x28] sm:$0xff] }
 0x17b   : > { %3715 = vmatprep.mubr.msk.f32.mxu0 %vm3921_vm3, %v3920_v0  ;;  %2608 = vmatprep.mubr.f32.mxu1 %v5210_v18  ;;  %v956_v45 = vpop.f32.mrf.mxu1  ;;  %v3552_v44 = vpop.f32.mrf.mxu0 }
 0x17c   : > { %v1153_v1 = vrot.slane %v1040_v27, 5 }
 0x17d   : > { %v1044_v48 = vpop.f32.mrf.mxu0 }
 0x17e   : > { %3716 = vmatmul.mubr.msk.f32.gmra.mxu0 %vm176_vm0, %v5217_v30  ;;  %2609 = vmatmul.mubr.f32.gmra.mxu1 %v5222_v63  ;;  %v1154_v33 = vsel %vm1151_vm7, %v1152_v58, %v1153_v1  ;;  %v5520_v9 = vpop.f32.mrf.mxu1  ;;  %v1045_v35 = vadd.f32 %v1044_v48, %v5325_v54  ;;  %v6000_v63 = vld [vmem:[#allocation7_spill] sm:$0xff] }
 0x17f   : > { %3718 = vmatprep.mubr.msk.f32.mxu0 %vm3921_vm3, %v3920_v0  ;;  %2613 = vmatprep.mubr.f32.mxu1 %v5239_v53  ;;  %v1201_v18 = vadd.f32 %v1154_v33, %v1118_v2  ;;  %v3555_v10 = vpop.f32.mrf.mxu0  ;;  %v6001_v53 = vld [vmem:[#allocation8_spill] sm:$0xff]  ;;  %v6006_v2 = vld [vmem:[#allocation13_spill] sm:$0xff] }
 0x180   : > { %v1155_v21 = vrot.slane %v1045_v35, 5  ;;  %v961_v43 = vpop.f32.mrf.mxu1  ;;  %v1122_v33 = vld [vmem:[#allocation3 + $0x20] sm:$0xff]  ;;  %v2359_v35 = vld [vmem:[#allocation2 + $0x40] sm:$0xff] }
 0x181   : > { %1217 = vst.msk [vmem:[#allocation3] sm:$0xff] %vm656_vm5, %v1201_v18  ;;  %v1049_v24 = vpop.f32.mrf.mxu0 }
 0x182   : > { %3719 = vmatmul.mubr.msk.f32.gmra.mxu0 %vm176_vm0, %v5245_v23  ;;  %2614 = vmatmul.mubr.f32.gmra.mxu1 %v6000_v63  ;;  %v1156_v54 = vsel %vm1151_vm7, %v1153_v1, %v1155_v21  ;;  %v5531_v32 = vpop.f32.mrf.mxu1  ;;  %v1050_v41 = vadd.f32 %v1049_v24, %v5346_v16  ;;  %v6005_v1 = vld [vmem:[#allocation12_spill] sm:$0xff] }
 0x183   : > { %3721 = vmatprep.mubr.msk.f32.mxu0 %vm3921_vm3, %v3920_v0  ;;  %2618 = vmatprep.mubr.f32.mxu1 %v6001_v53  ;;  %v1202_v17 = vadd.f32 %v1156_v54, %v1119_v50  ;;  %v3558_v38 = vpop.f32.mrf.mxu0  ;;  %v1123_v54 = vld [vmem:[#allocation3 + $0x28] sm:$0xff] }
 0x184   : > { %v1157_v7 = vrot.slane %v1050_v41, 5  ;;  %v966_v12 = vpop.f32.mrf.mxu1  ;;  %v2362_v41 = vld [vmem:[#allocation2 + $0x58] sm:$0xff] }
 0x185   : > { %1218 = vst.msk [vmem:[#allocation3 + $0x8] sm:$0xff] %vm656_vm5, %v1202_v17  ;;  %v1124_v12 = vld [vmem:[#allocation3 + $0x30] sm:$0xff] }
 0x186   : > { %3722 = vmatmul.mubr.msk.f32.gmra.mxu0 %vm176_vm0, %v6002_v60  ;;  %2619 = vmatmul.mubr.f32.gmra.mxu1 %v6003_v42  ;;  %v1158_v25 = vsel %vm1151_vm7, %v1155_v21, %v1157_v7  ;;  %v1054_v16 = vpop.f32.mrf.mxu0  ;;  %v5542_v11 = vpop.f32.mrf.mxu1  ;;  %v2365_v42 = vld [vmem:[#allocation2 + $0x70] sm:$0xff] }
 0x187   : > { %2623 = vmatprep.mubr.f32.mxu1 %v6004_v4  ;;  %3736 = vmatprep.mubr.msk.f32.mxu0 %vm3921_vm3, %v3920_v0  ;;  %v1203_v39 = vadd.f32 %v1158_v25, %v1120_v52  ;;  %v1055_v20 = vadd.f32 %v1054_v16, %v5372_v51 }
 0x188   : > { %v3561_v28 = vpop.f32.mrf.mxu0  ;;  %v1445_v36 = vpop.f32.mrf.mxu1 }
 0x189   : > { %1219 = vst.msk [vmem:[#allocation3 + $0x10] sm:$0xff] %vm656_vm5, %v1203_v39  ;;  %v1159_v59 = vrot.slane %v1055_v20, 5  ;;  %v2368_v28 = vld [vmem:[#allocation2 + $0x88] sm:$0xff] }
 0x18a   : > { %2624 = vmatmul.mubr.f32.gmra.mxu1 %v5295_v47  ;;  %3737 = vmatmul.mubr.msk.f32.vlgmr.msra.gmra.mxu0 %vm176_vm0, %v2353_v14  ;;  %v1059_v15 = vpop.f32.mrf.mxu0  ;;  %v5551_v13 = vpop.f32.mrf.mxu1 }
 0x18b   : > { %2628 = vmatprep.mubr.f32.mxu1 %v5313_v3  ;;  %3739 = vmatprep.mubr.msk.f32.mxu0 %vm3921_vm3, %v3920_v0  ;;  %v1160_v51 = vsel %vm1151_vm7, %v1157_v7, %v1159_v59  ;;  %v1060_v27 = vadd.f32 %v1059_v15, %v5392_v6 }
 0x18c   : > { %v1204_v45 = vadd.f32 %v1160_v51, %v1121_v56  ;;  %v3564_v44 = vpop.f32.mrf.mxu0  ;;  %v1450_v58 = vpop.f32.mrf.mxu1 }
 0x18d   : > { %v1161_v47 = vrot.slane %v1060_v27, 5 }
 0x18e   : > { %1220 = vst.msk [vmem:[#allocation3 + $0x18] sm:$0xff] %vm656_vm5, %v1204_v45  ;;  %2629 = vmatmul.mubr.f32.gmra.mxu1 %v6005_v1  ;;  %3740 = vmatmul.mubr.msk.f32.gmra.mxu0 %vm176_vm0, %v2356_v62  ;;  %v1064_v3 = vpop.f32.mrf.mxu0  ;;  %v5561_v48 = vpop.f32.mrf.mxu1  ;;  %v2371_v45 = vld [vmem:[#allocation2 + $0xa0] sm:$0xff] }
 0x18f   : > { %2633 = vmatprep.mubr.f32.mxu1 %v6006_v2  ;;  %3742 = vmatprep.mubr.msk.f32.mxu0 %vm3921_vm3, %v3920_v0  ;;  %v1162_v6 = vsel %vm1151_vm7, %v1159_v59, %v1161_v47  ;;  %v1065_v18 = vadd.f32 %v1064_v3, %v5409_v29 }
 0x190   : > { %v1205_v10 = vadd.f32 %v1162_v6, %v1122_v33  ;;  %v3567_v21 = vpop.f32.mrf.mxu0  ;;  %v1455_v43 = vpop.f32.mrf.mxu1  ;;  %v2374_v6 = vld [vmem:[#allocation2 + $0xb8] sm:$0xff] }
 0x191   : > { %v1163_v24 = vrot.slane %v1065_v18, 5 }
 0x192   : > { %1221 = vst.msk [vmem:[#allocation3 + $0x20] sm:$0xff] %vm656_vm5, %v1205_v10  ;;  %2634 = vmatmul.mubr.f32.gmra.mxu1 %v5350_v55  ;;  %3743 = vmatmul.mubr.msk.f32.gmra.mxu0 %vm176_vm0, %v2359_v35  ;;  %v1069_v63 = vpop.f32.mrf.mxu0  ;;  %v5571_v50 = vpop.f32.mrf.mxu1 }
 0x193   : > { %2638 = vmatprep.mubr.f32.mxu1 %v5357_v19  ;;  %3745 = vmatprep.mubr.msk.f32.mxu0 %vm3921_vm3, %v3920_v0  ;;  %v1164_v29 = vsel %vm1151_vm7, %v1161_v47, %v1163_v24  ;;  %v1070_v53 = vadd.f32 %v1069_v63, %v5426_v34  ;;  %v2377_v63 = vld [vmem:[#allocation2 + $0xd0] sm:$0xff] }
 0x194   : > { %v1206_v17 = vadd.f32 %v1164_v29, %v1123_v54  ;;  %v3570_v38 = vpop.f32.mrf.mxu0  ;;  %v1460_v7 = vpop.f32.mrf.mxu1 }
 0x195   : > { %v1165_v55 = vrot.slane %v1070_v53, 5  ;;  %v2380_v7 = vld [vmem:[#allocation2 + $0xe8] sm:$0xff] }
 0x196   : > { %1222 = vst.msk [vmem:[#allocation3 + $0x28] sm:$0xff] %vm656_vm5, %v1206_v17  ;;  %2639 = vmatmul.mubr.f32.gmra.mxu1 %v5369_v5  ;;  %3746 = vmatmul.mubr.msk.f32.gmra.mxu0 %vm176_vm0, %v2362_v41  ;;  %v1074_v19 = vpop.f32.mrf.mxu0 }
 0x197   : > { %3748 = vmatprep.mubr.msk.f32.mxu0 %vm3921_vm3, %v3920_v0  ;;  %3769 = vmatprep.mubr.msk.f32.mxu1 %vm3921_vm3, %v3920_v0  ;;  %v1166_v34 = vsel %vm1151_vm7, %v1163_v24, %v1165_v55  ;;  %v1075_v52 = vadd.f32 %v1074_v19, %v5440_v46  ;;  %v5587_v25 = vpop.f32.mrf.mxu1  ;;  %v1125_v46 = vld [vmem:[#allocation3 + $0x38] sm:$0xff] }
 0x198   : > { %v1207_v16 = vadd.f32 %v1166_v34, %v1124_v12  ;;  %v3573_v4 = vpop.f32.mrf.mxu0  ;;  %v1129_v19 = vld [vmem:[#allocation3 + $0x58] sm:$0xff] }
 0x199   : > { %v1167_v5 = vrot.slane %v1075_v52, 5  ;;  %v1465_v39 = vpop.f32.mrf.mxu1  ;;  %v2383_v4 = vld [vmem:[#allocation2 + $0x100] sm:$0xff] }
 0x19a   : > { %1223 = vst.msk [vmem:[#allocation3 + $0x30] sm:$0xff] %vm656_vm5, %v1207_v16  ;;  %3749 = vmatmul.mubr.msk.f32.gmra.mxu0 %vm176_vm0, %v2365_v42  ;;  %3770 = vmatmul.mubr.msk.f32.vlgmr.msra.gmra.mxu1 %vm176_vm0, %v5145_v8  ;;  %v1079_v14 = vpop.f32.mrf.mxu0  ;;  %v1130_v39 = vld [vmem:[#allocation3 + $0x60] sm:$0xff] }
 0x19b   : > { %3751 = vmatprep.mubr.msk.f32.mxu0 %vm3921_vm3, %v3920_v0  ;;  %3772 = vmatprep.mubr.msk.f32.mxu1 %vm3921_vm3, %v3920_v0  ;;  %v1168_v20 = vsel %vm1151_vm7, %v1165_v55, %v1167_v5  ;;  %v1080_v36 = vadd.f32 %v1079_v14, %v5456_v37  ;;  %v5599_v59 = vpop.f32.mrf.mxu1  ;;  %v1126_v37 = vld [vmem:[#allocation3 + $0x40] sm:$0xff] }
 0x19c   : > { %v1208_v15 = vadd.f32 %v1168_v20, %v1125_v46  ;;  %v3576_v56 = vpop.f32.mrf.mxu0 }
 0x19d   : > { %v1169_v51 = vrot.slane %v1080_v36, 5  ;;  %v1470_v62 = vpop.f32.mrf.mxu1 }
 0x19e   : > { %1224 = vst.msk [vmem:[#allocation3 + $0x38] sm:$0xff] %vm656_vm5, %v1208_v15  ;;  %3752 = vmatmul.mubr.msk.f32.gmra.mxu0 %vm176_vm0, %v2368_v28  ;;  %3773 = vmatmul.mubr.msk.f32.gmra.mxu1 %vm176_vm0, %v5172_v40  ;;  %v1084_v8 = vpop.f32.mrf.mxu0  ;;  %v1131_v15 = vld [vmem:[#allocation3 + $0x68] sm:$0xff] }
 0x19f   : > { %3754 = vmatprep.mubr.msk.f32.mxu0 %vm3921_vm3, %v3920_v0  ;;  %3775 = vmatprep.mubr.msk.f32.mxu1 %vm3921_vm3, %v3920_v0  ;;  %v1170_v27 = vsel %vm1151_vm7, %v1167_v5, %v1169_v51  ;;  %v1085_v44 = vadd.f32 %v1084_v8, %v5468_v31  ;;  %v5611_v58 = vpop.f32.mrf.mxu1  ;;  %v1127_v31 = vld [vmem:[#allocation3 + $0x48] sm:$0xff] }
 0x1a0   : > { %v1209_v47 = vadd.f32 %v1170_v27, %v1126_v37  ;;  %v3579_v1 = vpop.f32.mrf.mxu0 }
 0x1a1   : > { %v1171_v3 = vrot.slane %v1085_v44, 5  ;;  %v1475_v2 = vpop.f32.mrf.mxu1  ;;  %v1132_v44 = vld [vmem:[#allocation3 + $0x70] sm:$0xff] }
 0x1a2   : > { %1225 = vst.msk [vmem:[#allocation3 + $0x40] sm:$0xff] %vm656_vm5, %v1209_v47  ;;  %3755 = vmatmul.mubr.msk.f32.gmra.mxu0 %vm176_vm0, %v2371_v45  ;;  %3776 = vmatmul.mubr.msk.f32.gmra.mxu1 %vm176_vm0, %v5195_v57  ;;  %v1089_v40 = vpop.f32.mrf.mxu0  ;;  %v1128_v57 = vld [vmem:[#allocation3 + $0x50] sm:$0xff] }
 0x1a3   : > { %3757 = vmatprep.mubr.msk.f32.mxu0 %vm3921_vm3, %v3920_v0  ;;  %3778 = vmatprep.mubr.msk.f32.mxu1 %vm3921_vm3, %v3920_v0  ;;  %v1172_v33 = vsel %vm1151_vm7, %v1169_v51, %v1171_v3  ;;  %v1090_v35 = vadd.f32 %v1089_v40, %v5478_v61  ;;  %v5623_v18 = vpop.f32.mrf.mxu1 }
 0x1a4   : > { %v1210_v10 = vadd.f32 %v1172_v33, %v1127_v31  ;;  %v3582_v21 = vpop.f32.mrf.mxu0 }
 0x1a5   : > { %v1173_v43 = vrot.slane %v1090_v35, 5  ;;  %v1480_v24 = vpop.f32.mrf.mxu1 }
 0x1a6   : > { %1226 = vst.msk [vmem:[#allocation3 + $0x48] sm:$0xff] %vm656_vm5, %v1210_v10  ;;  %3758 = vmatmul.mubr.msk.f32.gmra.mxu0 %vm176_vm0, %v2374_v6  ;;  %3779 = vmatmul.mubr.msk.f32.gmra.mxu1 %vm176_vm0, %v5217_v30  ;;  %v1133_v6 = vld [vmem:[#allocation3 + $0x78] sm:$0xff] }
 0x1a7   : > { %3760 = vmatprep.mubr.msk.f32.mxu0 %vm3921_vm3, %v3920_v0  ;;  %3781 = vmatprep.mubr.msk.f32.mxu1 %vm3921_vm3, %v3920_v0  ;;  %v1174_v61 = vsel %vm1151_vm7, %v1171_v3, %v1173_v43  ;;  %v1094_v54 = vpop.f32.mrf.mxu0  ;;  %v5634_v29 = vpop.f32.mrf.mxu1 }
 0x1a8   : > { %v1211_v41 = vadd.f32 %v1174_v61, %v1128_v57  ;;  %v1095_v53 = vadd.f32 %v1094_v54, %v5490_v49 }
 0x1a9   : > { %v3585_v17 = vpop.f32.mrf.mxu0  ;;  %v1485_v38 = vpop.f32.mrf.mxu1 }
 0x1aa   : > { %1227 = vst.msk [vmem:[#allocation3 + $0x50] sm:$0xff] %vm656_vm5, %v1211_v41  ;;  %3761 = vmatmul.mubr.msk.f32.gmra.mxu0 %vm176_vm0, %v2377_v63  ;;  %3782 = vmatmul.mubr.msk.f32.gmra.mxu1 %vm176_vm0, %v5245_v23  ;;  %v1175_v30 = vrot.slane %v1095_v53, 5 }
 0x1ab   : > { %3763 = vmatprep.mubr.msk.f32.mxu0 %vm3921_vm3, %v3920_v0  ;;  %3784 = vmatprep.mubr.msk.f32.mxu1 %vm3921_vm3, %v3920_v0  ;;  %v1099_v55 = vpop.f32.mrf.mxu0 }
 0x1ac   : > { %v1176_v49 = vsel %vm1151_vm7, %v1173_v43, %v1175_v30  ;;  %v1100_v12 = vadd.f32 %v1099_v55, %v5498_v22  ;;  %v5647_v34 = vpop.f32.mrf.mxu1 }
 0x1ad   : > { %v1212_v42 = vadd.f32 %v1176_v49, %v1129_v19  ;;  %v3588_v52 = vpop.f32.mrf.mxu0 }
 0x1ae   : > { %3764 = vmatmul.mubr.msk.f32.gmra.mxu0 %vm176_vm0, %v2380_v7  ;;  %3785 = vmatmul.mubr.msk.f32.gmra.mxu1 %vm176_vm0, %v6002_v60  ;;  %v1177_v23 = vrot.slane %v1100_v12, 5  ;;  %v1490_v16 = vpop.f32.mrf.mxu1  ;;  %v1678_v52 = vld [vmem:[#allocation3 + $0x8] sm:$0xff] }
 0x1af   : > { %1228 = vst.msk [vmem:[#allocation3 + $0x58] sm:$0xff] %vm656_vm5, %v1212_v42  ;;  %3766 = vmatprep.mubr.msk.f32.mxu0 %vm3921_vm3, %v3920_v0  ;;  %v1104_v5 = vpop.f32.mrf.mxu0  ;;  %vm3012_vm3 = vcmask 1047559  }
 0x1b0   : > { %v1178_v22 = vsel %vm1151_vm7, %v1175_v30, %v1177_v23  ;;  %v1105_v14 = vadd.f32 %v1104_v5, %v5507_v26  ;;  %v5657_v46 = vpop.f32.mrf.mxu1  ;;  %v1677_v30 = vld [vmem:[#allocation3] sm:$0xff] }
 0x1b1   : > { %v1213_v20 = vadd.f32 %v1178_v22, %v1130_v39  ;;  %v3591_v28 = vpop.f32.mrf.mxu0 }
 0x1b2   : > { %3767 = vmatmul.mubr.msk.f32.gmra.mxu0 %vm176_vm0, %v2383_v4  ;;  %v1179_v60 = vrot.slane %v1105_v14, 5  ;;  %v1495_v36 = vpop.f32.mrf.mxu1  ;;  %vm3003_vm0 = vcmask 1044484  }
 0x1b3   : > { %1229 = vst.msk [vmem:[#allocation3 + $0x60] sm:$0xff] %vm656_vm5, %v1213_v20 }
 0x1b4   : > { %v1180_v0 = vsel %vm1151_vm7, %v1177_v23, %v1179_v60  ;;  %v1109_v56 = vpop.f32.mrf.mxu0  ;;  %v5662_v51 = vpop.f32.mrf.mxu1 }
 0x1b5   : > { %v1214_v62 = vadd.f32 %v1180_v0, %v1131_v15  ;;  %v1110_v8 = vadd.f32 %v1109_v56, %v5520_v9 }
 0x1b6   : > { %v3594_v26 = vpop.f32.mrf.mxu0  ;;  %v1500_v37 = vpop.f32.mrf.mxu1 }
 0x1b7   : > { %1230 = vst.msk [vmem:[#allocation3 + $0x68] sm:$0xff] %vm656_vm5, %v1214_v62  ;;  %v1181_v27 = vrot.slane %v1110_v8, 5  ;;  %v1680_v26 = vld [vmem:[#allocation3 + $0x18] sm:$0xff] }
 0x1b8   : > { %v1114_v45 = vpop.f32.mrf.mxu0 }
 0x1b9   : > { %v1182_v47 = vsel %vm1151_vm7, %v1179_v60, %v1181_v27  ;;  %v1115_v1 = vadd.f32 %v1114_v45, %v5531_v32  ;;  %v5668_v3 = vpop.f32.mrf.mxu1 }
 0x1ba   : > { %v1215_v2 = vadd.f32 %v1182_v47, %v1132_v44  ;;  %v3597_v40 = vpop.f32.mrf.mxu0 }
 0x1bb   : > { %v1183_v31 = vrot.slane %v1115_v1, 5  ;;  %v1505_v33 = vpop.f32.mrf.mxu1  ;;  %v1681_v40 = vld [vmem:[#allocation3 + $0x20] sm:$0xff] }
 0x1bc   : > { %1231 = vst.msk [vmem:[#allocation3 + $0x70] sm:$0xff] %vm656_vm5, %v1215_v2  ;;  %v1593_v9 = vpop.f32.mrf.mxu0 }
 0x1bd   : > { %v1184_v35 = vsel %vm1151_vm7, %v1181_v27, %v1183_v31  ;;  %v5672_v10 = vpop.f32.mrf.mxu1  ;;  %v1594_v32 = vadd.f32 %v1593_v9, %v5542_v11 }
 0x1be   : > { %v1216_v21 = vadd.f32 %v1184_v35, %v1133_v6  ;;  %v3612_v43 = vpop.f32.mrf.mxu0 }
 0x1bf   : > { %v1510_v24 = vpop.f32.mrf.mxu1  ;;  %v1711_v53 = vrot.slane %v1594_v32, 6 }
 0x1c0   : > { %1232 = vst.msk [vmem:[#allocation3 + $0x78] sm:$0xff] %vm656_vm5, %v1216_v21  ;;  %v1682_v24 = vld [vmem:[#allocation3 + $0x28] sm:$0xff] }
 0x1c1   : > { %v5676_v57 = vpop.f32.mrf.mxu1  ;;  %v1598_v61 = vpop.f32.mrf.mxu0 }
 0x1c2   : > { %v1599_v63 = vadd.f32 %v1598_v61, %v5551_v13 }
 0x1c3   : > { %v1515_v54 = vpop.f32.mrf.mxu1  ;;  %v3615_v41 = vpop.f32.mrf.mxu0 }
 0x1c4   : > { %v1712_v17 = vrot.slane %v1599_v63, 6 }
 0x1c5   : > { %v1603_v38 = vpop.f32.mrf.mxu0 }
 0x1c6   : > { %v1713_v7 = vsel %vm1710_vm8, %v1711_v53, %v1712_v17  ;;  %v5680_v55 = vpop.f32.mrf.mxu1  ;;  %v1604_v19 = vadd.f32 %v1603_v38, %v5561_v48  ;;  %v1679_v48 = vld [vmem:[#allocation3 + $0x10] sm:$0xff] }
 0x1c7   : > { %v1760_v49 = vadd.f32 %v1713_v7, %v1677_v30  ;;  %v3618_v11 = vpop.f32.mrf.mxu0 }
 0x1c8   : > { %v1714_v12 = vrot.slane %v1604_v19, 6  ;;  %v1520_v42 = vpop.f32.mrf.mxu1 }
 0x1c9   : > { %1776 = vst.msk [vmem:[#allocation3] sm:$0xff] %vm656_vm5, %v1760_v49  ;;  %v1608_v13 = vpop.f32.mrf.mxu0  ;;  %v1684_v42 = vld [vmem:[#allocation3 + $0x38] sm:$0xff] }
 0x1ca   : > { %v1715_v23 = vsel %vm1710_vm8, %v1712_v17, %v1714_v12  ;;  %v5685_v16 = vpop.f32.mrf.mxu1  ;;  %v1609_v4 = vadd.f32 %v1608_v13, %v5571_v50  ;;  %v1683_v17 = vld [vmem:[#allocation3 + $0x30] sm:$0xff] }
 0x1cb   : > { %v1761_v5 = vadd.f32 %v1715_v23, %v1678_v52  ;;  %v3621_v39 = vpop.f32.mrf.mxu0 }
 0x1cc   : > { %v1716_v22 = vrot.slane %v1609_v4, 6  ;;  %v1525_v14 = vpop.f32.mrf.mxu1 }
 0x1cd   : > { %1777 = vst.msk [vmem:[#allocation3 + $0x8] sm:$0xff] %vm656_vm5, %v1761_v5  ;;  %v1685_v14 = vld [vmem:[#allocation3 + $0x40] sm:$0xff] }
 0x1ce   : > { %v1717_v20 = vsel %vm1710_vm8, %v1714_v12, %v1716_v22  ;;  %v1613_v28 = vpop.f32.mrf.mxu0  ;;  %v5690_v60 = vpop.f32.mrf.mxu1 }
 0x1cf   : > { %v1762_v36 = vadd.f32 %v1717_v20, %v1679_v48  ;;  %v1614_v15 = vadd.f32 %v1613_v28, %v5587_v25 }
 0x1d0   : > { %v3624_v0 = vpop.f32.mrf.mxu0  ;;  %v2004_v56 = vpop.f32.mrf.mxu1 }
 0x1d1   : > { %1778 = vst.msk [vmem:[#allocation3 + $0x10] sm:$0xff] %vm656_vm5, %v1762_v36  ;;  %v1718_v50 = vrot.slane %v1614_v15, 6 }
 0x1d2   : > { %v1618_v62 = vpop.f32.mrf.mxu0  ;;  %v5694_v8 = vpop.f32.mrf.mxu1 }
 0x1d3   : > { %v1719_v37 = vsel %vm1710_vm8, %v1716_v22, %v1718_v50  ;;  %v1619_v27 = vadd.f32 %v1618_v62, %v5599_v59 }
 0x1d4   : > { %v1763_v45 = vadd.f32 %v1719_v37, %v1680_v26  ;;  %v3627_v44 = vpop.f32.mrf.mxu0  ;;  %v2009_v47 = vpop.f32.mrf.mxu1 }
 0x1d5   : > { %v1720_v1 = vrot.slane %v1619_v27, 6  ;;  %v1687_v47 = vld [vmem:[#allocation3 + $0x50] sm:$0xff] }
 0x1d6   : > { %1779 = vst.msk [vmem:[#allocation3 + $0x18] sm:$0xff] %vm656_vm5, %v1763_v45  ;;  %v1623_v25 = vpop.f32.mrf.mxu0  ;;  %v5699_v2 = vpop.f32.mrf.mxu1 }
 0x1d7   : > { %v1721_v31 = vsel %vm1710_vm8, %v1718_v50, %v1720_v1  ;;  %v1624_v33 = vadd.f32 %v1623_v25, %v5611_v58  ;;  %v1686_v50 = vld [vmem:[#allocation3 + $0x48] sm:$0xff] }
 0x1d8   : > { %v1764_v9 = vadd.f32 %v1721_v31, %v1681_v40  ;;  %v3630_v6 = vpop.f32.mrf.mxu0  ;;  %v2014_v35 = vpop.f32.mrf.mxu1 }
 0x1d9   : > { %v1722_v21 = vrot.slane %v1624_v33, 6 }
 0x1da   : > { %1780 = vst.msk [vmem:[#allocation3 + $0x20] sm:$0xff] %vm656_vm5, %v1764_v9  ;;  %v1628_v59 = vpop.f32.mrf.mxu0  ;;  %v5704_v43 = vpop.f32.mrf.mxu1 }
 0x1db   : > { %v1723_v32 = vsel %vm1710_vm8, %v1720_v1, %v1722_v21  ;;  %v1629_v61 = vadd.f32 %v1628_v59, %v5623_v18 }
 0x1dc   : > { %v1765_v63 = vadd.f32 %v1723_v32, %v1682_v24  ;;  %v3633_v54 = vpop.f32.mrf.mxu0  ;;  %v2019_v41 = vpop.f32.mrf.mxu1 }
 0x1dd   : > { %v1724_v53 = vrot.slane %v1629_v61, 6 }
 0x1de   : > { %1781 = vst.msk [vmem:[#allocation3 + $0x28] sm:$0xff] %vm656_vm5, %v1765_v63  ;;  %v1633_v58 = vpop.f32.mrf.mxu0 }
 0x1df   : > { %v1725_v38 = vsel %vm1710_vm8, %v1722_v21, %v1724_v53  ;;  %v1634_v30 = vadd.f32 %v1633_v58, %v5634_v29  ;;  %v5711_v7 = vpop.f32.mrf.mxu1  ;;  %v1688_v21 = vld [vmem:[#allocation3 + $0x58] sm:$0xff] }
 0x1e0   : > { %v1766_v19 = vadd.f32 %v1725_v38, %v1683_v17  ;;  %v3636_v49 = vpop.f32.mrf.mxu0 }
 0x1e1   : > { %v1726_v11 = vrot.slane %v1634_v30, 6  ;;  %v2024_v12 = vpop.f32.mrf.mxu1 }
 0x1e2   : > { %1782 = vst.msk [vmem:[#allocation3 + $0x30] sm:$0xff] %vm656_vm5, %v1766_v19  ;;  %v1638_v18 = vpop.f32.mrf.mxu0 }
 0x1e3   : > { %v1727_v13 = vsel %vm1710_vm8, %v1724_v53, %v1726_v11  ;;  %v1639_v52 = vadd.f32 %v1638_v18, %v5647_v34  ;;  %v5716_v23 = vpop.f32.mrf.mxu1  ;;  %v1689_v53 = vld [vmem:[#allocation3 + $0x60] sm:$0xff] }
 0x1e4   : > { %v1767_v4 = vadd.f32 %v1727_v13, %v1684_v42  ;;  %v3639_v5 = vpop.f32.mrf.mxu0 }
 0x1e5   : > { %v1728_v39 = vrot.slane %v1639_v52, 6  ;;  %v2029_v29 = vpop.f32.mrf.mxu1 }
 0x1e6   : > { %1783 = vst.msk [vmem:[#allocation3 + $0x38] sm:$0xff] %vm656_vm5, %v1767_v4  ;;  %v1643_v22 = vpop.f32.mrf.mxu0  ;;  %v1691_v29 = vld [vmem:[#allocation3 + $0x70] sm:$0xff] }
 0x1e7   : > { %v1729_v48 = vsel %vm1710_vm8, %v1726_v11, %v1728_v39  ;;  %v1644_v20 = vadd.f32 %v1643_v22, %v5657_v46  ;;  %v5721_v28 = vpop.f32.mrf.mxu1  ;;  %v1690_v11 = vld [vmem:[#allocation3 + $0x68] sm:$0xff] }
 0x1e8   : > { %v1768_v36 = vadd.f32 %v1729_v48, %v1685_v14  ;;  %v3642_v15 = vpop.f32.mrf.mxu0 }
 0x1e9   : > { %v1730_v0 = vrot.slane %v1644_v20, 6  ;;  %v2034_v34 = vpop.f32.mrf.mxu1 }
 0x1ea   : > { %1784 = vst.msk [vmem:[#allocation3 + $0x40] sm:$0xff] %vm656_vm5, %v1768_v36  ;;  %v1648_v56 = vpop.f32.mrf.mxu0  ;;  %v1692_v34 = vld [vmem:[#allocation3 + $0x78] sm:$0xff] }
 0x1eb   : > { %v1731_v62 = vsel %vm1710_vm8, %v1728_v39, %v1730_v0  ;;  %v1649_v26 = vadd.f32 %v1648_v56, %v5662_v51  ;;  %v5726_v37 = vpop.f32.mrf.mxu1 }
 0x1ec   : > { %v1769_v27 = vadd.f32 %v1731_v62, %v1686_v50  ;;  %v3645_v45 = vpop.f32.mrf.mxu0 }
 0x1ed   : > { %v1732_v44 = vrot.slane %v1649_v26, 6  ;;  %v2039_v46 = vpop.f32.mrf.mxu1 }
 0x1ee   : > { %1785 = vst.msk [vmem:[#allocation3 + $0x48] sm:$0xff] %vm656_vm5, %v1769_v27 }
 0x1ef   : > { %v1733_v1 = vsel %vm1710_vm8, %v1730_v0, %v1732_v44  ;;  %v1653_v25 = vpop.f32.mrf.mxu0  ;;  %v5730_v40 = vpop.f32.mrf.mxu1 }
 0x1f0   : > { %v1770_v31 = vadd.f32 %v1733_v1, %v1687_v47  ;;  %v1654_v33 = vadd.f32 %v1653_v25, %v5668_v3 }
 0x1f1   : > { %v3648_v9 = vpop.f32.mrf.mxu0  ;;  %v2044_v6 = vpop.f32.mrf.mxu1 }
 0x1f2   : > { %1786 = vst.msk [vmem:[#allocation3 + $0x50] sm:$0xff] %vm656_vm5, %v1770_v31  ;;  %v1734_v51 = vrot.slane %v1654_v33, 6  ;;  %v2236_v9 = vld [vmem:[#allocation3] sm:$0xff] }
 0x1f3   : > { %v1658_v35 = vpop.f32.mrf.mxu0 }
 0x1f4   : > { %v1735_v59 = vsel %vm1710_vm8, %v1732_v44, %v1734_v51  ;;  %v1659_v24 = vadd.f32 %v1658_v35, %v5672_v10  ;;  %v5736_v32 = vpop.f32.mrf.mxu1 }
 0x1f5   : > { %v1771_v61 = vadd.f32 %v1735_v59, %v1688_v21  ;;  %v3651_v63 = vpop.f32.mrf.mxu0 }
 0x1f6   : > { %v1736_v54 = vrot.slane %v1659_v24, 6  ;;  %v2049_v41 = vpop.f32.mrf.mxu1 }
 0x1f7   : > { %1787 = vst.msk [vmem:[#allocation3 + $0x58] sm:$0xff] %vm656_vm5, %v1771_v61  ;;  %v1663_v3 = vpop.f32.mrf.mxu0 }
 0x1f8   : > { %v1737_v58 = vsel %vm1710_vm8, %v1734_v51, %v1736_v54  ;;  %v1664_v17 = vadd.f32 %v1663_v3, %v5676_v57  ;;  %v5741_v38 = vpop.f32.mrf.mxu1 }
 0x1f9   : > { %v1772_v30 = vadd.f32 %v1737_v58, %v1689_v53  ;;  %v3654_v19 = vpop.f32.mrf.mxu0 }
 0x1fa   : > { %v1738_v49 = vrot.slane %v1664_v17, 6  ;;  %v2054_v10 = vpop.f32.mrf.mxu1 }
 0x1fb   : > { %1788 = vst.msk [vmem:[#allocation3 + $0x60] sm:$0xff] %vm656_vm5, %v1772_v30 }
 0x1fc   : > { %v1739_v12 = vsel %vm1710_vm8, %v1736_v54, %v1738_v49  ;;  %v1668_v18 = vpop.f32.mrf.mxu0  ;;  %v5745_v42 = vpop.f32.mrf.mxu1 }
 0x1fd   : > { %v1773_v13 = vadd.f32 %v1739_v12, %v1690_v11  ;;  %v1669_v52 = vadd.f32 %v1668_v18, %v5680_v55 }
 0x1fe   : > { %v3657_v4 = vpop.f32.mrf.mxu0  ;;  %v2059_v5 = vpop.f32.mrf.mxu1 }
 0x1ff   : > { %1789 = vst.msk [vmem:[#allocation3 + $0x68] sm:$0xff] %vm656_vm5, %v1773_v13  ;;  %v1740_v57 = vrot.slane %v1669_v52, 6  ;;  %v2239_v4 = vld [vmem:[#allocation3 + $0x18] sm:$0xff] }
 0x200   : > { %v1673_v39 = vpop.f32.mrf.mxu0 }
 0x201   : > { %v1741_v22 = vsel %vm1710_vm8, %v1738_v49, %v1740_v57  ;;  %v1674_v14 = vadd.f32 %v1673_v39, %v5685_v16  ;;  %v5751_v48 = vpop.f32.mrf.mxu1 }
 0x202   : > { %v1774_v20 = vadd.f32 %v1741_v22, %v1691_v29  ;;  %v3660_v36 = vpop.f32.mrf.mxu0 }
 0x203   : > { %v1742_v15 = vrot.slane %v1674_v14, 6  ;;  %v2064_v0 = vpop.f32.mrf.mxu1  ;;  %v2240_v36 = vld [vmem:[#allocation3 + $0x20] sm:$0xff] }
 0x204   : > { %1790 = vst.msk [vmem:[#allocation3 + $0x70] sm:$0xff] %vm656_vm5, %v1774_v20  ;;  %v2152_v55 = vpop.f32.mrf.mxu0 }
 0x205   : > { %v1743_v56 = vsel %vm1710_vm8, %v1740_v57, %v1742_v15  ;;  %v5755_v50 = vpop.f32.mrf.mxu1  ;;  %v2153_v16 = vadd.f32 %v2152_v55, %v5690_v60 }
 0x206   : > { %v1775_v62 = vadd.f32 %v1743_v56, %v1692_v34  ;;  %v3675_v26 = vpop.f32.mrf.mxu0 }
 0x207   : > { %v2069_v27 = vpop.f32.mrf.mxu1  ;;  %v2270_v25 = vrot.slane %v2153_v16, 7 }
 0x208   : > { %1791 = vst.msk [vmem:[#allocation3 + $0x78] sm:$0xff] %vm656_vm5, %v1775_v62  ;;  %v2241_v27 = vld [vmem:[#allocation3 + $0x28] sm:$0xff] }
 0x209   : > { %v5759_v45 = vpop.f32.mrf.mxu1  ;;  %v2157_v44 = vpop.f32.mrf.mxu0 }
 0x20a   : > { %v2158_v46 = vadd.f32 %v2157_v44, %v5694_v8  ;;  %v2237_v8 = vld [vmem:[#allocation3 + $0x8] sm:$0xff] }
 0x20b   : > { %v2074_v47 = vpop.f32.mrf.mxu1  ;;  %v3678_v1 = vpop.f32.mrf.mxu0 }
 0x20c   : > { %v2271_v31 = vrot.slane %v2158_v46, 7 }
 0x20d   : > { %v2162_v33 = vpop.f32.mrf.mxu0 }
 0x20e   : > { %v2272_v6 = vsel %vm195_vm1, %v2270_v25, %v2271_v31  ;;  %v5763_v51 = vpop.f32.mrf.mxu1  ;;  %v2163_v35 = vadd.f32 %v2162_v33, %v5699_v2  ;;  %v2238_v2 = vld [vmem:[#allocation3 + $0x10] sm:$0xff] }
 0x20f   : > { %v2319_v21 = vadd.f32 %v2272_v6, %v2236_v9  ;;  %v3681_v59 = vpop.f32.mrf.mxu0  ;;  %v2242_v33 = vld [vmem:[#allocation3 + $0x30] sm:$0xff] }
 0x210   : > { %v2273_v60 = vrot.slane %v2163_v35, 7  ;;  %v2079_v24 = vpop.f32.mrf.mxu1 }
 0x211   : > { %2335 = vst.msk [vmem:[#allocation3] sm:$0xff] %vm656_vm5, %v2319_v21  ;;  %v2167_v61 = vpop.f32.mrf.mxu0 }
 0x212   : > { %v2274_v63 = vsel %vm195_vm1, %v2271_v31, %v2273_v60  ;;  %v5768_v54 = vpop.f32.mrf.mxu1  ;;  %v2168_v41 = vadd.f32 %v2167_v61, %v5704_v43  ;;  %v2243_v61 = vld [vmem:[#allocation3 + $0x38] sm:$0xff] }
 0x213   : > { %v2320_v3 = vadd.f32 %v2274_v63, %v2237_v8  ;;  %v3684_v53 = vpop.f32.mrf.mxu0 }
 0x214   : > { %v2275_v58 = vrot.slane %v2168_v41, 7  ;;  %v2084_v17 = vpop.f32.mrf.mxu1 }
 0x215   : > { %2336 = vst.msk [vmem:[#allocation3 + $0x8] sm:$0xff] %vm656_vm5, %v2320_v3 }
 0x216   : > { %v2276_v30 = vsel %vm195_vm1, %v2273_v60, %v2275_v58  ;;  %v2172_v19 = vpop.f32.mrf.mxu0  ;;  %v2561_v49 = vpop.f32.mrf.mxu1 }
 0x217   : > { %v2321_v10 = vadd.f32 %v2276_v30, %v2238_v2  ;;  %v2173_v11 = vadd.f32 %v2172_v19, %v5711_v7  ;;  %v2244_v2 = vld [vmem:[#allocation3 + $0x40] sm:$0xff] }
 0x218   : > { %v3687_v12 = vpop.f32.mrf.mxu0  ;;  %v2562_v18 = vpop.f32.mrf.mxu1 }
 0x219   : > { %2337 = vst.msk [vmem:[#allocation3 + $0x10] sm:$0xff] %vm656_vm5, %v2321_v10  ;;  %v2277_v13 = vrot.slane %v2173_v11, 7 }
 0x21a   : > { %v2177_v43 = vpop.f32.mrf.mxu0  ;;  %v5775_v52 = vpop.f32.mrf.mxu1 }
 0x21b   : > { %v2278_v5 = vsel %vm195_vm1, %v2275_v58, %v2277_v13  ;;  %v2178_v57 = vadd.f32 %v2177_v43, %v5716_v23 }
 0x21c   : > { %v2322_v39 = vadd.f32 %v2278_v5, %v2239_v4  ;;  %v3690_v29 = vpop.f32.mrf.mxu0  ;;  %v2567_v22 = vpop.f32.mrf.mxu1 }
 0x21d   : > { %v2279_v14 = vrot.slane %v2178_v57, 7 }
 0x21e   : > { %2338 = vst.msk [vmem:[#allocation3 + $0x18] sm:$0xff] %vm656_vm5, %v2322_v39  ;;  %v2182_v7 = vpop.f32.mrf.mxu0  ;;  %v5780_v20 = vpop.f32.mrf.mxu1 }
 0x21f   : > { %v2280_v15 = vsel %vm195_vm1, %v2277_v13, %v2279_v14  ;;  %v2183_v0 = vadd.f32 %v2182_v7, %v5721_v28  ;;  %v2245_v13 = vld [vmem:[#allocation3 + $0x48] sm:$0xff] }
 0x220   : > { %v2323_v55 = vadd.f32 %v2280_v15, %v2240_v36  ;;  %v3693_v34 = vpop.f32.mrf.mxu0  ;;  %v2572_v56 = vpop.f32.mrf.mxu1 }
 0x221   : > { %v2281_v62 = vrot.slane %v2183_v0, 7 }
 0x222   : > { %2339 = vst.msk [vmem:[#allocation3 + $0x20] sm:$0xff] %vm656_vm5, %v2323_v55  ;;  %v2187_v23 = vpop.f32.mrf.mxu0  ;;  %v5785_v26 = vpop.f32.mrf.mxu1 }
 0x223   : > { %v2282_v16 = vsel %vm195_vm1, %v2279_v14, %v2281_v62  ;;  %v2188_v44 = vadd.f32 %v2187_v23, %v5726_v37  ;;  %v2246_v14 = vld [vmem:[#allocation3 + $0x50] sm:$0xff] }
 0x224   : > { %v2324_v46 = vadd.f32 %v2282_v16, %v2241_v27  ;;  %v3696_v47 = vpop.f32.mrf.mxu0  ;;  %v2577_v1 = vpop.f32.mrf.mxu1 }
 0x225   : > { %v2283_v25 = vrot.slane %v2188_v44, 7 }
 0x226   : > { %2340 = vst.msk [vmem:[#allocation3 + $0x28] sm:$0xff] %vm656_vm5, %v2324_v46  ;;  %v2192_v28 = vpop.f32.mrf.mxu0  ;;  %v5790_v31 = vpop.f32.mrf.mxu1 }
 0x227   : > { %v2284_v9 = vsel %vm195_vm1, %v2281_v62, %v2283_v25  ;;  %v2193_v6 = vadd.f32 %v2192_v28, %v5730_v40  ;;  %v2247_v62 = vld [vmem:[#allocation3 + $0x58] sm:$0xff] }
 0x228   : > { %v2325_v35 = vadd.f32 %v2284_v9, %v2242_v33  ;;  %v3699_v21 = vpop.f32.mrf.mxu0  ;;  %v2582_v59 = vpop.f32.mrf.mxu1 }
 0x229   : > { %v2285_v60 = vrot.slane %v2193_v6, 7 }
 0x22a   : > { %2341 = vst.msk [vmem:[#allocation3 + $0x30] sm:$0xff] %vm656_vm5, %v2325_v35  ;;  %v2197_v37 = vpop.f32.mrf.mxu0  ;;  %v5795_v24 = vpop.f32.mrf.mxu1 }
 0x22b   : > { %v2286_v8 = vsel %vm195_vm1, %v2283_v25, %v2285_v60  ;;  %v2198_v63 = vadd.f32 %v2197_v37, %v5736_v32  ;;  %v2248_v25 = vld [vmem:[#allocation3 + $0x60] sm:$0xff] }
 0x22c   : > { %v2326_v41 = vadd.f32 %v2286_v8, %v2243_v61  ;;  %v3702_v3 = vpop.f32.mrf.mxu0  ;;  %v2587_v53 = vpop.f32.mrf.mxu1 }
 0x22d   : > { %v2287_v58 = vrot.slane %v2198_v63, 7 }
 0x22e   : > { %2342 = vst.msk [vmem:[#allocation3 + $0x38] sm:$0xff] %vm656_vm5, %v2326_v41  ;;  %v2202_v40 = vpop.f32.mrf.mxu0  ;;  %v5800_v17 = vpop.f32.mrf.mxu1 }
 0x22f   : > { %v2288_v30 = vsel %vm195_vm1, %v2285_v60, %v2287_v58  ;;  %v2203_v19 = vadd.f32 %v2202_v40, %v5741_v38  ;;  %v2249_v60 = vld [vmem:[#allocation3 + $0x68] sm:$0xff] }
 0x230   : > { %v2327_v49 = vadd.f32 %v2288_v30, %v2244_v2  ;;  %v3705_v10 = vpop.f32.mrf.mxu0  ;;  %v2592_v11 = vpop.f32.mrf.mxu1 }
 0x231   : > { %v2289_v12 = vrot.slane %v2203_v19, 7 }
 0x232   : > { %2343 = vst.msk [vmem:[#allocation3 + $0x40] sm:$0xff] %vm656_vm5, %v2327_v49  ;;  %v2207_v32 = vpop.f32.mrf.mxu0  ;;  %v5805_v18 = vpop.f32.mrf.mxu1 }
 0x233   : > { %v2290_v43 = vsel %vm195_vm1, %v2287_v58, %v2289_v12  ;;  %v2208_v4 = vadd.f32 %v2207_v32, %v5745_v42  ;;  %v2250_v58 = vld [vmem:[#allocation3 + $0x70] sm:$0xff] }
 0x234   : > { %v2328_v5 = vadd.f32 %v2290_v43, %v2245_v13  ;;  %v3708_v57 = vpop.f32.mrf.mxu0  ;;  %v2597_v39 = vpop.f32.mrf.mxu1 }
 0x235   : > { %v2291_v29 = vrot.slane %v2208_v4, 7  ;;  %v2841_v39 = vlaneseq }
 0x236   : > { %2344 = vst.msk [vmem:[#allocation3 + $0x48] sm:$0xff] %vm656_vm5, %v2328_v5  ;;  %v2212_v38 = vpop.f32.mrf.mxu0  ;;  %v5810_v22 = vpop.f32.mrf.mxu1 }
 0x237   : > { %v2292_v7 = vsel %vm195_vm1, %v2289_v12, %v2291_v29  ;;  %v2213_v36 = vadd.f32 %v2212_v38, %v5751_v48  ;;  %v2251_v12 = vld [vmem:[#allocation3 + $0x78] sm:$0xff] }
 0x238   : > { %v2329_v15 = vadd.f32 %v2292_v7, %v2246_v14  ;;  %v3711_v0 = vpop.f32.mrf.mxu0  ;;  %v2602_v55 = vpop.f32.mrf.mxu1 }
 0x239   : > { %v2293_v34 = vrot.slane %v2213_v36, 7  ;;  %v2845_v55 = vand.u32 127, %v2841_v39 }
 0x23a   : > { %2345 = vst.msk [vmem:[#allocation3 + $0x50] sm:$0xff] %vm656_vm5, %v2329_v15  ;;  %v2217_v42 = vpop.f32.mrf.mxu0  ;;  %v5815_v56 = vpop.f32.mrf.mxu1 }
 0x23b   : > { %v2294_v23 = vsel %vm195_vm1, %v2291_v29, %v2293_v34  ;;  %v2218_v27 = vadd.f32 %v2217_v42, %v5755_v50  ;;  %v2793_v29 = vld [vmem:[#allocation3] sm:$0xff]  ;;  %vm2846_vm9 = vcmp.ge.s32.totalorder %v2845_v55, 6  ;;  %vm2849_vm10 = vcmp.ge.s32.totalorder %v2845_v55, 12 }
 0x23c   : > { %v2330_v16 = vadd.f32 %v2294_v23, %v2247_v62  ;;  %v3714_v44 = vpop.f32.mrf.mxu0  ;;  %v2607_v46 = vpop.f32.mrf.mxu1 }
 0x23d   : > { %v2295_v47 = vrot.slane %v2218_v27, 7  ;;  %v2795_v44 = vld [vmem:[#allocation3 + $0x10] sm:$0xff] }
 0x23e   : > { %2346 = vst.msk [vmem:[#allocation3 + $0x58] sm:$0xff] %vm656_vm5, %v2330_v16  ;;  %v2222_v48 = vpop.f32.mrf.mxu0  ;;  %v5820_v1 = vpop.f32.mrf.mxu1 }
 0x23f   : > { %v2296_v28 = vsel %vm195_vm1, %v2293_v34, %v2295_v47  ;;  %v2223_v33 = vadd.f32 %v2222_v48, %v5759_v45  ;;  %v2794_v34 = vld [vmem:[#allocation3 + $0x8] sm:$0xff] }
 0x240   : > { %v2331_v9 = vadd.f32 %v2296_v28, %v2248_v25  ;;  %v3717_v6 = vpop.f32.mrf.mxu0  ;;  %v2612_v35 = vpop.f32.mrf.mxu1 }
 0x241   : > { %v2297_v21 = vrot.slane %v2223_v33, 7  ;;  %v2796_v35 = vld [vmem:[#allocation3 + $0x18] sm:$0xff] }
 0x242   : > { %2347 = vst.msk [vmem:[#allocation3 + $0x60] sm:$0xff] %vm656_vm5, %v2331_v9  ;;  %v2227_v50 = vpop.f32.mrf.mxu0  ;;  %v2615_v59 = vpop.f32.mrf.mxu1 }
 0x243   : > { %v2298_v37 = vsel %vm195_vm1, %v2295_v47, %v2297_v21  ;;  %v2228_v61 = vadd.f32 %v2227_v50, %v5763_v51 }
 0x244   : > { %v2332_v8 = vadd.f32 %v2298_v37, %v2249_v60  ;;  %v3720_v63 = vpop.f32.mrf.mxu0  ;;  %v2617_v41 = vpop.f32.mrf.mxu1 }
 0x245   : > { %v2299_v3 = vrot.slane %v2228_v61, 7 }
 0x246   : > { %2348 = vst.msk [vmem:[#allocation3 + $0x68] sm:$0xff] %vm656_vm5, %v2332_v8  ;;  %v2232_v45 = vpop.f32.mrf.mxu0  ;;  %v5828_v53 = vpop.f32.mrf.mxu1 }
 0x247   : > { %v2300_v40 = vsel %vm195_vm1, %v2297_v21, %v2299_v3  ;;  %v2233_v2 = vadd.f32 %v2232_v45, %v5768_v54  ;;  %v2803_v21 = vld [vmem:[#allocation3 + $0x50] sm:$0xff]  ;;  %v2804_v45 = vld [vmem:[#allocation3 + $0x58] sm:$0xff] }
 0x248   : > { %v2333_v30 = vadd.f32 %v2300_v40, %v2250_v58  ;;  %v3723_v19 = vpop.f32.mrf.mxu0  ;;  %v2622_v49 = vpop.f32.mrf.mxu1 }
 0x249   : > { %v2301_v10 = vrot.slane %v2233_v2, 7  ;;  %v2842_v2 = vshrl.u32 %v2841_v39, 7 }
 0x24a   : > { %2349 = vst.msk [vmem:[#allocation3 + $0x70] sm:$0xff] %vm656_vm5, %v2333_v30  ;;  %v5833_v51 = vpop.f32.mrf.mxu1  ;;  %v2710_v11 = vpop.f32.mrf.mxu0 }
 0x24b   : > { %v2302_v32 = vsel %vm195_vm1, %v2299_v3, %v2301_v10  ;;  %vm3006_vm1 = vcmask 1045509  }
 0x24c   : > { %v2334_v13 = vadd.f32 %v2302_v32, %v2251_v12  ;;  %v2627_v43 = vpop.f32.mrf.mxu1  ;;  %v3738_v4 = vpop.f32.mrf.mxu0  ;;  %v2843_v12 = vadd.s32 8, %v2842_v2 }
 0x24d   : > { %v2805_v43 = vld [vmem:[#allocation3 + $0x60] sm:$0xff] }
 0x24e   : > { %2350 = vst.msk [vmem:[#allocation3 + $0x78] sm:$0xff] %vm656_vm5, %v2334_v13  ;;  %v5837_v5 = vpop.f32.mrf.mxu1  ;;  %v2714_v54 = vpop.f32.mrf.mxu0  ;;  %v2798_v13 = vld [vmem:[#allocation3 + $0x28] sm:$0xff] }
 0x24f   : > { %v2715_v57 = vadd.f32 %v2714_v54, %v5775_v52 }
 0x250   : > { %v2632_v38 = vpop.f32.mrf.mxu1  ;;  %v3741_v14 = vpop.f32.mrf.mxu0 }
 0x251   : > { %v2809_v7 = vadd.f32 %v2793_v29, %v2715_v57 }
 0x252   : > { %v5840_v36 = vpop.f32.mrf.mxu1  ;;  %v2719_v15 = vpop.f32.mrf.mxu0 }
 0x253   : > { %2825 = vst.msk [vmem:[#allocation3] sm:$0xff] %vm656_vm5, %v2809_v7  ;;  %v2720_v0 = vadd.f32 %v2719_v15, %v5780_v20  ;;  %v3922_v20 = vmov 0  }
 0x254   : > { %v2637_v42 = vpop.f32.mrf.mxu1  ;;  %v3744_v62 = vpop.f32.mrf.mxu0  ;;  %v2847_v33 = vsel %vm2846_vm9, 1, %v3922_v20  ;;  %v2850_v41 = vsel %vm2849_vm10, 1, %v3922_v20 }
 0x255   : > { %v2810_v23 = vadd.f32 %v2794_v34, %v2720_v0  ;;  %v2848_v61 = vadd.s32 11, %v2847_v33  ;;  %v2799_v42 = vld [vmem:[#allocation3 + $0x30] sm:$0xff]  ;;  %v2806_v62 = vld [vmem:[#allocation3 + $0x68] sm:$0xff] }
 0x256   : > { %v5844_v27 = vpop.f32.mrf.mxu1  ;;  %v2724_v52 = vpop.f32.mrf.mxu0 }
 0x257   : > { %2826 = vst.msk [vmem:[#allocation3 + $0x8] sm:$0xff] %vm656_vm5, %v2810_v23  ;;  %v2725_v16 = vadd.f32 %v2724_v52, %v5785_v26  ;;  %v2851_v49 = vadd.s32 %v2850_v41, %v2848_v61 }
 0x258   : > { %v2642_v46 = vpop.f32.mrf.mxu1  ;;  %v3747_v47 = vpop.f32.mrf.mxu0 }
 0x259   : > { %v2811_v48 = vadd.f32 %v2795_v44, %v2725_v16  ;;  %vm5858_vm11 = vcmp.lt.s32.totalorder %v2842_v2, %v2851_v49  ;;  %vm5862_vm12 = vcmp.lt.s32.totalorder %v2843_v12, %v2851_v49  ;;  %v2808_v12 = vld [vmem:[#allocation3 + $0x78] sm:$0xff] }
 0x25a   : > { %v2729_v25 = vpop.f32.mrf.mxu0  ;;  %v2764_v28 = vpop.f32.mrf.mxu1  ;;  %v2854_v16 = vld [vmem:[#allocation3] sm:$0xff] }
 0x25b   : > { %2827 = vst.msk [vmem:[#allocation3 + $0x10] sm:$0xff] %vm656_vm5, %v2811_v48  ;;  %v2730_v9 = vadd.f32 %v2729_v25, %v5790_v31  ;;  %v2765_v6 = vadd.f32 %v2764_v28, %v2615_v59  ;;  %v2797_v59 = vld [vmem:[#allocation3 + $0x20] sm:$0xff] }
 0x25c   : > { %v3750_v50 = vpop.f32.mrf.mxu0  ;;  %v3771_v60 = vpop.f32.mrf.mxu1 }
 0x25d   : > { %v2812_v26 = vadd.f32 %v2796_v35, %v2730_v9  ;;  %v2819_v37 = vadd.f32 %v2803_v21, %v2765_v6  ;;  %v2874_v21 = vsel %vm5858_vm11, %v2854_v16, -inf  ;;  %v2800_v60 = vld [vmem:[#allocation3 + $0x38] sm:$0xff] }
 0x25e   : > { %v2734_v8 = vpop.f32.mrf.mxu0  ;;  %v2769_v63 = vpop.f32.mrf.mxu1 }
 0x25f   : > { %2828 = vst.msk [vmem:[#allocation3 + $0x18] sm:$0xff] %vm656_vm5, %v2812_v26  ;;  %2835 = vst.msk [vmem:[#allocation3 + $0x50] sm:$0xff] %vm656_vm5, %v2819_v37  ;;  %v2735_v3 = vadd.f32 %v2734_v8, %v5795_v24  ;;  %v2770_v31 = vadd.f32 %v2769_v63, %v5828_v53  ;;  %v2807_v26 = vld [vmem:[#allocation3 + $0x70] sm:$0xff] }
 0x260   : > { %v3753_v58 = vpop.f32.mrf.mxu0  ;;  %v3774_v40 = vpop.f32.mrf.mxu1 }
 0x261   : > { %v2813_v30 = vadd.f32 %v2797_v59, %v2735_v3  ;;  %v2820_v19 = vadd.f32 %v2804_v45, %v2770_v31  ;;  %v2890_v40 = vsel %vm656_vm5, %v2874_v21, -inf }
 0x262   : > { %v2739_v10 = vpop.f32.mrf.mxu0  ;;  %v2774_v11 = vpop.f32.mrf.mxu1  ;;  %v2856_v53 = vld [vmem:[#allocation3 + $0x10] sm:$0xff] }
 0x263   : > { %2829 = vst.msk [vmem:[#allocation3 + $0x20] sm:$0xff] %vm656_vm5, %v2813_v30  ;;  %2836 = vst.msk [vmem:[#allocation3 + $0x58] sm:$0xff] %vm656_vm5, %v2820_v19  ;;  %v2740_v32 = vadd.f32 %v2739_v10, %v5800_v17  ;;  %v2775_v24 = vadd.f32 %v2774_v11, %v5833_v51  ;;  %v2855_v17 = vld [vmem:[#allocation3 + $0x8] sm:$0xff]  ;;  %v2876_v51 = vsel %vm5858_vm11, %v2856_v53, -inf  ;;  %v2801_v11 = vld [vmem:[#allocation3 + $0x40] sm:$0xff] }
 0x264   : > { %v3756_v4 = vpop.f32.mrf.mxu0  ;;  %v3777_v54 = vpop.f32.mrf.mxu1  ;;  %v2875_v25 = vsel %vm5862_vm12, %v2855_v17, -inf }
 0x265   : > { %v2814_v57 = vadd.f32 %v2798_v13, %v2740_v32  ;;  %v2821_v39 = vadd.f32 %v2805_v43, %v2775_v24  ;;  %v2891_v63 = vsel %vm656_vm5, %v2875_v25, -inf }
 0x266   : > { %v2744_v38 = vpop.f32.mrf.mxu0  ;;  %v2779_v14 = vpop.f32.mrf.mxu1  ;;  %v2857_v15 = vld [vmem:[#allocation3 + $0x18] sm:$0xff]  ;;  %v2864_v48 = vld [vmem:[#allocation3 + $0x50] sm:$0xff]  ;;  %v2892_v53 = vmax.f32 %v2890_v40, %v2891_v63 }
 0x267   : > { %2830 = vst.msk [vmem:[#allocation3 + $0x28] sm:$0xff] %vm656_vm5, %v2814_v57  ;;  %2837 = vst.msk [vmem:[#allocation3 + $0x60] sm:$0xff] %vm656_vm5, %v2821_v39  ;;  %v2745_v0 = vadd.f32 %v2744_v38, %v5805_v18  ;;  %v2780_v55 = vadd.f32 %v2779_v14, %v5837_v5  ;;  %v2877_v34 = vsel %vm5862_vm12, %v2857_v15, -inf  ;;  %v2899_v18 = vsel %vm656_vm5, %v2876_v51, -inf }
 0x268   : > { %v3759_v23 = vpop.f32.mrf.mxu0  ;;  %v3780_v52 = vpop.f32.mrf.mxu1  ;;  %v2900_v44 = vsel %vm656_vm5, %v2877_v34, -inf  ;;  %v2884_v8 = vsel %vm5858_vm11, %v2864_v48, -inf }
 0x269   : > { %v2815_v46 = vadd.f32 %v2799_v42, %v2745_v0  ;;  %v2822_v47 = vadd.f32 %v2806_v62, %v2780_v55  ;;  %v2901_v9 = vmax.f32 %v2899_v18, %v2900_v44  ;;  %v2935_v10 = vsel %vm656_vm5, %v2884_v8, -inf  ;;  %v2802_v55 = vld [vmem:[#allocation3 + $0x48] sm:$0xff] }
 0x26a   : > { %v2749_v28 = vpop.f32.mrf.mxu0  ;;  %v2784_v5 = vpop.f32.mrf.mxu1  ;;  %v2858_v20 = vld [vmem:[#allocation3 + $0x20] sm:$0xff]  ;;  %v2865_v33 = vld [vmem:[#allocation3 + $0x58] sm:$0xff]  ;;  %v2893_v42 = vrot.slane %v2892_v53, 4 }
 0x26b   : > { %2831 = vst.msk [vmem:[#allocation3 + $0x30] sm:$0xff] %vm656_vm5, %v2815_v46  ;;  %2838 = vst.msk [vmem:[#allocation3 + $0x68] sm:$0xff] %vm656_vm5, %v2822_v47  ;;  %v2750_v6 = vadd.f32 %v2749_v28, %v5810_v22  ;;  %v2785_v35 = vadd.f32 %v2784_v5, %v5840_v36  ;;  %v2885_v50 = vsel %vm5862_vm12, %v2865_v33, -inf  ;;  %v2878_v22 = vsel %vm5858_vm11, %v2858_v20, -inf }
 0x26c   : > { %v3762_v37 = vpop.f32.mrf.mxu0  ;;  %v3783_v61 = vpop.f32.mrf.mxu1  ;;  %v2936_v36 = vsel %vm656_vm5, %v2885_v50, -inf  ;;  %v2902_v2 = vrot.slane %v2901_v9, 4  ;;  %v2908_v13 = vsel %vm656_vm5, %v2878_v22, -inf  ;;  %v2894_v20 = vmax.f32 %v2892_v53, %v2893_v42 }
 0x26d   : > { %v2816_v41 = vadd.f32 %v2800_v60, %v2750_v6  ;;  %v2823_v3 = vadd.f32 %v2807_v26, %v2785_v35  ;;  %v2937_v4 = vmax.f32 %v2935_v10, %v2936_v36 }
 0x26e   : > { %v2754_v31 = vpop.f32.mrf.mxu0  ;;  %v2789_v59 = vpop.f32.mrf.mxu1  ;;  %v2859_v45 = vld [vmem:[#allocation3 + $0x28] sm:$0xff]  ;;  %v2866_v58 = vld [vmem:[#allocation3 + $0x60] sm:$0xff]  ;;  %v2903_v17 = vmax.f32 %v2901_v9, %v2902_v2 }
 0x26f   : > { %2832 = vst.msk [vmem:[#allocation3 + $0x38] sm:$0xff] %vm656_vm5, %v2816_v41  ;;  %2839 = vst.msk [vmem:[#allocation3 + $0x70] sm:$0xff] %vm656_vm5, %v2823_v3  ;;  %v2755_v30 = vadd.f32 %v2754_v31, %v5815_v56  ;;  %v2790_v19 = vadd.f32 %v2789_v59, %v5844_v27  ;;  %v2879_v49 = vsel %vm5862_vm12, %v2859_v45, -inf  ;;  %v2886_v56 = vsel %vm5858_vm11, %v2866_v58, -inf }
 0x270   : > { %v3765_v32 = vpop.f32.mrf.mxu0  ;;  %v3786_v24 = vpop.f32.mrf.mxu1  ;;  %v2909_v43 = vsel %vm656_vm5, %v2879_v49, -inf  ;;  %v2938_v62 = vrot.slane %v2937_v4, 4  ;;  %v2944_v23 = vsel %vm656_vm5, %v2886_v56, -inf  ;;  %v2904_v25 = vrot.slane %v2903_v17, 2 }
 0x271   : > { %v2817_v54 = vadd.f32 %v2801_v11, %v2755_v30  ;;  %v2824_v57 = vadd.f32 %v2808_v12, %v2790_v19  ;;  %v2910_v27 = vmax.f32 %v2908_v13, %v2909_v43  ;;  %v2895_v41 = vrot.slane %v2894_v20, 2 }
 0x272   : > { %v2759_v39 = vpop.f32.mrf.mxu0  ;;  %v2860_v38 = vld [vmem:[#allocation3 + $0x30] sm:$0xff]  ;;  %v2867_v14 = vld [vmem:[#allocation3 + $0x68] sm:$0xff]  ;;  %v2939_v6 = vmax.f32 %v2937_v4, %v2938_v62  ;;  %v2905_v37 = vmax.f32 %v2903_v17, %v2904_v25 }
 0x273   : > { %2833 = vst.msk [vmem:[#allocation3 + $0x40] sm:$0xff] %vm656_vm5, %v2817_v54  ;;  %2840 = vst.msk [vmem:[#allocation3 + $0x78] sm:$0xff] %vm656_vm5, %v2824_v57  ;;  %v2760_v15 = vadd.f32 %v2759_v39, %v5820_v1  ;;  %v2887_v51 = vsel %vm5862_vm12, %v2867_v14, -inf  ;;  %v2911_v0 = vrot.slane %v2910_v27, 4  ;;  %v2880_v44 = vsel %vm5858_vm11, %v2860_v38, -inf }
 0x274   : > { %v3768_v34 = vpop.f32.mrf.mxu0  ;;  %v2945_v52 = vsel %vm656_vm5, %v2887_v51, -inf  ;;  %v2917_v33 = vsel %vm656_vm5, %v2880_v44, -inf  ;;  %v2940_v3 = vrot.slane %v2939_v6, 2  ;;  %v2906_v2 = vrot.slane %v2905_v37, 1  ;;  %v3350_v51 = vld [vmem:[%s5981_s2] ss:$0 sm:$0xff] }
 0x275   : > { %v2818_v16 = vadd.f32 %v2802_v55, %v2760_v15  ;;  %v2912_v46 = vmax.f32 %v2910_v27, %v2911_v0  ;;  %v2946_v47 = vmax.f32 %v2944_v23, %v2945_v52  ;;  %v2896_v11 = vmax.f32 %v2894_v20, %v2895_v41 }
 0x276   : > { %v2861_v48 = vld [vmem:[#allocation3 + $0x38] sm:$0xff]  ;;  %v2868_v1 = vld [vmem:[#allocation3 + $0x70] sm:$0xff]  ;;  %v2941_v24 = vmax.f32 %v2939_v6, %v2940_v3  ;;  %v2907_v4 = vmax.f32 %v2905_v37, %v2906_v2 }
 0x277   : > { %2834 = vst.msk [vmem:[#allocation3 + $0x48] sm:$0xff] %vm656_vm5, %v2818_v16  ;;  %v2881_v18 = vsel %vm5862_vm12, %v2861_v48, -inf  ;;  %v2913_v28 = vrot.slane %v2912_v46, 2  ;;  %v2947_v5 = vrot.slane %v2946_v47, 4  ;;  %v2888_v35 = vsel %vm5858_vm11, %v2868_v1, -inf }
 0x278   : > { %v2918_v9 = vsel %vm656_vm5, %v2881_v18, -inf  ;;  %v2953_v22 = vsel %vm656_vm5, %v2888_v35, -inf  ;;  %v2897_v7 = vrot.slane %v2896_v11, 1  ;;  %v2942_v39 = vrot.slane %v2941_v24, 1 }
 0x279   : > { %v2919_v21 = vmax.f32 %v2917_v33, %v2918_v9  ;;  %v2948_v50 = vmax.f32 %v2946_v47, %v2947_v5  ;;  %v2914_v8 = vmax.f32 %v2912_v46, %v2913_v28  ;;  %v2970_v0 = vadd.f32 %v3350_v51, %v2907_v4 }
 0x27a   : > { %v2862_v60 = vld [vmem:[#allocation3 + $0x40] sm:$0xff]  ;;  %v2869_v26 = vld [vmem:[#allocation3 + $0x78] sm:$0xff]  ;;  %v2898_v62 = vmax.f32 %v2896_v11, %v2897_v7  ;;  %v2943_v23 = vmax.f32 %v2941_v24, %v2942_v39 }
 0x27b   : > { %v2889_v61 = vsel %vm5862_vm12, %v2869_v26, -inf  ;;  %v2920_v63 = vrot.slane %v2919_v21, 4  ;;  %v2882_v31 = vsel %vm5858_vm11, %v2862_v60, -inf  ;;  %v2949_v45 = vrot.slane %v2948_v50, 2 }
 0x27c   : > { %v2954_v36 = vsel %vm656_vm5, %v2889_v61, -inf  ;;  %v2915_v19 = vrot.slane %v2914_v8, 1  ;;  %v2926_v12 = vsel %vm656_vm5, %v2882_v31, -inf  ;;  %v2978_v47 = vmax.f32 %v2970_v0, 0.0 }
 0x27d   : > { %v2921_v59 = vmax.f32 %v2919_v21, %v2920_v63  ;;  %v2955_v58 = vmax.f32 %v2953_v22, %v2954_v36  ;;  %v2950_v13 = vmax.f32 %v2948_v50, %v2949_v45  ;;  %v2969_v25 = vadd.f32 %v3350_v51, %v2898_v62 }
 0x27e   : > { %v2863_v40 = vld [vmem:[#allocation3 + $0x48] sm:$0xff]  ;;  %v2916_v54 = vmax.f32 %v2914_v8, %v2915_v19  ;;  %v2974_v18 = vadd.f32 %v3350_v51, %v2943_v23  ;;  %v2993_v9 = vrot.slane %v2978_v47, 7 }
 0x27f   : > { %v2883_v30 = vsel %vm5862_vm12, %v2863_v40, -inf  ;;  %v2922_v49 = vrot.slane %v2921_v59, 2  ;;  %v2956_v10 = vrot.slane %v2955_v58, 4  ;;  %v2951_v17 = vrot.slane %v2950_v13, 1 }
 0x280   : > { %v2927_v32 = vsel %vm656_vm5, %v2883_v30, -inf  ;;  %v2971_v42 = vadd.f32 %v3350_v51, %v2916_v54  ;;  %v2977_v21 = vmax.f32 %v2969_v25, 0.0  ;;  %v2982_v50 = vmax.f32 %v2974_v18, 0.0 }
 0x281   : > { %v2923_v53 = vmax.f32 %v2921_v59, %v2922_v49  ;;  %v2928_v29 = vmax.f32 %v2926_v12, %v2927_v32  ;;  %v2957_v43 = vmax.f32 %v2955_v58, %v2956_v10  ;;  %v2952_v44 = vmax.f32 %v2950_v13, %v2951_v17 }
 0x282   : > { %v2979_v1 = vmax.f32 %v2971_v42, 0.0  ;;  %v2995_v8 = vsel %vm2994_vm13, %v2993_v9, %v2977_v21  ;;  %v3005_v22 = vrot.slane %v2982_v50, 3 }
 0x283   : > { %v2924_v57 = vrot.slane %v2923_v53, 1  ;;  %v2929_v56 = vrot.slane %v2928_v29, 4  ;;  %v2958_v27 = vrot.slane %v2957_v43, 2  ;;  %v2975_v20 = vadd.f32 %v3350_v51, %v2952_v44 }
 0x284   : > { %v2996_v35 = vrot.slane %v2979_v1, 6 }
 0x285   : > { %v2925_v38 = vmax.f32 %v2923_v53, %v2924_v57  ;;  %v2930_v14 = vmax.f32 %v2928_v29, %v2929_v56  ;;  %v2959_v15 = vmax.f32 %v2957_v43, %v2958_v27  ;;  %v2983_v37 = vmax.f32 %v2975_v20, 0.0 }
 0x286   : > { %v2998_v63 = vsel %vm2997_vm14, %v2996_v35, %v2995_v8 }
 0x287   : > { %v2931_v55 = vrot.slane %v2930_v14, 2  ;;  %v2960_v34 = vrot.slane %v2959_v15, 1  ;;  %v2972_v52 = vadd.f32 %v3350_v51, %v2925_v38  ;;  %v3008_v31 = vrot.slane %v2983_v37, 2 }
 0x289   : > { %v2932_v16 = vmax.f32 %v2930_v14, %v2931_v55  ;;  %v2961_v46 = vmax.f32 %v2959_v15, %v2960_v34  ;;  %v2980_v28 = vmax.f32 %v2972_v52, 0.0 }
 0x28b   : > { %v2933_v48 = vrot.slane %v2932_v16, 1  ;;  %v2976_v33 = vadd.f32 %v3350_v51, %v2961_v46  ;;  %v2999_v60 = vrot.slane %v2980_v28, 5 }
 0x28d   : > { %v2934_v5 = vmax.f32 %v2932_v16, %v2933_v48  ;;  %v2984_v61 = vmax.f32 %v2976_v33, 0.0  ;;  %v3001_v3 = vsel %vm3000_vm15, %v2999_v60, %v2998_v63 }
 0x28f   : > { %v2973_v6 = vadd.f32 %v3350_v51, %v2934_v5  ;;  %v3011_v45 = vrot.slane %v2984_v61, 1 }
 0x291   : > { %v2981_v26 = vmax.f32 %v2973_v6, 0.0 }
 0x293   : > { %v3002_v41 = vrot.slane %v2981_v26, 4 }
 0x295   : > { %v3004_v36 = vsel %vm3003_vm0, %v3002_v41, %v3001_v3 }
 0x296   : > { %v3007_v59 = vsel %vm3006_vm1, %v3005_v22, %v3004_v36 }
 0x297   : > { %v3010_v58 = vsel %vm3009_vm2, %v3008_v31, %v3007_v59 }
 0x298   : > { %v3013_v40 = vsel %vm3012_vm3, %v3011_v45, %v3010_v58 }
 0x299   : > { %3015 = vst.msk [vmem:[%s166_s4] sm:$0xff] %vm656_vm5, %v3013_v40 }
 0x29a   : > { %3863 = shalt.err (!%p3860_p4)
}
 0x29b   : > { %s3864_s26 = scalar_lea.hbm %s5939_s9, 128  ;;  %s3868_s20 = scalar_lea.hbm %s5982_s3, 256 }
 0x29c   : > { %p3865_p7 = scmp.ne.s32.totalorder %s5939_s9, %s3864_s26  ;;  %p3869_p10 = scmp.lt.s32.totalorder %s5939_s9, %s5982_s3 }
 0x29d   : > { %p3870_p11 = scmp.lt.s32.totalorder %s3868_s20, %s3864_s26 }
 0x29e   : > { %p3866_p8 = pnand %p3865_p7, %p3982_p5 }
 0x29f   : > { %p3871_p12 = por %p3870_p11, %p3869_p10 }
 0x2a0   : > { %p3867_p9 = pneg %p3866_p8 }
 0x2a2   : > { %p3872_p13 = pnand %p3871_p12, %p3867_p9 }
 0x2a4   : > { %3875 = shalt.err (!%p3872_p13)
}
 0x2a5   : > { %3800 = dma.vmem_to_hbm [thread:$0]  (%p3982_p5), %s3031_s6, 128, %s5939_s9, %s3017_s16  }
 0x2a6 PF: > { %p3806_p0 = scmp.ge.s32.totalorder %s3914_s15, 2  ;;  %s3042_s28 = sand.u32 1, %s3902_s12  }
 0x2a7   : > { %s3043_s29 = scalar_lea.sflag [#allocation5], %s3042_s28 }
 0x2a8   : > { %p3803_p1 = pnand %p3806_p0, %p3986_p6 }
 0x2aa   : > { %p3804_p2 = pneg %p3803_p1 }
 0x2ac   : > { %3897 = dma.done.wait (%p3804_p2), %s3043_s29, 128  }
 0x2ad   : > { %3899 = vsyncadd (%p3804_p2), %s3043_s29, 4294967168  ;;  %p13_p3 = scmp.ge.s32.totalorder %s3969_s18, 4   ;;  %s6011_s12 = smov %s3906_s13 }
 0x2ae   : > { %s6012_s13 = smov %s3910_s14  ;;  %s6013_s14 = smov %s3980_s21 }
 0x2af   : > { %s6014_s15 = smov %s3969_s18  ;;  %15 = sbr.rel (!%p13_p3) target bundleno = 3 (0x3), region = 91 }
 0x2b4   :  { %3048 = vsyncpa [#allocation5], 1 }
 0x2b5   :  { %3050 = vsyncpa [#allocation5 + $0x1], 1 }

</bundles_post_ra>
